<compile_context>
chip_gen: v5e
topology: v5e:2x2
jax: 0.10.0
libtpu: 0.0.40
codegen_flags: <defaults>
</compile_context>

<pallas_src>
import functools
import math

import jax
import jax.numpy as jnp
from jax import lax
from jax.experimental import pallas as pl
from jax.experimental.pallas import tpu as pltpu


# MXU operand dtype: bf16 is native-rate on v5e/v6e/v7x MXUs and halves weight DMA /
# VMEM footprint.  Accumulation is always f32 (preferred_element_type).
MXU_DTYPE = jnp.bfloat16

# Row layout of the packed per-layer vector block ([L+1, 8, H]).
VEC_BO, VEC_G1, VEC_BE1, VEC_BF2, VEC_G2, VEC_BE2 = 0, 1, 2, 3, 4, 5
# Row layout of the packed head vector block ([8, H]).
HVEC_FCB, HVEC_B1 = 0, 1


# ----------------------------- fused kernel -----------------------------------


def qnetwork_kernel(claims_ref, ev_ref, mask_ref,
                    wqkv_ref, bqkv_ref, wo_ref, w1_ref, w2_ref, bf1_ref, vec_ref,
                    hws_ref, hvec_ref, hw2_ref, hb2_ref,
                    out_ref, *, nheads, num_layers):
    """Entire QNetwork forward for one batch element; all weights resident in VMEM."""
    f32 = jnp.float32
    H = ev_ref.shape[-1]
    dh = H // nheads

    ev = ev_ref[0].astype(f32)          # [S, H]
    claims = claims_ref[0].astype(f32)  # [1, H]
    kmask = mask_ref[0].astype(f32)     # [1, S]

    # Additive key mask, hoisted once and reused by every attention layer.
    # Note: assumes at least one unmasked key per row (as in the reference usage).
    neg = ((1.0 - kmask) * (-1e9))[None]    # [1, 1, S] -> broadcasts over (head, q)

    def mm2(x, w):                          # [M, K] @ [K, N], f32 accumulation
        return jnp.dot(x.astype(MXU_DTYPE), w, preferred_element_type=f32)

    def layer_norm(x, g, b, eps=1e-5):      # two-pass LN (robust), f32 VPU math
        mu = jnp.mean(x, axis=-1, keepdims=True)
        xc = x - mu
        var = jnp.mean(xc * xc, axis=-1, keepdims=True)
        return xc * lax.rsqrt(var + eps) * g + b

    def project(li, x):
        # Fused head-major Q|K|V projection: [M, H] -> [nheads, M, 3*dh].
        # Head axis is the dot_general batch dim; no lane-splitting reshape needed.
        xg = jnp.broadcast_to(x.astype(MXU_DTYPE)[None], (nheads,) + x.shape)
        p = jnp.einsum('hmk,hkd->hmd', xg, wqkv_ref[li],
                       preferred_element_type=f32)
        return p + bqkv_ref[li]             # bias [nheads, 1, 3*dh], f32

    def transformer_block(li, q_in, kv, self_attn):
        """MHA(q_in, kv, kv) + residual + LN + FFN + residual + LN for layer `li`."""
        pkv = project(li, kv)                               # [h, Sk, 3*dh]
        pq = pkv if self_attn else project(li, q_in)        # [h, Sq, 3*dh]
        Qh = pq[:, :, 0:dh]                                 # scale folded into wq/bq
        Kh = pkv[:, :, dh:2 * dh]
        Vh = pkv[:, :, 2 * dh:3 * dh]

        # Head-batched attention: one QK^T, one softmax, one P@V for all heads.
        s = jnp.einsum('hqd,hkd->hqk', Qh.astype(MXU_DTYPE), Kh.astype(MXU_DTYPE),
                       preferred_element_type=f32) + neg    # [h, Sq, Sk]
        s = s - jnp.max(s, axis=-1, keepdims=True)
        p = jnp.exp(s)
        p = p / jnp.sum(p, axis=-1, keepdims=True)          # exact denominator
        ctx = jnp.einsum('hqk,hkd->hqd', p.astype(MXU_DTYPE), Vh.astype(MXU_DTYPE),
                         preferred_element_type=f32)        # [h, Sq, dh]

        # Output projection batched per head, then summed over the head axis
        # (leading-axis VPU adds -> no lane-axis concatenate ever materializes).
        contrib = jnp.einsum('hqd,hdn->hqn', ctx.astype(MXU_DTYPE), wo_ref[li],
                             preferred_element_type=f32)    # [h, Sq, H]
        vecs = vec_ref[li]                                  # [8, H] packed vectors
        attn = jnp.sum(contrib, axis=0) + vecs[VEC_BO:VEC_BO + 1]

        x1 = layer_norm(q_in + attn, vecs[VEC_G1:VEC_G1 + 1], vecs[VEC_BE1:VEC_BE1 + 1])
        f = jnp.maximum(mm2(x1, w1_ref[li]) + bf1_ref[li], 0.0)
        f = mm2(f, w2_ref[li]) + vecs[VEC_BF2:VEC_BF2 + 1]
        return layer_norm(x1 + f, vecs[VEC_G2:VEC_G2 + 1], vecs[VEC_BE2:VEC_BE2 + 1])

    # Evidence self-attention stack (q == k == v == evidences).
    for i in range(num_layers):
        ev = transformer_block(i, ev, ev, True)

    # Claim attends over evidences (query length 1); layer index num_layers = clm_evi.
    agg = transformer_block(num_layers, claims, ev, False)          # [1, H]

    # Head: q = MLP(concat([fc(claims), agg], -1)); the concat is replaced by a
    # split-weight sum (hws = [fcw, W1[:H], W1[H:]]), so no lane-axis concatenate.
    hv = hvec_ref[...]
    cf = mm2(claims, hws_ref[0]) + hv[HVEC_FCB:HVEC_FCB + 1]         # fc(claims)
    hmid = jnp.maximum(mm2(cf, hws_ref[1]) + mm2(agg, hws_ref[2])
                       + hv[HVEC_B1:HVEC_B1 + 1], 0.0)
    qv = mm2(hmid, hw2_ref[...]) + hb2_ref[...]                      # [1, num_labels]
    # num_labels=3 output store is masked but negligible at this width.
    out_ref[...] = qv[None].astype(out_ref.dtype)


# ----------------------------- wrapper -----------------------------------------


def qnetwork_forward(claims, evidences, evidences_mask, params, *, nheads, num_layers,
                     num_labels=3):
    B, S, H = evidences.shape
    dh = H // nheads
    scale = 1.0 / math.sqrt(dh)
    f32 = jnp.float32

    layers = list(params['evi']) + [params['clm_evi']]
    L1 = num_layers + 1
    FF = layers[0]['w1'].shape[-1]

    def hm_w(w):    # [H, H] -> head-major [nheads, H, dh]
        return jnp.transpose(w.reshape(H, nheads, dh), (1, 0, 2))

    def hm_b(b):    # [1, H] -> head-major [nheads, 1, dh]
        return b.reshape(nheads, 1, dh)

    # Fused QKV weights/biases (attention scale folded into the Q part).
    wqkv = jnp.stack([jnp.concatenate(
        [hm_w(lp['wq']) * scale, hm_w(lp['wk']), hm_w(lp['wv'])], axis=-1)
        for lp in layers]).astype(MXU_DTYPE)                     # [L1, nh, H, 3*dh]
    bqkv = jnp.stack([jnp.concatenate(
        [hm_b(lp['bq']) * scale, hm_b(lp['bk']), hm_b(lp['bv'])], axis=-1)
        for lp in layers]).astype(f32)                           # [L1, nh, 1, 3*dh]
    wo = jnp.stack([lp['wo'].reshape(nheads, dh, H)
                    for lp in layers]).astype(MXU_DTYPE)         # [L1, nh, dh, H]
    w1 = jnp.stack([lp['w1'] for lp in layers]).astype(MXU_DTYPE)    # [L1, H, FF]
    w2 = jnp.stack([lp['w2'] for lp in layers]).astype(MXU_DTYPE)    # [L1, FF, H]
    bf1 = jnp.stack([lp['bf1'] for lp in layers]).astype(f32)        # [L1, 1, FF]

    # Pack the six per-layer [1, H] vectors into one [L1, 8, H] operand.
    pad2 = jnp.zeros((2, H), f32)
    vecs = jnp.stack([jnp.concatenate(
        [lp['bo'], lp['g1'], lp['be1'], lp['bf2'], lp['g2'], lp['be2'], pad2], axis=0)
        for lp in layers]).astype(f32)                           # [L1, 8, H]

    head = params['head']
    # fc weight + MLP first layer split at the concat boundary -> one [3, H, H] stack.
    hws = jnp.stack([head['fcw'], head['w1'][:H, :], head['w1'][H:, :]]
                    ).astype(MXU_DTYPE)                          # [3, H, H]
    hvec = jnp.concatenate([head['fcb'], head['b1'], jnp.zeros((6, H), f32)],
                           axis=0).astype(f32)                   # [8, H]
    hw2 = head['w2'].astype(MXU_DTYPE)                           # [H, num_labels]
    hb2 = head['b2'].astype(f32)                                 # [1, num_labels]

    claims3 = claims[:, None, :]            # [B, 1, H]
    mask3 = evidences_mask[:, None, :]      # [B, 1, S]

    operands = [claims3, evidences, mask3, wqkv, bqkv, wo, w1, w2, bf1, vecs,
                hws, hvec, hw2, hb2]

    def const_spec(arr):
        n = arr.ndim
        return pl.BlockSpec(arr.shape, lambda b, n=n: (0,) * n)

    in_specs = [
        pl.BlockSpec((1, 1, H), lambda b: (b, 0, 0)),            # claims
        pl.BlockSpec((1, S, H), lambda b: (b, 0, 0)),            # evidences
        pl.BlockSpec((1, 1, S), lambda b: (b, 0, 0)),            # mask
    ] + [const_spec(a) for a in operands[3:]]                    # resident weights
    out_spec = pl.BlockSpec((1, 1, num_labels), lambda b: (b, 0, 0))

    # grid over the batch: uses both TensorCores on v7x; weights keep constant block
    # indices so they are not re-DMA'd between grid steps.  ~130 KB of bf16 weights
    # -> far under every generation's VMEM limit, so no vmem_limit override needed.
    out = pl.pallas_call(
        functools.partial(qnetwork_kernel, nheads=nheads, num_layers=num_layers),
        out_shape=jax.ShapeDtypeStruct((B, 1, num_labels), jnp.float32),
        grid=(B,),
        in_specs=in_specs,
        out_specs=out_spec,
        compiler_params=pltpu.CompilerParams(dimension_semantics=("parallel",)),
    )(*operands)
    return (out[:, 0, :],)


# ----------------------------- parameter init ----------------------------------


def _init_transformer_params(key, H, FF):
    ks = jax.random.split(key, 8)
    s = 0.02
    return {
        'wq': jax.random.normal(ks[0], (H, H), jnp.float32) * s,
        'bq': jnp.zeros((1, H), jnp.float32),
        'wk': jax.random.normal(ks[1], (H, H), jnp.float32) * s,
        'bk': jnp.zeros((1, H), jnp.float32),
        'wv': jax.random.normal(ks[2], (H, H), jnp.float32) * s,
        'bv': jnp.zeros((1, H), jnp.float32),
        'wo': jax.random.normal(ks[3], (H, H), jnp.float32) * s,
        'bo': jnp.zeros((1, H), jnp.float32),
        'g1': jnp.ones((1, H), jnp.float32),
        'be1': jnp.zeros((1, H), jnp.float32),
        'w1': jax.random.normal(ks[4], (H, FF), jnp.float32) * s,
        'bf1': jnp.zeros((1, FF), jnp.float32),
        'w2': jax.random.normal(ks[5], (FF, H), jnp.float32) * s,
        'bf2': jnp.zeros((1, H), jnp.float32),
        'g2': jnp.ones((1, H), jnp.float32),
        'be2': jnp.zeros((1, H), jnp.float32),
    }


def _init_head_params(key, H, num_labels):
    ks = jax.random.split(key, 3)
    s = 0.02
    return {
        'fcw': jax.random.normal(ks[0], (H, H), jnp.float32) * s,
        'fcb': jnp.zeros((1, H), jnp.float32),
        'w1': jax.random.normal(ks[1], (2 * H, H), jnp.float32) * s,  # split in wrapper
        'b1': jnp.zeros((1, H), jnp.float32),
        'w2': jax.random.normal(ks[2], (H, num_labels), jnp.float32) * s,
        'b2': jnp.zeros((1, num_labels), jnp.float32),
    }


def init_qnetwork_params(key, H, nheads, num_layers, num_labels=3):
    FF = 4 * H
    keys = jax.random.split(key, num_layers + 2)
    return {
        'evi': [_init_transformer_params(keys[i], H, FF) for i in range(num_layers)],
        'clm_evi': _init_transformer_params(keys[num_layers], H, FF),
        'head': _init_head_params(keys[num_layers + 1], H, num_labels),
    }


# ----------------------------- main ---------------------------------------------


if __name__ == "__main__":
    B, S, H = 2, 8, 32
    NHEADS, NUM_LAYERS, NUM_LABELS = 8, 3, 3

    root = jax.random.PRNGKey(0)
    k_claims, k_evi, k_params = jax.random.split(root, 3)

    claims = jax.random.normal(k_claims, (B, H), jnp.float32)
    evidences = jax.random.normal(k_evi, (B, S, H), jnp.float32)
    lengths = jnp.array([S, 5], dtype=jnp.int32)
    evidences_mask = (jnp.arange(S)[None, :] < lengths[:, None]).astype(jnp.float32)

    params = init_qnetwork_params(k_params, H, NHEADS, NUM_LAYERS, NUM_LABELS)

    (q_value,) = qnetwork_forward(claims, evidences, evidences_mask, params,
                                  nheads=NHEADS, num_layers=NUM_LAYERS,
                                  num_labels=NUM_LABELS)
    q_value = jax.block_until_ready(q_value)
    assert q_value.shape == (B, NUM_LABELS), q_value.shape
    assert bool(jnp.all(jnp.isfinite(q_value)))
    print("KERNEL_OK")
</pallas_src>

<mosaic_0001>
module attributes {stable_mosaic.version = 11 : i64} {
  func.func @qnetwork_kernel(%arg0: i32, %arg1: memref<1x1x32xf32, #tpu.memory_space<vmem>>, %arg2: memref<1x8x32xf32, #tpu.memory_space<vmem>>, %arg3: memref<1x1x8xf32, #tpu.memory_space<vmem>>, %arg4: memref<4x8x32x12xbf16, #tpu.memory_space<vmem>>, %arg5: memref<4x8x1x12xf32, #tpu.memory_space<vmem>>, %arg6: memref<4x8x4x32xbf16, #tpu.memory_space<vmem>>, %arg7: memref<4x32x128xbf16, #tpu.memory_space<vmem>>, %arg8: memref<4x128x32xbf16, #tpu.memory_space<vmem>>, %arg9: memref<4x1x128xf32, #tpu.memory_space<vmem>>, %arg10: memref<4x8x32xf32, #tpu.memory_space<vmem>>, %arg11: memref<3x32x32xbf16, #tpu.memory_space<vmem>>, %arg12: memref<8x32xf32, #tpu.memory_space<vmem>>, %arg13: memref<32x3xbf16, #tpu.memory_space<vmem>>, %arg14: memref<1x3xf32, #tpu.memory_space<vmem>>, %arg15: memref<1x1x3xf32, #tpu.memory_space<vmem>>) attributes {dimension_semantics = [#tpu.dimension_semantics<parallel>], iteration_bounds = array<i64: 2>, scalar_prefetch = 0 : i64, scratch_operands = 0 : i64, tpu.core_type = #tpu.core_type<tc>, window_params = [{transform_indices = @transform_0, window_bounds = array<i64: 1, 1, 32>}, {transform_indices = @transform_1, window_bounds = array<i64: 1, 8, 32>}, {transform_indices = @transform_2, window_bounds = array<i64: 1, 1, 8>}, {pipeline_mode = #tpu.pipeline_mode<synchronous>, transform_indices = @transform_3, window_bounds = array<i64: 4, 8, 32, 12>}, {pipeline_mode = #tpu.pipeline_mode<synchronous>, transform_indices = @transform_4, window_bounds = array<i64: 4, 8, 1, 12>}, {pipeline_mode = #tpu.pipeline_mode<synchronous>, transform_indices = @transform_5, window_bounds = array<i64: 4, 8, 4, 32>}, {pipeline_mode = #tpu.pipeline_mode<synchronous>, transform_indices = @transform_6, window_bounds = array<i64: 4, 32, 128>}, {pipeline_mode = #tpu.pipeline_mode<synchronous>, transform_indices = @transform_7, window_bounds = array<i64: 4, 128, 32>}, {pipeline_mode = #tpu.pipeline_mode<synchronous>, transform_indices = @transform_8, window_bounds = array<i64: 4, 1, 128>}, {pipeline_mode = #tpu.pipeline_mode<synchronous>, transform_indices = @transform_9, window_bounds = array<i64: 4, 8, 32>}, {pipeline_mode = #tpu.pipeline_mode<synchronous>, transform_indices = @transform_10, window_bounds = array<i64: 3, 32, 32>}, {pipeline_mode = #tpu.pipeline_mode<synchronous>, transform_indices = @transform_11, window_bounds = array<i64: 8, 32>}, {pipeline_mode = #tpu.pipeline_mode<synchronous>, transform_indices = @transform_12, window_bounds = array<i64: 32, 3>}, {pipeline_mode = #tpu.pipeline_mode<synchronous>, transform_indices = @transform_13, window_bounds = array<i64: 1, 3>}, {transform_indices = @transform_14, window_bounds = array<i64: 1, 1, 3>}]} {
    %c0 = arith.constant 0 : index
    %c0_0 = arith.constant 0 : index
    %c0_1 = arith.constant 0 : index
    %0 = vector.load %arg2[%c0, %c0_0, %c0_1] : memref<1x8x32xf32, #tpu.memory_space<vmem>>, vector<1x8x32xf32>
    %1 = vector.shape_cast %0 : vector<1x8x32xf32> to vector<8x32xf32>
    %c0_2 = arith.constant 0 : index
    %c0_3 = arith.constant 0 : index
    %c0_4 = arith.constant 0 : index
    %2 = vector.load %arg1[%c0_2, %c0_3, %c0_4] : memref<1x1x32xf32, #tpu.memory_space<vmem>>, vector<1x1x32xf32>
    %3 = vector.shape_cast %2 : vector<1x1x32xf32> to vector<1x32xf32>
    %c0_5 = arith.constant 0 : index
    %c0_6 = arith.constant 0 : index
    %c0_7 = arith.constant 0 : index
    %4 = vector.load %arg3[%c0_5, %c0_6, %c0_7] : memref<1x1x8xf32, #tpu.memory_space<vmem>>, vector<1x1x8xf32>
    %5 = vector.shape_cast %4 : vector<1x1x8xf32> to vector<1x8xf32>
    %cst = arith.constant 1.000000e+00 : f32
    %6 = vector.broadcast %cst : f32 to vector<1x8xf32>
    %7 = arith.subf %6, %5 : vector<1x8xf32>
    %cst_8 = arith.constant -1.000000e+09 : f32
    %8 = vector.broadcast %cst_8 : f32 to vector<1x8xf32>
    %9 = arith.mulf %7, %8 : vector<1x8xf32>
    %10 = vector.shape_cast %9 : vector<1x8xf32> to vector<1x1x8xf32>
    %11 = arith.truncf %1 : vector<8x32xf32> to vector<8x32xbf16>
    %12 = vector.shape_cast %11 : vector<8x32xbf16> to vector<1x8x32xbf16>
    %13 = vector.shape_cast %12 : vector<1x8x32xbf16> to vector<1x8x32xbf16>
    %14 = vector.broadcast %13 : vector<1x8x32xbf16> to vector<8x8x32xbf16>
    %c0_9 = arith.constant 0 : index
    %c0_10 = arith.constant 0 : index
    %c0_11 = arith.constant 0 : index
    %c0_12 = arith.constant 0 : index
    %15 = vector.load %arg4[%c0_9, %c0_10, %c0_11, %c0_12] : memref<4x8x32x12xbf16, #tpu.memory_space<vmem>>, vector<1x8x32x12xbf16>
    %16 = vector.shape_cast %15 : vector<1x8x32x12xbf16> to vector<8x32x12xbf16>
    "tpu.trace_start"() <{level = 10 : i32, message = "hmk,hkd->hmd"}> : () -> ()
    %cst_13 = arith.constant dense<0.000000e+00> : vector<8x8x12xf32>
    %17 = tpu.matmul %14, %16, %cst_13 {dimension_numbers = #tpu.dot_dimension_numbers<[2], [1], [1], [2], [0, 0, 0, 1, 1, 2], [0], [0]>} : vector<8x8x32xbf16>, vector<8x32x12xbf16>, vector<8x8x12xf32> -> vector<8x8x12xf32>
    "tpu.trace_stop"() : () -> ()
    %c0_14 = arith.constant 0 : index
    %c0_15 = arith.constant 0 : index
    %c0_16 = arith.constant 0 : index
    %c0_17 = arith.constant 0 : index
    %18 = vector.load %arg5[%c0_14, %c0_15, %c0_16, %c0_17] : memref<4x8x1x12xf32, #tpu.memory_space<vmem>>, vector<1x8x1x12xf32>
    %19 = vector.shape_cast %18 : vector<1x8x1x12xf32> to vector<8x1x12xf32>
    %20 = vector.broadcast %19 : vector<8x1x12xf32> to vector<8x8x12xf32>
    %21 = arith.addf %17, %20 : vector<8x8x12xf32>
    %22 = vector.extract_strided_slice %21 {offsets = [0, 0, 0], sizes = [8, 8, 4], strides = [1, 1, 1]} : vector<8x8x12xf32> to vector<8x8x4xf32>
    %23 = vector.extract_strided_slice %21 {offsets = [0, 0, 4], sizes = [8, 8, 4], strides = [1, 1, 1]} : vector<8x8x12xf32> to vector<8x8x4xf32>
    %24 = vector.extract_strided_slice %21 {offsets = [0, 0, 8], sizes = [8, 8, 4], strides = [1, 1, 1]} : vector<8x8x12xf32> to vector<8x8x4xf32>
    %25 = arith.truncf %22 : vector<8x8x4xf32> to vector<8x8x4xbf16>
    %26 = arith.truncf %23 : vector<8x8x4xf32> to vector<8x8x4xbf16>
    "tpu.trace_start"() <{level = 10 : i32, message = "hqd,hkd->hqk"}> : () -> ()
    %cst_18 = arith.constant dense<0.000000e+00> : vector<8x8x8xf32>
    %27 = tpu.matmul %25, %26, %cst_18 {dimension_numbers = #tpu.dot_dimension_numbers<[2], [2], [1], [1], [0, 0, 0, 1, 1, 1], [0], [0]>} : vector<8x8x4xbf16>, vector<8x8x4xbf16>, vector<8x8x8xf32> -> vector<8x8x8xf32>
    "tpu.trace_stop"() : () -> ()
    %28 = vector.broadcast %10 : vector<1x1x8xf32> to vector<8x8x8xf32>
    %29 = arith.addf %27, %28 : vector<8x8x8xf32>
    %cst_19 = arith.constant dense<0xFF800000> : vector<8x8xf32>
    %30 = vector.multi_reduction <maximumf>, %29, %cst_19 [2] : vector<8x8x8xf32> to vector<8x8xf32>
    %31 = vector.shape_cast %30 : vector<8x8xf32> to vector<8x8x1xf32>
    %32 = vector.broadcast %31 : vector<8x8x1xf32> to vector<8x8x8xf32>
    %33 = arith.subf %29, %32 : vector<8x8x8xf32>
    %34 = math.exp %33 : vector<8x8x8xf32>
    %cst_20 = arith.constant dense<0.000000e+00> : vector<8x8xf32>
    %35 = vector.multi_reduction <add>, %34, %cst_20 [2] : vector<8x8x8xf32> to vector<8x8xf32>
    %36 = vector.shape_cast %35 : vector<8x8xf32> to vector<8x8x1xf32>
    %37 = vector.broadcast %36 : vector<8x8x1xf32> to vector<8x8x8xf32>
    %38 = arith.divf %34, %37 : vector<8x8x8xf32>
    %39 = arith.truncf %38 : vector<8x8x8xf32> to vector<8x8x8xbf16>
    %40 = arith.truncf %24 : vector<8x8x4xf32> to vector<8x8x4xbf16>
    "tpu.trace_start"() <{level = 10 : i32, message = "hqk,hkd->hqd"}> : () -> ()
    %cst_21 = arith.constant dense<0.000000e+00> : vector<8x8x4xf32>
    %41 = tpu.matmul %39, %40, %cst_21 {dimension_numbers = #tpu.dot_dimension_numbers<[2], [1], [1], [2], [0, 0, 0, 1, 1, 2], [0], [0]>} : vector<8x8x8xbf16>, vector<8x8x4xbf16>, vector<8x8x4xf32> -> vector<8x8x4xf32>
    "tpu.trace_stop"() : () -> ()
    %42 = arith.truncf %41 : vector<8x8x4xf32> to vector<8x8x4xbf16>
    %c0_22 = arith.constant 0 : index
    %c0_23 = arith.constant 0 : index
    %c0_24 = arith.constant 0 : index
    %c0_25 = arith.constant 0 : index
    %43 = vector.load %arg6[%c0_22, %c0_23, %c0_24, %c0_25] : memref<4x8x4x32xbf16, #tpu.memory_space<vmem>>, vector<1x8x4x32xbf16>
    %44 = vector.shape_cast %43 : vector<1x8x4x32xbf16> to vector<8x4x32xbf16>
    "tpu.trace_start"() <{level = 10 : i32, message = "hqd,hdn->hqn"}> : () -> ()
    %cst_26 = arith.constant dense<0.000000e+00> : vector<8x8x32xf32>
    %45 = tpu.matmul %42, %44, %cst_26 {dimension_numbers = #tpu.dot_dimension_numbers<[2], [1], [1], [2], [0, 0, 0, 1, 1, 2], [0], [0]>} : vector<8x8x4xbf16>, vector<8x4x32xbf16>, vector<8x8x32xf32> -> vector<8x8x32xf32>
    "tpu.trace_stop"() : () -> ()
    %c0_27 = arith.constant 0 : index
    %c0_28 = arith.constant 0 : index
    %c0_29 = arith.constant 0 : index
    %46 = vector.load %arg10[%c0_27, %c0_28, %c0_29] : memref<4x8x32xf32, #tpu.memory_space<vmem>>, vector<1x8x32xf32>
    %47 = vector.shape_cast %46 : vector<1x8x32xf32> to vector<8x32xf32>
    %cst_30 = arith.constant dense<0.000000e+00> : vector<8x32xf32>
    %48 = vector.multi_reduction <add>, %45, %cst_30 [0] : vector<8x8x32xf32> to vector<8x32xf32>
    %49 = vector.extract_strided_slice %47 {offsets = [0, 0], sizes = [1, 32], strides = [1, 1]} : vector<8x32xf32> to vector<1x32xf32>
    %50 = vector.broadcast %49 : vector<1x32xf32> to vector<8x32xf32>
    %51 = arith.addf %48, %50 : vector<8x32xf32>
    %52 = arith.addf %1, %51 : vector<8x32xf32>
    %53 = vector.extract_strided_slice %47 {offsets = [1, 0], sizes = [1, 32], strides = [1, 1]} : vector<8x32xf32> to vector<1x32xf32>
    %54 = vector.extract_strided_slice %47 {offsets = [2, 0], sizes = [1, 32], strides = [1, 1]} : vector<8x32xf32> to vector<1x32xf32>
    %cst_31 = arith.constant dense<0.000000e+00> : vector<8xf32>
    %55 = vector.multi_reduction <add>, %52, %cst_31 [1] : vector<8x32xf32> to vector<8xf32>
    %56 = vector.shape_cast %55 : vector<8xf32> to vector<8x1xf32>
    %cst_32 = arith.constant 3.200000e+01 : f32
    %57 = vector.broadcast %cst_32 : f32 to vector<8x1xf32>
    %58 = arith.divf %56, %57 : vector<8x1xf32>
    %59 = vector.broadcast %58 : vector<8x1xf32> to vector<8x32xf32>
    %60 = arith.subf %52, %59 : vector<8x32xf32>
    %61 = arith.mulf %60, %60 : vector<8x32xf32>
    %cst_33 = arith.constant dense<0.000000e+00> : vector<8xf32>
    %62 = vector.multi_reduction <add>, %61, %cst_33 [1] : vector<8x32xf32> to vector<8xf32>
    %63 = vector.shape_cast %62 : vector<8xf32> to vector<8x1xf32>
    %cst_34 = arith.constant 3.200000e+01 : f32
    %64 = vector.broadcast %cst_34 : f32 to vector<8x1xf32>
    %65 = arith.divf %63, %64 : vector<8x1xf32>
    %cst_35 = arith.constant 9.99999974E-6 : f32
    %66 = vector.broadcast %cst_35 : f32 to vector<8x1xf32>
    %67 = arith.addf %65, %66 : vector<8x1xf32>
    %68 = math.rsqrt %67 : vector<8x1xf32>
    %69 = vector.broadcast %68 : vector<8x1xf32> to vector<8x32xf32>
    %70 = arith.mulf %60, %69 : vector<8x32xf32>
    %71 = vector.broadcast %53 : vector<1x32xf32> to vector<8x32xf32>
    %72 = arith.mulf %70, %71 : vector<8x32xf32>
    %73 = vector.broadcast %54 : vector<1x32xf32> to vector<8x32xf32>
    %74 = arith.addf %72, %73 : vector<8x32xf32>
    %c0_36 = arith.constant 0 : index
    %c0_37 = arith.constant 0 : index
    %c0_38 = arith.constant 0 : index
    %75 = vector.load %arg7[%c0_36, %c0_37, %c0_38] : memref<4x32x128xbf16, #tpu.memory_space<vmem>>, vector<1x32x128xbf16>
    %76 = vector.shape_cast %75 : vector<1x32x128xbf16> to vector<32x128xbf16>
    %77 = arith.truncf %74 : vector<8x32xf32> to vector<8x32xbf16>
    %cst_39 = arith.constant dense<0.000000e+00> : vector<8x128xf32>
    %78 = tpu.matmul %77, %76, %cst_39 {dimension_numbers = #tpu.dot_dimension_numbers<[1], [0], [0], [1], [0, 0, 1, 1], [], []>} : vector<8x32xbf16>, vector<32x128xbf16>, vector<8x128xf32> -> vector<8x128xf32>
    %c0_40 = arith.constant 0 : index
    %c0_41 = arith.constant 0 : index
    %c0_42 = arith.constant 0 : index
    %79 = vector.load %arg9[%c0_40, %c0_41, %c0_42] : memref<4x1x128xf32, #tpu.memory_space<vmem>>, vector<1x1x128xf32>
    %80 = vector.shape_cast %79 : vector<1x1x128xf32> to vector<1x128xf32>
    %81 = vector.broadcast %80 : vector<1x128xf32> to vector<8x128xf32>
    %82 = arith.addf %78, %81 : vector<8x128xf32>
    %cst_43 = arith.constant 0.000000e+00 : f32
    %83 = vector.broadcast %cst_43 : f32 to vector<8x128xf32>
    %84 = arith.maximumf %82, %83 : vector<8x128xf32>
    %c0_44 = arith.constant 0 : index
    %c0_45 = arith.constant 0 : index
    %c0_46 = arith.constant 0 : index
    %85 = vector.load %arg8[%c0_44, %c0_45, %c0_46] : memref<4x128x32xbf16, #tpu.memory_space<vmem>>, vector<1x128x32xbf16>
    %86 = vector.shape_cast %85 : vector<1x128x32xbf16> to vector<128x32xbf16>
    %87 = arith.truncf %84 : vector<8x128xf32> to vector<8x128xbf16>
    %cst_47 = arith.constant dense<0.000000e+00> : vector<8x32xf32>
    %88 = tpu.matmul %87, %86, %cst_47 {dimension_numbers = #tpu.dot_dimension_numbers<[1], [0], [0], [1], [0, 0, 1, 1], [], []>} : vector<8x128xbf16>, vector<128x32xbf16>, vector<8x32xf32> -> vector<8x32xf32>
    %89 = vector.extract_strided_slice %47 {offsets = [3, 0], sizes = [1, 32], strides = [1, 1]} : vector<8x32xf32> to vector<1x32xf32>
    %90 = vector.broadcast %89 : vector<1x32xf32> to vector<8x32xf32>
    %91 = arith.addf %88, %90 : vector<8x32xf32>
    %92 = arith.addf %74, %91 : vector<8x32xf32>
    %93 = vector.extract_strided_slice %47 {offsets = [4, 0], sizes = [1, 32], strides = [1, 1]} : vector<8x32xf32> to vector<1x32xf32>
    %94 = vector.extract_strided_slice %47 {offsets = [5, 0], sizes = [1, 32], strides = [1, 1]} : vector<8x32xf32> to vector<1x32xf32>
    %cst_48 = arith.constant dense<0.000000e+00> : vector<8xf32>
    %95 = vector.multi_reduction <add>, %92, %cst_48 [1] : vector<8x32xf32> to vector<8xf32>
    %96 = vector.shape_cast %95 : vector<8xf32> to vector<8x1xf32>
    %cst_49 = arith.constant 3.200000e+01 : f32
    %97 = vector.broadcast %cst_49 : f32 to vector<8x1xf32>
    %98 = arith.divf %96, %97 : vector<8x1xf32>
    %99 = vector.broadcast %98 : vector<8x1xf32> to vector<8x32xf32>
    %100 = arith.subf %92, %99 : vector<8x32xf32>
    %101 = arith.mulf %100, %100 : vector<8x32xf32>
    %cst_50 = arith.constant dense<0.000000e+00> : vector<8xf32>
    %102 = vector.multi_reduction <add>, %101, %cst_50 [1] : vector<8x32xf32> to vector<8xf32>
    %103 = vector.shape_cast %102 : vector<8xf32> to vector<8x1xf32>
    %cst_51 = arith.constant 3.200000e+01 : f32
    %104 = vector.broadcast %cst_51 : f32 to vector<8x1xf32>
    %105 = arith.divf %103, %104 : vector<8x1xf32>
    %cst_52 = arith.constant 9.99999974E-6 : f32
    %106 = vector.broadcast %cst_52 : f32 to vector<8x1xf32>
    %107 = arith.addf %105, %106 : vector<8x1xf32>
    %108 = math.rsqrt %107 : vector<8x1xf32>
    %109 = vector.broadcast %108 : vector<8x1xf32> to vector<8x32xf32>
    %110 = arith.mulf %100, %109 : vector<8x32xf32>
    %111 = vector.broadcast %93 : vector<1x32xf32> to vector<8x32xf32>
    %112 = arith.mulf %110, %111 : vector<8x32xf32>
    %113 = vector.broadcast %94 : vector<1x32xf32> to vector<8x32xf32>
    %114 = arith.addf %112, %113 : vector<8x32xf32>
    %115 = arith.truncf %114 : vector<8x32xf32> to vector<8x32xbf16>
    %116 = vector.shape_cast %115 : vector<8x32xbf16> to vector<1x8x32xbf16>
    %117 = vector.shape_cast %116 : vector<1x8x32xbf16> to vector<1x8x32xbf16>
    %118 = vector.broadcast %117 : vector<1x8x32xbf16> to vector<8x8x32xbf16>
    %c1 = arith.constant 1 : index
    %c0_53 = arith.constant 0 : index
    %c0_54 = arith.constant 0 : index
    %c0_55 = arith.constant 0 : index
    %119 = vector.load %arg4[%c1, %c0_53, %c0_54, %c0_55] : memref<4x8x32x12xbf16, #tpu.memory_space<vmem>>, vector<1x8x32x12xbf16>
    %120 = vector.shape_cast %119 : vector<1x8x32x12xbf16> to vector<8x32x12xbf16>
    "tpu.trace_start"() <{level = 10 : i32, message = "hmk,hkd->hmd"}> : () -> ()
    %cst_56 = arith.constant dense<0.000000e+00> : vector<8x8x12xf32>
    %121 = tpu.matmul %118, %120, %cst_56 {dimension_numbers = #tpu.dot_dimension_numbers<[2], [1], [1], [2], [0, 0, 0, 1, 1, 2], [0], [0]>} : vector<8x8x32xbf16>, vector<8x32x12xbf16>, vector<8x8x12xf32> -> vector<8x8x12xf32>
    "tpu.trace_stop"() : () -> ()
    %c1_57 = arith.constant 1 : index
    %c0_58 = arith.constant 0 : index
    %c0_59 = arith.constant 0 : index
    %c0_60 = arith.constant 0 : index
    %122 = vector.load %arg5[%c1_57, %c0_58, %c0_59, %c0_60] : memref<4x8x1x12xf32, #tpu.memory_space<vmem>>, vector<1x8x1x12xf32>
    %123 = vector.shape_cast %122 : vector<1x8x1x12xf32> to vector<8x1x12xf32>
    %124 = vector.broadcast %123 : vector<8x1x12xf32> to vector<8x8x12xf32>
    %125 = arith.addf %121, %124 : vector<8x8x12xf32>
    %126 = vector.extract_strided_slice %125 {offsets = [0, 0, 0], sizes = [8, 8, 4], strides = [1, 1, 1]} : vector<8x8x12xf32> to vector<8x8x4xf32>
    %127 = vector.extract_strided_slice %125 {offsets = [0, 0, 4], sizes = [8, 8, 4], strides = [1, 1, 1]} : vector<8x8x12xf32> to vector<8x8x4xf32>
    %128 = vector.extract_strided_slice %125 {offsets = [0, 0, 8], sizes = [8, 8, 4], strides = [1, 1, 1]} : vector<8x8x12xf32> to vector<8x8x4xf32>
    %129 = arith.truncf %126 : vector<8x8x4xf32> to vector<8x8x4xbf16>
    %130 = arith.truncf %127 : vector<8x8x4xf32> to vector<8x8x4xbf16>
    "tpu.trace_start"() <{level = 10 : i32, message = "hqd,hkd->hqk"}> : () -> ()
    %cst_61 = arith.constant dense<0.000000e+00> : vector<8x8x8xf32>
    %131 = tpu.matmul %129, %130, %cst_61 {dimension_numbers = #tpu.dot_dimension_numbers<[2], [2], [1], [1], [0, 0, 0, 1, 1, 1], [0], [0]>} : vector<8x8x4xbf16>, vector<8x8x4xbf16>, vector<8x8x8xf32> -> vector<8x8x8xf32>
    "tpu.trace_stop"() : () -> ()
    %132 = vector.broadcast %10 : vector<1x1x8xf32> to vector<8x8x8xf32>
    %133 = arith.addf %131, %132 : vector<8x8x8xf32>
    %cst_62 = arith.constant dense<0xFF800000> : vector<8x8xf32>
    %134 = vector.multi_reduction <maximumf>, %133, %cst_62 [2] : vector<8x8x8xf32> to vector<8x8xf32>
    %135 = vector.shape_cast %134 : vector<8x8xf32> to vector<8x8x1xf32>
    %136 = vector.broadcast %135 : vector<8x8x1xf32> to vector<8x8x8xf32>
    %137 = arith.subf %133, %136 : vector<8x8x8xf32>
    %138 = math.exp %137 : vector<8x8x8xf32>
    %cst_63 = arith.constant dense<0.000000e+00> : vector<8x8xf32>
    %139 = vector.multi_reduction <add>, %138, %cst_63 [2] : vector<8x8x8xf32> to vector<8x8xf32>
    %140 = vector.shape_cast %139 : vector<8x8xf32> to vector<8x8x1xf32>
    %141 = vector.broadcast %140 : vector<8x8x1xf32> to vector<8x8x8xf32>
    %142 = arith.divf %138, %141 : vector<8x8x8xf32>
    %143 = arith.truncf %142 : vector<8x8x8xf32> to vector<8x8x8xbf16>
    %144 = arith.truncf %128 : vector<8x8x4xf32> to vector<8x8x4xbf16>
    "tpu.trace_start"() <{level = 10 : i32, message = "hqk,hkd->hqd"}> : () -> ()
    %cst_64 = arith.constant dense<0.000000e+00> : vector<8x8x4xf32>
    %145 = tpu.matmul %143, %144, %cst_64 {dimension_numbers = #tpu.dot_dimension_numbers<[2], [1], [1], [2], [0, 0, 0, 1, 1, 2], [0], [0]>} : vector<8x8x8xbf16>, vector<8x8x4xbf16>, vector<8x8x4xf32> -> vector<8x8x4xf32>
    "tpu.trace_stop"() : () -> ()
    %146 = arith.truncf %145 : vector<8x8x4xf32> to vector<8x8x4xbf16>
    %c1_65 = arith.constant 1 : index
    %c0_66 = arith.constant 0 : index
    %c0_67 = arith.constant 0 : index
    %c0_68 = arith.constant 0 : index
    %147 = vector.load %arg6[%c1_65, %c0_66, %c0_67, %c0_68] : memref<4x8x4x32xbf16, #tpu.memory_space<vmem>>, vector<1x8x4x32xbf16>
    %148 = vector.shape_cast %147 : vector<1x8x4x32xbf16> to vector<8x4x32xbf16>
    "tpu.trace_start"() <{level = 10 : i32, message = "hqd,hdn->hqn"}> : () -> ()
    %cst_69 = arith.constant dense<0.000000e+00> : vector<8x8x32xf32>
    %149 = tpu.matmul %146, %148, %cst_69 {dimension_numbers = #tpu.dot_dimension_numbers<[2], [1], [1], [2], [0, 0, 0, 1, 1, 2], [0], [0]>} : vector<8x8x4xbf16>, vector<8x4x32xbf16>, vector<8x8x32xf32> -> vector<8x8x32xf32>
    "tpu.trace_stop"() : () -> ()
    %c1_70 = arith.constant 1 : index
    %c0_71 = arith.constant 0 : index
    %c0_72 = arith.constant 0 : index
    %150 = vector.load %arg10[%c1_70, %c0_71, %c0_72] : memref<4x8x32xf32, #tpu.memory_space<vmem>>, vector<1x8x32xf32>
    %151 = vector.shape_cast %150 : vector<1x8x32xf32> to vector<8x32xf32>
    %cst_73 = arith.constant dense<0.000000e+00> : vector<8x32xf32>
    %152 = vector.multi_reduction <add>, %149, %cst_73 [0] : vector<8x8x32xf32> to vector<8x32xf32>
    %153 = vector.extract_strided_slice %151 {offsets = [0, 0], sizes = [1, 32], strides = [1, 1]} : vector<8x32xf32> to vector<1x32xf32>
    %154 = vector.broadcast %153 : vector<1x32xf32> to vector<8x32xf32>
    %155 = arith.addf %152, %154 : vector<8x32xf32>
    %156 = arith.addf %114, %155 : vector<8x32xf32>
    %157 = vector.extract_strided_slice %151 {offsets = [1, 0], sizes = [1, 32], strides = [1, 1]} : vector<8x32xf32> to vector<1x32xf32>
    %158 = vector.extract_strided_slice %151 {offsets = [2, 0], sizes = [1, 32], strides = [1, 1]} : vector<8x32xf32> to vector<1x32xf32>
    %cst_74 = arith.constant dense<0.000000e+00> : vector<8xf32>
    %159 = vector.multi_reduction <add>, %156, %cst_74 [1] : vector<8x32xf32> to vector<8xf32>
    %160 = vector.shape_cast %159 : vector<8xf32> to vector<8x1xf32>
    %cst_75 = arith.constant 3.200000e+01 : f32
    %161 = vector.broadcast %cst_75 : f32 to vector<8x1xf32>
    %162 = arith.divf %160, %161 : vector<8x1xf32>
    %163 = vector.broadcast %162 : vector<8x1xf32> to vector<8x32xf32>
    %164 = arith.subf %156, %163 : vector<8x32xf32>
    %165 = arith.mulf %164, %164 : vector<8x32xf32>
    %cst_76 = arith.constant dense<0.000000e+00> : vector<8xf32>
    %166 = vector.multi_reduction <add>, %165, %cst_76 [1] : vector<8x32xf32> to vector<8xf32>
    %167 = vector.shape_cast %166 : vector<8xf32> to vector<8x1xf32>
    %cst_77 = arith.constant 3.200000e+01 : f32
    %168 = vector.broadcast %cst_77 : f32 to vector<8x1xf32>
    %169 = arith.divf %167, %168 : vector<8x1xf32>
    %cst_78 = arith.constant 9.99999974E-6 : f32
    %170 = vector.broadcast %cst_78 : f32 to vector<8x1xf32>
    %171 = arith.addf %169, %170 : vector<8x1xf32>
    %172 = math.rsqrt %171 : vector<8x1xf32>
    %173 = vector.broadcast %172 : vector<8x1xf32> to vector<8x32xf32>
    %174 = arith.mulf %164, %173 : vector<8x32xf32>
    %175 = vector.broadcast %157 : vector<1x32xf32> to vector<8x32xf32>
    %176 = arith.mulf %174, %175 : vector<8x32xf32>
    %177 = vector.broadcast %158 : vector<1x32xf32> to vector<8x32xf32>
    %178 = arith.addf %176, %177 : vector<8x32xf32>
    %c1_79 = arith.constant 1 : index
    %c0_80 = arith.constant 0 : index
    %c0_81 = arith.constant 0 : index
    %179 = vector.load %arg7[%c1_79, %c0_80, %c0_81] : memref<4x32x128xbf16, #tpu.memory_space<vmem>>, vector<1x32x128xbf16>
    %180 = vector.shape_cast %179 : vector<1x32x128xbf16> to vector<32x128xbf16>
    %181 = arith.truncf %178 : vector<8x32xf32> to vector<8x32xbf16>
    %cst_82 = arith.constant dense<0.000000e+00> : vector<8x128xf32>
    %182 = tpu.matmul %181, %180, %cst_82 {dimension_numbers = #tpu.dot_dimension_numbers<[1], [0], [0], [1], [0, 0, 1, 1], [], []>} : vector<8x32xbf16>, vector<32x128xbf16>, vector<8x128xf32> -> vector<8x128xf32>
    %c1_83 = arith.constant 1 : index
    %c0_84 = arith.constant 0 : index
    %c0_85 = arith.constant 0 : index
    %183 = vector.load %arg9[%c1_83, %c0_84, %c0_85] : memref<4x1x128xf32, #tpu.memory_space<vmem>>, vector<1x1x128xf32>
    %184 = vector.shape_cast %183 : vector<1x1x128xf32> to vector<1x128xf32>
    %185 = vector.broadcast %184 : vector<1x128xf32> to vector<8x128xf32>
    %186 = arith.addf %182, %185 : vector<8x128xf32>
    %cst_86 = arith.constant 0.000000e+00 : f32
    %187 = vector.broadcast %cst_86 : f32 to vector<8x128xf32>
    %188 = arith.maximumf %186, %187 : vector<8x128xf32>
    %c1_87 = arith.constant 1 : index
    %c0_88 = arith.constant 0 : index
    %c0_89 = arith.constant 0 : index
    %189 = vector.load %arg8[%c1_87, %c0_88, %c0_89] : memref<4x128x32xbf16, #tpu.memory_space<vmem>>, vector<1x128x32xbf16>
    %190 = vector.shape_cast %189 : vector<1x128x32xbf16> to vector<128x32xbf16>
    %191 = arith.truncf %188 : vector<8x128xf32> to vector<8x128xbf16>
    %cst_90 = arith.constant dense<0.000000e+00> : vector<8x32xf32>
    %192 = tpu.matmul %191, %190, %cst_90 {dimension_numbers = #tpu.dot_dimension_numbers<[1], [0], [0], [1], [0, 0, 1, 1], [], []>} : vector<8x128xbf16>, vector<128x32xbf16>, vector<8x32xf32> -> vector<8x32xf32>
    %193 = vector.extract_strided_slice %151 {offsets = [3, 0], sizes = [1, 32], strides = [1, 1]} : vector<8x32xf32> to vector<1x32xf32>
    %194 = vector.broadcast %193 : vector<1x32xf32> to vector<8x32xf32>
    %195 = arith.addf %192, %194 : vector<8x32xf32>
    %196 = arith.addf %178, %195 : vector<8x32xf32>
    %197 = vector.extract_strided_slice %151 {offsets = [4, 0], sizes = [1, 32], strides = [1, 1]} : vector<8x32xf32> to vector<1x32xf32>
    %198 = vector.extract_strided_slice %151 {offsets = [5, 0], sizes = [1, 32], strides = [1, 1]} : vector<8x32xf32> to vector<1x32xf32>
    %cst_91 = arith.constant dense<0.000000e+00> : vector<8xf32>
    %199 = vector.multi_reduction <add>, %196, %cst_91 [1] : vector<8x32xf32> to vector<8xf32>
    %200 = vector.shape_cast %199 : vector<8xf32> to vector<8x1xf32>
    %cst_92 = arith.constant 3.200000e+01 : f32
    %201 = vector.broadcast %cst_92 : f32 to vector<8x1xf32>
    %202 = arith.divf %200, %201 : vector<8x1xf32>
    %203 = vector.broadcast %202 : vector<8x1xf32> to vector<8x32xf32>
    %204 = arith.subf %196, %203 : vector<8x32xf32>
    %205 = arith.mulf %204, %204 : vector<8x32xf32>
    %cst_93 = arith.constant dense<0.000000e+00> : vector<8xf32>
    %206 = vector.multi_reduction <add>, %205, %cst_93 [1] : vector<8x32xf32> to vector<8xf32>
    %207 = vector.shape_cast %206 : vector<8xf32> to vector<8x1xf32>
    %cst_94 = arith.constant 3.200000e+01 : f32
    %208 = vector.broadcast %cst_94 : f32 to vector<8x1xf32>
    %209 = arith.divf %207, %208 : vector<8x1xf32>
    %cst_95 = arith.constant 9.99999974E-6 : f32
    %210 = vector.broadcast %cst_95 : f32 to vector<8x1xf32>
    %211 = arith.addf %209, %210 : vector<8x1xf32>
    %212 = math.rsqrt %211 : vector<8x1xf32>
    %213 = vector.broadcast %212 : vector<8x1xf32> to vector<8x32xf32>
    %214 = arith.mulf %204, %213 : vector<8x32xf32>
    %215 = vector.broadcast %197 : vector<1x32xf32> to vector<8x32xf32>
    %216 = arith.mulf %214, %215 : vector<8x32xf32>
    %217 = vector.broadcast %198 : vector<1x32xf32> to vector<8x32xf32>
    %218 = arith.addf %216, %217 : vector<8x32xf32>
    %219 = arith.truncf %218 : vector<8x32xf32> to vector<8x32xbf16>
    %220 = vector.shape_cast %219 : vector<8x32xbf16> to vector<1x8x32xbf16>
    %221 = vector.shape_cast %220 : vector<1x8x32xbf16> to vector<1x8x32xbf16>
    %222 = vector.broadcast %221 : vector<1x8x32xbf16> to vector<8x8x32xbf16>
    %c2 = arith.constant 2 : index
    %c0_96 = arith.constant 0 : index
    %c0_97 = arith.constant 0 : index
    %c0_98 = arith.constant 0 : index
    %223 = vector.load %arg4[%c2, %c0_96, %c0_97, %c0_98] : memref<4x8x32x12xbf16, #tpu.memory_space<vmem>>, vector<1x8x32x12xbf16>
    %224 = vector.shape_cast %223 : vector<1x8x32x12xbf16> to vector<8x32x12xbf16>
    "tpu.trace_start"() <{level = 10 : i32, message = "hmk,hkd->hmd"}> : () -> ()
    %cst_99 = arith.constant dense<0.000000e+00> : vector<8x8x12xf32>
    %225 = tpu.matmul %222, %224, %cst_99 {dimension_numbers = #tpu.dot_dimension_numbers<[2], [1], [1], [2], [0, 0, 0, 1, 1, 2], [0], [0]>} : vector<8x8x32xbf16>, vector<8x32x12xbf16>, vector<8x8x12xf32> -> vector<8x8x12xf32>
    "tpu.trace_stop"() : () -> ()
    %c2_100 = arith.constant 2 : index
    %c0_101 = arith.constant 0 : index
    %c0_102 = arith.constant 0 : index
    %c0_103 = arith.constant 0 : index
    %226 = vector.load %arg5[%c2_100, %c0_101, %c0_102, %c0_103] : memref<4x8x1x12xf32, #tpu.memory_space<vmem>>, vector<1x8x1x12xf32>
    %227 = vector.shape_cast %226 : vector<1x8x1x12xf32> to vector<8x1x12xf32>
    %228 = vector.broadcast %227 : vector<8x1x12xf32> to vector<8x8x12xf32>
    %229 = arith.addf %225, %228 : vector<8x8x12xf32>
    %230 = vector.extract_strided_slice %229 {offsets = [0, 0, 0], sizes = [8, 8, 4], strides = [1, 1, 1]} : vector<8x8x12xf32> to vector<8x8x4xf32>
    %231 = vector.extract_strided_slice %229 {offsets = [0, 0, 4], sizes = [8, 8, 4], strides = [1, 1, 1]} : vector<8x8x12xf32> to vector<8x8x4xf32>
    %232 = vector.extract_strided_slice %229 {offsets = [0, 0, 8], sizes = [8, 8, 4], strides = [1, 1, 1]} : vector<8x8x12xf32> to vector<8x8x4xf32>
    %233 = arith.truncf %230 : vector<8x8x4xf32> to vector<8x8x4xbf16>
    %234 = arith.truncf %231 : vector<8x8x4xf32> to vector<8x8x4xbf16>
    "tpu.trace_start"() <{level = 10 : i32, message = "hqd,hkd->hqk"}> : () -> ()
    %cst_104 = arith.constant dense<0.000000e+00> : vector<8x8x8xf32>
    %235 = tpu.matmul %233, %234, %cst_104 {dimension_numbers = #tpu.dot_dimension_numbers<[2], [2], [1], [1], [0, 0, 0, 1, 1, 1], [0], [0]>} : vector<8x8x4xbf16>, vector<8x8x4xbf16>, vector<8x8x8xf32> -> vector<8x8x8xf32>
    "tpu.trace_stop"() : () -> ()
    %236 = vector.broadcast %10 : vector<1x1x8xf32> to vector<8x8x8xf32>
    %237 = arith.addf %235, %236 : vector<8x8x8xf32>
    %cst_105 = arith.constant dense<0xFF800000> : vector<8x8xf32>
    %238 = vector.multi_reduction <maximumf>, %237, %cst_105 [2] : vector<8x8x8xf32> to vector<8x8xf32>
    %239 = vector.shape_cast %238 : vector<8x8xf32> to vector<8x8x1xf32>
    %240 = vector.broadcast %239 : vector<8x8x1xf32> to vector<8x8x8xf32>
    %241 = arith.subf %237, %240 : vector<8x8x8xf32>
    %242 = math.exp %241 : vector<8x8x8xf32>
    %cst_106 = arith.constant dense<0.000000e+00> : vector<8x8xf32>
    %243 = vector.multi_reduction <add>, %242, %cst_106 [2] : vector<8x8x8xf32> to vector<8x8xf32>
    %244 = vector.shape_cast %243 : vector<8x8xf32> to vector<8x8x1xf32>
    %245 = vector.broadcast %244 : vector<8x8x1xf32> to vector<8x8x8xf32>
    %246 = arith.divf %242, %245 : vector<8x8x8xf32>
    %247 = arith.truncf %246 : vector<8x8x8xf32> to vector<8x8x8xbf16>
    %248 = arith.truncf %232 : vector<8x8x4xf32> to vector<8x8x4xbf16>
    "tpu.trace_start"() <{level = 10 : i32, message = "hqk,hkd->hqd"}> : () -> ()
    %cst_107 = arith.constant dense<0.000000e+00> : vector<8x8x4xf32>
    %249 = tpu.matmul %247, %248, %cst_107 {dimension_numbers = #tpu.dot_dimension_numbers<[2], [1], [1], [2], [0, 0, 0, 1, 1, 2], [0], [0]>} : vector<8x8x8xbf16>, vector<8x8x4xbf16>, vector<8x8x4xf32> -> vector<8x8x4xf32>
    "tpu.trace_stop"() : () -> ()
    %250 = arith.truncf %249 : vector<8x8x4xf32> to vector<8x8x4xbf16>
    %c2_108 = arith.constant 2 : index
    %c0_109 = arith.constant 0 : index
    %c0_110 = arith.constant 0 : index
    %c0_111 = arith.constant 0 : index
    %251 = vector.load %arg6[%c2_108, %c0_109, %c0_110, %c0_111] : memref<4x8x4x32xbf16, #tpu.memory_space<vmem>>, vector<1x8x4x32xbf16>
    %252 = vector.shape_cast %251 : vector<1x8x4x32xbf16> to vector<8x4x32xbf16>
    "tpu.trace_start"() <{level = 10 : i32, message = "hqd,hdn->hqn"}> : () -> ()
    %cst_112 = arith.constant dense<0.000000e+00> : vector<8x8x32xf32>
    %253 = tpu.matmul %250, %252, %cst_112 {dimension_numbers = #tpu.dot_dimension_numbers<[2], [1], [1], [2], [0, 0, 0, 1, 1, 2], [0], [0]>} : vector<8x8x4xbf16>, vector<8x4x32xbf16>, vector<8x8x32xf32> -> vector<8x8x32xf32>
    "tpu.trace_stop"() : () -> ()
    %c2_113 = arith.constant 2 : index
    %c0_114 = arith.constant 0 : index
    %c0_115 = arith.constant 0 : index
    %254 = vector.load %arg10[%c2_113, %c0_114, %c0_115] : memref<4x8x32xf32, #tpu.memory_space<vmem>>, vector<1x8x32xf32>
    %255 = vector.shape_cast %254 : vector<1x8x32xf32> to vector<8x32xf32>
    %cst_116 = arith.constant dense<0.000000e+00> : vector<8x32xf32>
    %256 = vector.multi_reduction <add>, %253, %cst_116 [0] : vector<8x8x32xf32> to vector<8x32xf32>
    %257 = vector.extract_strided_slice %255 {offsets = [0, 0], sizes = [1, 32], strides = [1, 1]} : vector<8x32xf32> to vector<1x32xf32>
    %258 = vector.broadcast %257 : vector<1x32xf32> to vector<8x32xf32>
    %259 = arith.addf %256, %258 : vector<8x32xf32>
    %260 = arith.addf %218, %259 : vector<8x32xf32>
    %261 = vector.extract_strided_slice %255 {offsets = [1, 0], sizes = [1, 32], strides = [1, 1]} : vector<8x32xf32> to vector<1x32xf32>
    %262 = vector.extract_strided_slice %255 {offsets = [2, 0], sizes = [1, 32], strides = [1, 1]} : vector<8x32xf32> to vector<1x32xf32>
    %cst_117 = arith.constant dense<0.000000e+00> : vector<8xf32>
    %263 = vector.multi_reduction <add>, %260, %cst_117 [1] : vector<8x32xf32> to vector<8xf32>
    %264 = vector.shape_cast %263 : vector<8xf32> to vector<8x1xf32>
    %cst_118 = arith.constant 3.200000e+01 : f32
    %265 = vector.broadcast %cst_118 : f32 to vector<8x1xf32>
    %266 = arith.divf %264, %265 : vector<8x1xf32>
    %267 = vector.broadcast %266 : vector<8x1xf32> to vector<8x32xf32>
    %268 = arith.subf %260, %267 : vector<8x32xf32>
    %269 = arith.mulf %268, %268 : vector<8x32xf32>
    %cst_119 = arith.constant dense<0.000000e+00> : vector<8xf32>
    %270 = vector.multi_reduction <add>, %269, %cst_119 [1] : vector<8x32xf32> to vector<8xf32>
    %271 = vector.shape_cast %270 : vector<8xf32> to vector<8x1xf32>
    %cst_120 = arith.constant 3.200000e+01 : f32
    %272 = vector.broadcast %cst_120 : f32 to vector<8x1xf32>
    %273 = arith.divf %271, %272 : vector<8x1xf32>
    %cst_121 = arith.constant 9.99999974E-6 : f32
    %274 = vector.broadcast %cst_121 : f32 to vector<8x1xf32>
    %275 = arith.addf %273, %274 : vector<8x1xf32>
    %276 = math.rsqrt %275 : vector<8x1xf32>
    %277 = vector.broadcast %276 : vector<8x1xf32> to vector<8x32xf32>
    %278 = arith.mulf %268, %277 : vector<8x32xf32>
    %279 = vector.broadcast %261 : vector<1x32xf32> to vector<8x32xf32>
    %280 = arith.mulf %278, %279 : vector<8x32xf32>
    %281 = vector.broadcast %262 : vector<1x32xf32> to vector<8x32xf32>
    %282 = arith.addf %280, %281 : vector<8x32xf32>
    %c2_122 = arith.constant 2 : index
    %c0_123 = arith.constant 0 : index
    %c0_124 = arith.constant 0 : index
    %283 = vector.load %arg7[%c2_122, %c0_123, %c0_124] : memref<4x32x128xbf16, #tpu.memory_space<vmem>>, vector<1x32x128xbf16>
    %284 = vector.shape_cast %283 : vector<1x32x128xbf16> to vector<32x128xbf16>
    %285 = arith.truncf %282 : vector<8x32xf32> to vector<8x32xbf16>
    %cst_125 = arith.constant dense<0.000000e+00> : vector<8x128xf32>
    %286 = tpu.matmul %285, %284, %cst_125 {dimension_numbers = #tpu.dot_dimension_numbers<[1], [0], [0], [1], [0, 0, 1, 1], [], []>} : vector<8x32xbf16>, vector<32x128xbf16>, vector<8x128xf32> -> vector<8x128xf32>
    %c2_126 = arith.constant 2 : index
    %c0_127 = arith.constant 0 : index
    %c0_128 = arith.constant 0 : index
    %287 = vector.load %arg9[%c2_126, %c0_127, %c0_128] : memref<4x1x128xf32, #tpu.memory_space<vmem>>, vector<1x1x128xf32>
    %288 = vector.shape_cast %287 : vector<1x1x128xf32> to vector<1x128xf32>
    %289 = vector.broadcast %288 : vector<1x128xf32> to vector<8x128xf32>
    %290 = arith.addf %286, %289 : vector<8x128xf32>
    %cst_129 = arith.constant 0.000000e+00 : f32
    %291 = vector.broadcast %cst_129 : f32 to vector<8x128xf32>
    %292 = arith.maximumf %290, %291 : vector<8x128xf32>
    %c2_130 = arith.constant 2 : index
    %c0_131 = arith.constant 0 : index
    %c0_132 = arith.constant 0 : index
    %293 = vector.load %arg8[%c2_130, %c0_131, %c0_132] : memref<4x128x32xbf16, #tpu.memory_space<vmem>>, vector<1x128x32xbf16>
    %294 = vector.shape_cast %293 : vector<1x128x32xbf16> to vector<128x32xbf16>
    %295 = arith.truncf %292 : vector<8x128xf32> to vector<8x128xbf16>
    %cst_133 = arith.constant dense<0.000000e+00> : vector<8x32xf32>
    %296 = tpu.matmul %295, %294, %cst_133 {dimension_numbers = #tpu.dot_dimension_numbers<[1], [0], [0], [1], [0, 0, 1, 1], [], []>} : vector<8x128xbf16>, vector<128x32xbf16>, vector<8x32xf32> -> vector<8x32xf32>
    %297 = vector.extract_strided_slice %255 {offsets = [3, 0], sizes = [1, 32], strides = [1, 1]} : vector<8x32xf32> to vector<1x32xf32>
    %298 = vector.broadcast %297 : vector<1x32xf32> to vector<8x32xf32>
    %299 = arith.addf %296, %298 : vector<8x32xf32>
    %300 = arith.addf %282, %299 : vector<8x32xf32>
    %301 = vector.extract_strided_slice %255 {offsets = [4, 0], sizes = [1, 32], strides = [1, 1]} : vector<8x32xf32> to vector<1x32xf32>
    %302 = vector.extract_strided_slice %255 {offsets = [5, 0], sizes = [1, 32], strides = [1, 1]} : vector<8x32xf32> to vector<1x32xf32>
    %cst_134 = arith.constant dense<0.000000e+00> : vector<8xf32>
    %303 = vector.multi_reduction <add>, %300, %cst_134 [1] : vector<8x32xf32> to vector<8xf32>
    %304 = vector.shape_cast %303 : vector<8xf32> to vector<8x1xf32>
    %cst_135 = arith.constant 3.200000e+01 : f32
    %305 = vector.broadcast %cst_135 : f32 to vector<8x1xf32>
    %306 = arith.divf %304, %305 : vector<8x1xf32>
    %307 = vector.broadcast %306 : vector<8x1xf32> to vector<8x32xf32>
    %308 = arith.subf %300, %307 : vector<8x32xf32>
    %309 = arith.mulf %308, %308 : vector<8x32xf32>
    %cst_136 = arith.constant dense<0.000000e+00> : vector<8xf32>
    %310 = vector.multi_reduction <add>, %309, %cst_136 [1] : vector<8x32xf32> to vector<8xf32>
    %311 = vector.shape_cast %310 : vector<8xf32> to vector<8x1xf32>
    %cst_137 = arith.constant 3.200000e+01 : f32
    %312 = vector.broadcast %cst_137 : f32 to vector<8x1xf32>
    %313 = arith.divf %311, %312 : vector<8x1xf32>
    %cst_138 = arith.constant 9.99999974E-6 : f32
    %314 = vector.broadcast %cst_138 : f32 to vector<8x1xf32>
    %315 = arith.addf %313, %314 : vector<8x1xf32>
    %316 = math.rsqrt %315 : vector<8x1xf32>
    %317 = vector.broadcast %316 : vector<8x1xf32> to vector<8x32xf32>
    %318 = arith.mulf %308, %317 : vector<8x32xf32>
    %319 = vector.broadcast %301 : vector<1x32xf32> to vector<8x32xf32>
    %320 = arith.mulf %318, %319 : vector<8x32xf32>
    %321 = vector.broadcast %302 : vector<1x32xf32> to vector<8x32xf32>
    %322 = arith.addf %320, %321 : vector<8x32xf32>
    %323 = arith.truncf %322 : vector<8x32xf32> to vector<8x32xbf16>
    %324 = vector.shape_cast %323 : vector<8x32xbf16> to vector<1x8x32xbf16>
    %325 = vector.shape_cast %324 : vector<1x8x32xbf16> to vector<1x8x32xbf16>
    %326 = vector.broadcast %325 : vector<1x8x32xbf16> to vector<8x8x32xbf16>
    %c3 = arith.constant 3 : index
    %c0_139 = arith.constant 0 : index
    %c0_140 = arith.constant 0 : index
    %c0_141 = arith.constant 0 : index
    %327 = vector.load %arg4[%c3, %c0_139, %c0_140, %c0_141] : memref<4x8x32x12xbf16, #tpu.memory_space<vmem>>, vector<1x8x32x12xbf16>
    %328 = vector.shape_cast %327 : vector<1x8x32x12xbf16> to vector<8x32x12xbf16>
    "tpu.trace_start"() <{level = 10 : i32, message = "hmk,hkd->hmd"}> : () -> ()
    %cst_142 = arith.constant dense<0.000000e+00> : vector<8x8x12xf32>
    %329 = tpu.matmul %326, %328, %cst_142 {dimension_numbers = #tpu.dot_dimension_numbers<[2], [1], [1], [2], [0, 0, 0, 1, 1, 2], [0], [0]>} : vector<8x8x32xbf16>, vector<8x32x12xbf16>, vector<8x8x12xf32> -> vector<8x8x12xf32>
    "tpu.trace_stop"() : () -> ()
    %c3_143 = arith.constant 3 : index
    %c0_144 = arith.constant 0 : index
    %c0_145 = arith.constant 0 : index
    %c0_146 = arith.constant 0 : index
    %330 = vector.load %arg5[%c3_143, %c0_144, %c0_145, %c0_146] : memref<4x8x1x12xf32, #tpu.memory_space<vmem>>, vector<1x8x1x12xf32>
    %331 = vector.shape_cast %330 : vector<1x8x1x12xf32> to vector<8x1x12xf32>
    %332 = vector.broadcast %331 : vector<8x1x12xf32> to vector<8x8x12xf32>
    %333 = arith.addf %329, %332 : vector<8x8x12xf32>
    %334 = arith.truncf %3 : vector<1x32xf32> to vector<1x32xbf16>
    %335 = vector.shape_cast %334 : vector<1x32xbf16> to vector<1x1x32xbf16>
    %336 = vector.shape_cast %335 : vector<1x1x32xbf16> to vector<1x1x32xbf16>
    %337 = vector.broadcast %336 : vector<1x1x32xbf16> to vector<8x1x32xbf16>
    %c3_147 = arith.constant 3 : index
    %c0_148 = arith.constant 0 : index
    %c0_149 = arith.constant 0 : index
    %c0_150 = arith.constant 0 : index
    %338 = vector.load %arg4[%c3_147, %c0_148, %c0_149, %c0_150] : memref<4x8x32x12xbf16, #tpu.memory_space<vmem>>, vector<1x8x32x12xbf16>
    %339 = vector.shape_cast %338 : vector<1x8x32x12xbf16> to vector<8x32x12xbf16>
    "tpu.trace_start"() <{level = 10 : i32, message = "hmk,hkd->hmd"}> : () -> ()
    %cst_151 = arith.constant dense<0.000000e+00> : vector<8x1x12xf32>
    %340 = tpu.matmul %337, %339, %cst_151 {dimension_numbers = #tpu.dot_dimension_numbers<[2], [1], [1], [2], [0, 0, 0, 1, 1, 2], [0], [0]>} : vector<8x1x32xbf16>, vector<8x32x12xbf16>, vector<8x1x12xf32> -> vector<8x1x12xf32>
    "tpu.trace_stop"() : () -> ()
    %c3_152 = arith.constant 3 : index
    %c0_153 = arith.constant 0 : index
    %c0_154 = arith.constant 0 : index
    %c0_155 = arith.constant 0 : index
    %341 = vector.load %arg5[%c3_152, %c0_153, %c0_154, %c0_155] : memref<4x8x1x12xf32, #tpu.memory_space<vmem>>, vector<1x8x1x12xf32>
    %342 = vector.shape_cast %341 : vector<1x8x1x12xf32> to vector<8x1x12xf32>
    %343 = arith.addf %340, %342 : vector<8x1x12xf32>
    %344 = vector.extract_strided_slice %343 {offsets = [0, 0, 0], sizes = [8, 1, 4], strides = [1, 1, 1]} : vector<8x1x12xf32> to vector<8x1x4xf32>
    %345 = vector.extract_strided_slice %333 {offsets = [0, 0, 4], sizes = [8, 8, 4], strides = [1, 1, 1]} : vector<8x8x12xf32> to vector<8x8x4xf32>
    %346 = vector.extract_strided_slice %333 {offsets = [0, 0, 8], sizes = [8, 8, 4], strides = [1, 1, 1]} : vector<8x8x12xf32> to vector<8x8x4xf32>
    %347 = arith.truncf %344 : vector<8x1x4xf32> to vector<8x1x4xbf16>
    %348 = arith.truncf %345 : vector<8x8x4xf32> to vector<8x8x4xbf16>
    "tpu.trace_start"() <{level = 10 : i32, message = "hqd,hkd->hqk"}> : () -> ()
    %cst_156 = arith.constant dense<0.000000e+00> : vector<8x1x8xf32>
    %349 = tpu.matmul %347, %348, %cst_156 {dimension_numbers = #tpu.dot_dimension_numbers<[2], [2], [1], [1], [0, 0, 0, 1, 1, 1], [0], [0]>} : vector<8x1x4xbf16>, vector<8x8x4xbf16>, vector<8x1x8xf32> -> vector<8x1x8xf32>
    "tpu.trace_stop"() : () -> ()
    %350 = vector.broadcast %10 : vector<1x1x8xf32> to vector<8x1x8xf32>
    %351 = arith.addf %349, %350 : vector<8x1x8xf32>
    %cst_157 = arith.constant dense<0xFF800000> : vector<8x1xf32>
    %352 = vector.multi_reduction <maximumf>, %351, %cst_157 [2] : vector<8x1x8xf32> to vector<8x1xf32>
    %353 = vector.shape_cast %352 : vector<8x1xf32> to vector<8x1x1xf32>
    %354 = vector.broadcast %353 : vector<8x1x1xf32> to vector<8x1x8xf32>
    %355 = arith.subf %351, %354 : vector<8x1x8xf32>
    %356 = math.exp %355 : vector<8x1x8xf32>
    %cst_158 = arith.constant dense<0.000000e+00> : vector<8x1xf32>
    %357 = vector.multi_reduction <add>, %356, %cst_158 [2] : vector<8x1x8xf32> to vector<8x1xf32>
    %358 = vector.shape_cast %357 : vector<8x1xf32> to vector<8x1x1xf32>
    %359 = vector.broadcast %358 : vector<8x1x1xf32> to vector<8x1x8xf32>
    %360 = arith.divf %356, %359 : vector<8x1x8xf32>
    %361 = arith.truncf %360 : vector<8x1x8xf32> to vector<8x1x8xbf16>
    %362 = arith.truncf %346 : vector<8x8x4xf32> to vector<8x8x4xbf16>
    "tpu.trace_start"() <{level = 10 : i32, message = "hqk,hkd->hqd"}> : () -> ()
    %cst_159 = arith.constant dense<0.000000e+00> : vector<8x1x4xf32>
    %363 = tpu.matmul %361, %362, %cst_159 {dimension_numbers = #tpu.dot_dimension_numbers<[2], [1], [1], [2], [0, 0, 0, 1, 1, 2], [0], [0]>} : vector<8x1x8xbf16>, vector<8x8x4xbf16>, vector<8x1x4xf32> -> vector<8x1x4xf32>
    "tpu.trace_stop"() : () -> ()
    %364 = arith.truncf %363 : vector<8x1x4xf32> to vector<8x1x4xbf16>
    %c3_160 = arith.constant 3 : index
    %c0_161 = arith.constant 0 : index
    %c0_162 = arith.constant 0 : index
    %c0_163 = arith.constant 0 : index
    %365 = vector.load %arg6[%c3_160, %c0_161, %c0_162, %c0_163] : memref<4x8x4x32xbf16, #tpu.memory_space<vmem>>, vector<1x8x4x32xbf16>
    %366 = vector.shape_cast %365 : vector<1x8x4x32xbf16> to vector<8x4x32xbf16>
    "tpu.trace_start"() <{level = 10 : i32, message = "hqd,hdn->hqn"}> : () -> ()
    %cst_164 = arith.constant dense<0.000000e+00> : vector<8x1x32xf32>
    %367 = tpu.matmul %364, %366, %cst_164 {dimension_numbers = #tpu.dot_dimension_numbers<[2], [1], [1], [2], [0, 0, 0, 1, 1, 2], [0], [0]>} : vector<8x1x4xbf16>, vector<8x4x32xbf16>, vector<8x1x32xf32> -> vector<8x1x32xf32>
    "tpu.trace_stop"() : () -> ()
    %c3_165 = arith.constant 3 : index
    %c0_166 = arith.constant 0 : index
    %c0_167 = arith.constant 0 : index
    %368 = vector.load %arg10[%c3_165, %c0_166, %c0_167] : memref<4x8x32xf32, #tpu.memory_space<vmem>>, vector<1x8x32xf32>
    %369 = vector.shape_cast %368 : vector<1x8x32xf32> to vector<8x32xf32>
    %cst_168 = arith.constant dense<0.000000e+00> : vector<1x32xf32>
    %370 = vector.multi_reduction <add>, %367, %cst_168 [0] : vector<8x1x32xf32> to vector<1x32xf32>
    %371 = vector.extract_strided_slice %369 {offsets = [0, 0], sizes = [1, 32], strides = [1, 1]} : vector<8x32xf32> to vector<1x32xf32>
    %372 = arith.addf %370, %371 : vector<1x32xf32>
    %373 = arith.addf %3, %372 : vector<1x32xf32>
    %374 = vector.extract_strided_slice %369 {offsets = [1, 0], sizes = [1, 32], strides = [1, 1]} : vector<8x32xf32> to vector<1x32xf32>
    %375 = vector.extract_strided_slice %369 {offsets = [2, 0], sizes = [1, 32], strides = [1, 1]} : vector<8x32xf32> to vector<1x32xf32>
    %cst_169 = arith.constant dense<0.000000e+00> : vector<1xf32>
    %376 = vector.multi_reduction <add>, %373, %cst_169 [1] : vector<1x32xf32> to vector<1xf32>
    %377 = vector.shape_cast %376 : vector<1xf32> to vector<1x1xf32>
    %cst_170 = arith.constant 3.200000e+01 : f32
    %378 = vector.broadcast %cst_170 : f32 to vector<1x1xf32>
    %379 = arith.divf %377, %378 : vector<1x1xf32>
    %380 = vector.broadcast %379 : vector<1x1xf32> to vector<1x32xf32>
    %381 = arith.subf %373, %380 : vector<1x32xf32>
    %382 = arith.mulf %381, %381 : vector<1x32xf32>
    %cst_171 = arith.constant dense<0.000000e+00> : vector<1xf32>
    %383 = vector.multi_reduction <add>, %382, %cst_171 [1] : vector<1x32xf32> to vector<1xf32>
    %384 = vector.shape_cast %383 : vector<1xf32> to vector<1x1xf32>
    %cst_172 = arith.constant 3.200000e+01 : f32
    %385 = vector.broadcast %cst_172 : f32 to vector<1x1xf32>
    %386 = arith.divf %384, %385 : vector<1x1xf32>
    %cst_173 = arith.constant 9.99999974E-6 : f32
    %387 = vector.broadcast %cst_173 : f32 to vector<1x1xf32>
    %388 = arith.addf %386, %387 : vector<1x1xf32>
    %389 = math.rsqrt %388 : vector<1x1xf32>
    %390 = vector.broadcast %389 : vector<1x1xf32> to vector<1x32xf32>
    %391 = arith.mulf %381, %390 : vector<1x32xf32>
    %392 = arith.mulf %391, %374 : vector<1x32xf32>
    %393 = arith.addf %392, %375 : vector<1x32xf32>
    %c3_174 = arith.constant 3 : index
    %c0_175 = arith.constant 0 : index
    %c0_176 = arith.constant 0 : index
    %394 = vector.load %arg7[%c3_174, %c0_175, %c0_176] : memref<4x32x128xbf16, #tpu.memory_space<vmem>>, vector<1x32x128xbf16>
    %395 = vector.shape_cast %394 : vector<1x32x128xbf16> to vector<32x128xbf16>
    %396 = arith.truncf %393 : vector<1x32xf32> to vector<1x32xbf16>
    %cst_177 = arith.constant dense<0.000000e+00> : vector<1x128xf32>
    %397 = tpu.matmul %396, %395, %cst_177 {dimension_numbers = #tpu.dot_dimension_numbers<[1], [0], [0], [1], [0, 0, 1, 1], [], []>} : vector<1x32xbf16>, vector<32x128xbf16>, vector<1x128xf32> -> vector<1x128xf32>
    %c3_178 = arith.constant 3 : index
    %c0_179 = arith.constant 0 : index
    %c0_180 = arith.constant 0 : index
    %398 = vector.load %arg9[%c3_178, %c0_179, %c0_180] : memref<4x1x128xf32, #tpu.memory_space<vmem>>, vector<1x1x128xf32>
    %399 = vector.shape_cast %398 : vector<1x1x128xf32> to vector<1x128xf32>
    %400 = arith.addf %397, %399 : vector<1x128xf32>
    %cst_181 = arith.constant 0.000000e+00 : f32
    %401 = vector.broadcast %cst_181 : f32 to vector<1x128xf32>
    %402 = arith.maximumf %400, %401 : vector<1x128xf32>
    %c3_182 = arith.constant 3 : index
    %c0_183 = arith.constant 0 : index
    %c0_184 = arith.constant 0 : index
    %403 = vector.load %arg8[%c3_182, %c0_183, %c0_184] : memref<4x128x32xbf16, #tpu.memory_space<vmem>>, vector<1x128x32xbf16>
    %404 = vector.shape_cast %403 : vector<1x128x32xbf16> to vector<128x32xbf16>
    %405 = arith.truncf %402 : vector<1x128xf32> to vector<1x128xbf16>
    %cst_185 = arith.constant dense<0.000000e+00> : vector<1x32xf32>
    %406 = tpu.matmul %405, %404, %cst_185 {dimension_numbers = #tpu.dot_dimension_numbers<[1], [0], [0], [1], [0, 0, 1, 1], [], []>} : vector<1x128xbf16>, vector<128x32xbf16>, vector<1x32xf32> -> vector<1x32xf32>
    %407 = vector.extract_strided_slice %369 {offsets = [3, 0], sizes = [1, 32], strides = [1, 1]} : vector<8x32xf32> to vector<1x32xf32>
    %408 = arith.addf %406, %407 : vector<1x32xf32>
    %409 = arith.addf %393, %408 : vector<1x32xf32>
    %410 = vector.extract_strided_slice %369 {offsets = [4, 0], sizes = [1, 32], strides = [1, 1]} : vector<8x32xf32> to vector<1x32xf32>
    %411 = vector.extract_strided_slice %369 {offsets = [5, 0], sizes = [1, 32], strides = [1, 1]} : vector<8x32xf32> to vector<1x32xf32>
    %cst_186 = arith.constant dense<0.000000e+00> : vector<1xf32>
    %412 = vector.multi_reduction <add>, %409, %cst_186 [1] : vector<1x32xf32> to vector<1xf32>
    %413 = vector.shape_cast %412 : vector<1xf32> to vector<1x1xf32>
    %cst_187 = arith.constant 3.200000e+01 : f32
    %414 = vector.broadcast %cst_187 : f32 to vector<1x1xf32>
    %415 = arith.divf %413, %414 : vector<1x1xf32>
    %416 = vector.broadcast %415 : vector<1x1xf32> to vector<1x32xf32>
    %417 = arith.subf %409, %416 : vector<1x32xf32>
    %418 = arith.mulf %417, %417 : vector<1x32xf32>
    %cst_188 = arith.constant dense<0.000000e+00> : vector<1xf32>
    %419 = vector.multi_reduction <add>, %418, %cst_188 [1] : vector<1x32xf32> to vector<1xf32>
    %420 = vector.shape_cast %419 : vector<1xf32> to vector<1x1xf32>
    %cst_189 = arith.constant 3.200000e+01 : f32
    %421 = vector.broadcast %cst_189 : f32 to vector<1x1xf32>
    %422 = arith.divf %420, %421 : vector<1x1xf32>
    %cst_190 = arith.constant 9.99999974E-6 : f32
    %423 = vector.broadcast %cst_190 : f32 to vector<1x1xf32>
    %424 = arith.addf %422, %423 : vector<1x1xf32>
    %425 = math.rsqrt %424 : vector<1x1xf32>
    %426 = vector.broadcast %425 : vector<1x1xf32> to vector<1x32xf32>
    %427 = arith.mulf %417, %426 : vector<1x32xf32>
    %428 = arith.mulf %427, %410 : vector<1x32xf32>
    %429 = arith.addf %428, %411 : vector<1x32xf32>
    %c0_191 = arith.constant 0 : index
    %c0_192 = arith.constant 0 : index
    %430 = vector.load %arg12[%c0_191, %c0_192] : memref<8x32xf32, #tpu.memory_space<vmem>>, vector<8x32xf32>
    %c0_193 = arith.constant 0 : index
    %c0_194 = arith.constant 0 : index
    %c0_195 = arith.constant 0 : index
    %431 = vector.load %arg11[%c0_193, %c0_194, %c0_195] : memref<3x32x32xbf16, #tpu.memory_space<vmem>>, vector<1x32x32xbf16>
    %432 = vector.shape_cast %431 : vector<1x32x32xbf16> to vector<32x32xbf16>
    %433 = arith.truncf %3 : vector<1x32xf32> to vector<1x32xbf16>
    %cst_196 = arith.constant dense<0.000000e+00> : vector<1x32xf32>
    %434 = tpu.matmul %433, %432, %cst_196 {dimension_numbers = #tpu.dot_dimension_numbers<[1], [0], [0], [1], [0, 0, 1, 1], [], []>} : vector<1x32xbf16>, vector<32x32xbf16>, vector<1x32xf32> -> vector<1x32xf32>
    %435 = vector.extract_strided_slice %430 {offsets = [0, 0], sizes = [1, 32], strides = [1, 1]} : vector<8x32xf32> to vector<1x32xf32>
    %436 = arith.addf %434, %435 : vector<1x32xf32>
    %c1_197 = arith.constant 1 : index
    %c0_198 = arith.constant 0 : index
    %c0_199 = arith.constant 0 : index
    %437 = vector.load %arg11[%c1_197, %c0_198, %c0_199] : memref<3x32x32xbf16, #tpu.memory_space<vmem>>, vector<1x32x32xbf16>
    %438 = vector.shape_cast %437 : vector<1x32x32xbf16> to vector<32x32xbf16>
    %439 = arith.truncf %436 : vector<1x32xf32> to vector<1x32xbf16>
    %cst_200 = arith.constant dense<0.000000e+00> : vector<1x32xf32>
    %440 = tpu.matmul %439, %438, %cst_200 {dimension_numbers = #tpu.dot_dimension_numbers<[1], [0], [0], [1], [0, 0, 1, 1], [], []>} : vector<1x32xbf16>, vector<32x32xbf16>, vector<1x32xf32> -> vector<1x32xf32>
    %c2_201 = arith.constant 2 : index
    %c0_202 = arith.constant 0 : index
    %c0_203 = arith.constant 0 : index
    %441 = vector.load %arg11[%c2_201, %c0_202, %c0_203] : memref<3x32x32xbf16, #tpu.memory_space<vmem>>, vector<1x32x32xbf16>
    %442 = vector.shape_cast %441 : vector<1x32x32xbf16> to vector<32x32xbf16>
    %443 = arith.truncf %429 : vector<1x32xf32> to vector<1x32xbf16>
    %cst_204 = arith.constant dense<0.000000e+00> : vector<1x32xf32>
    %444 = tpu.matmul %443, %442, %cst_204 {dimension_numbers = #tpu.dot_dimension_numbers<[1], [0], [0], [1], [0, 0, 1, 1], [], []>} : vector<1x32xbf16>, vector<32x32xbf16>, vector<1x32xf32> -> vector<1x32xf32>
    %445 = arith.addf %440, %444 : vector<1x32xf32>
    %446 = vector.extract_strided_slice %430 {offsets = [1, 0], sizes = [1, 32], strides = [1, 1]} : vector<8x32xf32> to vector<1x32xf32>
    %447 = arith.addf %445, %446 : vector<1x32xf32>
    %cst_205 = arith.constant 0.000000e+00 : f32
    %448 = vector.broadcast %cst_205 : f32 to vector<1x32xf32>
    %449 = arith.maximumf %447, %448 : vector<1x32xf32>
    %c0_206 = arith.constant 0 : index
    %c0_207 = arith.constant 0 : index
    %450 = vector.load %arg13[%c0_206, %c0_207] : memref<32x3xbf16, #tpu.memory_space<vmem>>, vector<32x3xbf16>
    %451 = arith.truncf %449 : vector<1x32xf32> to vector<1x32xbf16>
    %cst_208 = arith.constant dense<0.000000e+00> : vector<1x3xf32>
    %452 = tpu.matmul %451, %450, %cst_208 {dimension_numbers = #tpu.dot_dimension_numbers<[1], [0], [0], [1], [0, 0, 1, 1], [], []>} : vector<1x32xbf16>, vector<32x3xbf16>, vector<1x3xf32> -> vector<1x3xf32>
    %c0_209 = arith.constant 0 : index
    %c0_210 = arith.constant 0 : index
    %453 = vector.load %arg14[%c0_209, %c0_210] : memref<1x3xf32, #tpu.memory_space<vmem>>, vector<1x3xf32>
    %454 = arith.addf %452, %453 : vector<1x3xf32>
    %455 = vector.shape_cast %454 : vector<1x3xf32> to vector<1x1x3xf32>
    %c0_211 = arith.constant 0 : index
    %c0_212 = arith.constant 0 : index
    %c0_213 = arith.constant 0 : index
    %456 = vector.load %arg15[%c0_211, %c0_212, %c0_213] : memref<1x1x3xf32, #tpu.memory_space<vmem>>, vector<1x1x3xf32>
    tpu.vector_store %arg15[%c0_211, %c0_212, %c0_213], %455 {strides = array<i32>} : memref<1x1x3xf32, #tpu.memory_space<vmem>>, vector<1x1x3xf32>,
    return
  }
  func.func @transform_0(%arg0: i32) -> (i32, i32, i32) {
    %c0_i32 = arith.constant 0 : i32
    %c0_i32_0 = arith.constant 0 : i32
    %c0_i32_1 = arith.constant 0 : i32
    return %arg0, %c0_i32, %c0_i32_0 : i32, i32, i32
  }
  func.func @transform_1(%arg0: i32) -> (i32, i32, i32) {
    %c0_i32 = arith.constant 0 : i32
    %c0_i32_0 = arith.constant 0 : i32
    %c0_i32_1 = arith.constant 0 : i32
    return %arg0, %c0_i32, %c0_i32_0 : i32, i32, i32
  }
  func.func @transform_2(%arg0: i32) -> (i32, i32, i32) {
    %c0_i32 = arith.constant 0 : i32
    %c0_i32_0 = arith.constant 0 : i32
    %c0_i32_1 = arith.constant 0 : i32
    return %arg0, %c0_i32, %c0_i32_0 : i32, i32, i32
  }
  func.func @transform_3(%arg0: i32) -> (i32, i32, i32, i32) {
    %c0_i32 = arith.constant 0 : i32
    %c0_i32_0 = arith.constant 0 : i32
    %c0_i32_1 = arith.constant 0 : i32
    %c0_i32_2 = arith.constant 0 : i32
    %c0_i32_3 = arith.constant 0 : i32
    return %c0_i32, %c0_i32_0, %c0_i32_1, %c0_i32_2 : i32, i32, i32, i32
  }
  func.func @transform_4(%arg0: i32) -> (i32, i32, i32, i32) {
    %c0_i32 = arith.constant 0 : i32
    %c0_i32_0 = arith.constant 0 : i32
    %c0_i32_1 = arith.constant 0 : i32
    %c0_i32_2 = arith.constant 0 : i32
    %c0_i32_3 = arith.constant 0 : i32
    return %c0_i32, %c0_i32_0, %c0_i32_1, %c0_i32_2 : i32, i32, i32, i32
  }
  func.func @transform_5(%arg0: i32) -> (i32, i32, i32, i32) {
    %c0_i32 = arith.constant 0 : i32
    %c0_i32_0 = arith.constant 0 : i32
    %c0_i32_1 = arith.constant 0 : i32
    %c0_i32_2 = arith.constant 0 : i32
    %c0_i32_3 = arith.constant 0 : i32
    return %c0_i32, %c0_i32_0, %c0_i32_1, %c0_i32_2 : i32, i32, i32, i32
  }
  func.func @transform_6(%arg0: i32) -> (i32, i32, i32) {
    %c0_i32 = arith.constant 0 : i32
    %c0_i32_0 = arith.constant 0 : i32
    %c0_i32_1 = arith.constant 0 : i32
    %c0_i32_2 = arith.constant 0 : i32
    return %c0_i32, %c0_i32_0, %c0_i32_1 : i32, i32, i32
  }
  func.func @transform_7(%arg0: i32) -> (i32, i32, i32) {
    %c0_i32 = arith.constant 0 : i32
    %c0_i32_0 = arith.constant 0 : i32
    %c0_i32_1 = arith.constant 0 : i32
    %c0_i32_2 = arith.constant 0 : i32
    return %c0_i32, %c0_i32_0, %c0_i32_1 : i32, i32, i32
  }
  func.func @transform_8(%arg0: i32) -> (i32, i32, i32) {
    %c0_i32 = arith.constant 0 : i32
    %c0_i32_0 = arith.constant 0 : i32
    %c0_i32_1 = arith.constant 0 : i32
    %c0_i32_2 = arith.constant 0 : i32
    return %c0_i32, %c0_i32_0, %c0_i32_1 : i32, i32, i32
  }
  func.func @transform_9(%arg0: i32) -> (i32, i32, i32) {
    %c0_i32 = arith.constant 0 : i32
    %c0_i32_0 = arith.constant 0 : i32
    %c0_i32_1 = arith.constant 0 : i32
    %c0_i32_2 = arith.constant 0 : i32
    return %c0_i32, %c0_i32_0, %c0_i32_1 : i32, i32, i32
  }
  func.func @transform_10(%arg0: i32) -> (i32, i32, i32) {
    %c0_i32 = arith.constant 0 : i32
    %c0_i32_0 = arith.constant 0 : i32
    %c0_i32_1 = arith.constant 0 : i32
    %c0_i32_2 = arith.constant 0 : i32
    return %c0_i32, %c0_i32_0, %c0_i32_1 : i32, i32, i32
  }
  func.func @transform_11(%arg0: i32) -> (i32, i32) {
    %c0_i32 = arith.constant 0 : i32
    %c0_i32_0 = arith.constant 0 : i32
    %c0_i32_1 = arith.constant 0 : i32
    return %c0_i32, %c0_i32_0 : i32, i32
  }
  func.func @transform_12(%arg0: i32) -> (i32, i32) {
    %c0_i32 = arith.constant 0 : i32
    %c0_i32_0 = arith.constant 0 : i32
    %c0_i32_1 = arith.constant 0 : i32
    return %c0_i32, %c0_i32_0 : i32, i32
  }
  func.func @transform_13(%arg0: i32) -> (i32, i32) {
    %c0_i32 = arith.constant 0 : i32
    %c0_i32_0 = arith.constant 0 : i32
    %c0_i32_1 = arith.constant 0 : i32
    return %c0_i32, %c0_i32_0 : i32, i32
  }
  func.func @transform_14(%arg0: i32) -> (i32, i32, i32) {
    %c0_i32 = arith.constant 0 : i32
    %c0_i32_0 = arith.constant 0 : i32
    %c0_i32_1 = arith.constant 0 : i32
    return %arg0, %c0_i32, %c0_i32_0 : i32, i32, i32
  }
}

</mosaic_0001>

<bundles_post_ra>
// kernel: tpu_custom_call.1
= control target key start
LH: loop header
LB: loop body
LE: loop exit
PB: predicated region body
PF: predicated region fallthrough
CT: control target
= control target key end

     0   :  { %19 = vsyncpa [#allocation3], 0  ;;  %s8897_s0 = inlined_call_operand.vmem [shape: f32[2,1,32], index: 0, kind: input, shape index: {}]   ;;  %s8898_s1 = inlined_call_operand.vmem [shape: f32[2,8,32], index: 1, kind: input, shape index: {}]   ;;  %s8899_s2 = inlined_call_operand.vmem [shape: f32[2,1,8], index: 2, kind: input, shape index: {}]   ;;  %s8900_s3 = inlined_call_operand.vmem [shape: bf16[4,8,32,12], index: 3, kind: input, shape index: {}]   ;;  %s8901_s4 = inlined_call_operand.vmem [shape: f32[4,8,1,12], index: 4, kind: input, shape index: {}]   ;;  %s8902_s5 = inlined_call_operand.vmem [shape: bf16[4,8,4,32], index: 5, kind: input, shape index: {}]   ;;  %s8903_s6 = inlined_call_operand.vmem [shape: bf16[4,32,128], index: 6, kind: input, shape index: {}]   ;;  %s8904_s7 = inlined_call_operand.vmem [shape: bf16[4,128,32], index: 7, kind: input, shape index: {}]   ;;  %s8905_s8 = inlined_call_operand.vmem [shape: f32[4,1,128], index: 8, kind: input, shape index: {}]   ;;  %s8906_s9 = inlined_call_operand.vmem [shape: f32[4,8,32], index: 9, kind: input, shape index: {}]   ;;  %s8907_s10 = inlined_call_operand.vmem [shape: bf16[3,32,32], index: 10, kind: input, shape index: {}]   ;;  %s8908_s11 = inlined_call_operand.vmem [shape: f32[8,32], index: 11, kind: input, shape index: {}]   ;;  %s8909_s12 = inlined_call_operand.vmem [shape: bf16[32,3], index: 12, kind: input, shape index: {}]   ;;  %s8910_s13 = inlined_call_operand.vmem [shape: f32[1,3], index: 13, kind: input, shape index: {}]   ;;  %s8911_s14 = inlined_call_operand.hbm [shape: f32[2,1,3], index: 14, kind: output, shape index: {}]  }
   0x1   :  { %21 = vsyncpa [#allocation3 + $0x1], 0  ;;  %s7209_s29 = smov 0   ;;  %s7211_s30 = smov 0  }
   0x2   :  { %s7213_s15 = smov 0   ;;  %s7215_s16 = smov 0  }
   0x3 LB: > { %8918 = sst [smem:[#allocation5_spill]] %s7117_s29  ;;  %s7230_s17 = sadd.s32 4294967295, %s7129_s16   ;;  %s7129_s16 = sphi %s7215_s16, %s8941_s16   ;;  %s7125_s15 = sphi %s7213_s15, %s8943_s15   ;;  %s7121_s30 = sphi %s7211_s30, %s8945_s30   ;;  %s7117_s29 = sphi %s7209_s29, %s8944_s29  }
   0x4   : > { %8919 = sst [smem:[#allocation6_spill]] %s7125_s15  ;;  %s5793_s18 = sadd.s32 4294967294, %s7129_s16  }
   0x5   : > { %8920 = sst [smem:[#allocation7_spill]] %s7129_s16  ;;  %s7234_s19 = sadd.s32 1, %s7129_s16  }
   0x6   : > { %8921 = sst [smem:[#allocation8_spill]] %s7234_s19  ;;  %s343_s20 = sadd.s32 1, %s7125_s15 }
   0x7   : > { %s340_s21 = ssub.s32 %s7129_s16, %s7234_s19  ;;  %p353_p0 = scmp.ne.s32.totalorder %s7125_s15, %s7121_s30 }
   0x8   : > { %p341_p1 = scmp.eq.s32.totalorder %s340_s21, 0  ;;  %p354_p2 = scmp.eq.s32.totalorder %s7230_s17, 1 }
   0x9   : > { %p359_p3 = scmp.ne.s32.totalorder %s7121_s30, %s7117_s29  ;;  %p360_p4 = scmp.eq.s32.totalorder %s5793_s18, 1 }
   0xa   : > { %s7245_s22 = scalar_select %p341_p1, %s7125_s15, %s343_s20  }
   0xb   : > { %p7247_p5 = por %p354_p2, %p353_p0  ;;  %p7251_p6 = por %p360_p4, %p359_p3 }
   0xc   : > { %8922 = sst [smem:[#allocation9_spill]] %s7245_s22  ;;  %p5796_p7 = scmp.ge.s32.totalorder %s7129_s16, 1 }
   0xd   : > { %s8924_s24 = scalar_select %p7251_p6, 1, 0 }
   0xe   : > { %p430_p8 = scmp.lt.s32.totalorder %s7129_s16, 3 }
   0xf   : > { %8925 = sst [smem:[#allocation10_spill]] %s8924_s24 }
  0x10   : > { %p431_p9 = pnand %p5796_p7, %p430_p8 }
  0x11   : > { %p480_p10 = scmp.lt.s32.totalorder (!%p431_p9), %s7230_s17, 1  ;;  %s7131_s19 = smov (!%p431_p9), 124  }
  0x12   : > { %434 = sbr.rel (%p431_p9) target bundleno = 7462 (0x1d26), region = 76  ;;  %s7132_s24 = smov (!%p431_p9), 120  }
  0x17   : > { %v6715_v0 = vld [vmem:[%s8900_s3 + $0x8] sm:$0xff]  ;;  %v6717_v1 = vld [vmem:[%s8900_s3 + $0x18] sm:$0xff]  ;;  %v6714_v4 = vld [vmem:[%s8900_s3] sm:$0xff]  ;;  %s7277_s27 = scalar_select %p480_p10, %s7230_s17, 1  ;;  %vm573_vm0 = vcmask 261120   ;;  %vm781_vm1 = vcmask 31744  }
  0x18   : > { %v6719_v2 = vld [vmem:[%s8900_s3 + $0x28] sm:$0xff]  ;;  %v6721_v3 = vld [vmem:[%s8900_s3 + $0x38] sm:$0xff]  ;;  %583 = vmatpush.bf16.msra.mxu0 %v6715_v0  ;;  %608 = vmatpush.bf16.msra.mxu1 %v6717_v1  ;;  %v6716_v5 = vld [vmem:[%s8900_s3 + $0x10] sm:$0xff]  ;;  %vm1175_vm2 = vcmask 1043456   ;;  %vm969_vm3 = vcmask 64512  }
  0x19   : > { %633 = vmatpush.bf16.msra.mxu2 %v6719_v2  ;;  %658 = vmatpush.bf16.msra.mxu3 %v6721_v3  ;;  %v6718_v6 = vld [vmem:[%s8900_s3 + $0x20] sm:$0xff]  ;;  %v6720_v7 = vld [vmem:[%s8900_s3 + $0x30] sm:$0xff]  ;;  %s5797_s21 = sshll.u32 %s7277_s27, 3  ;;  %v6725_v8 = vld [vmem:[%s8900_s3 + $0x58] sm:$0xff]  ;;  %s489_s28 = scalar_lea.vmem %s8899_s2, %s7277_s27 }
  0x1a   : > { %v6723_v9 = vld [vmem:[%s8900_s3 + $0x48] sm:$0xff]  ;;  %s7295_s16 = scalar_lea.vmem %s8898_s1, %s5797_s21  ;;  %v6724_v12 = vld [vmem:[%s8900_s3 + $0x50] sm:$0xff]  ;;  %v6729_v13 = vld [vmem:[%s8900_s3 + $0x78] sm:$0xff]  ;;  %s8488_s29 = scalar_lea.vmem %s8897_s0, %s7277_s27 }
  0x1b   : > { %v6727_v10 = vld [vmem:[%s8900_s3 + $0x68] sm:$0xff]  ;;  %v491_v11 = vld [vmem:[%s7295_s16] sm:$0xff]  ;;  %v6728_v17 = vld [vmem:[%s8900_s3 + $0x70] sm:$0xff] }
  0x1c   : > { %584 = vmatpush.bf16.msra.mxu0 %v6714_v4  ;;  %609 = vmatpush.bf16.msra.mxu1 %v6716_v5  ;;  %v496_v14 = vpack.c.bf16 %v491_v11, %v491_v11  ;;  %v6722_v15 = vld [vmem:[%s8900_s3 + $0x40] sm:$0xff] }
  0x1d   : > { %634 = vmatpush.bf16.msra.mxu2 %v6718_v6  ;;  %659 = vmatpush.bf16.msra.mxu3 %v6720_v7  ;;  %v6726_v16 = vld [vmem:[%s8900_s3 + $0x60] sm:$0xff] }
  0x1e   : > { %v6884_v18 = vld [vmem:[%s8901_s4] ss:$0 sm:$0xff]  ;;  %v6885_v19 = vld [vmem:[%s8901_s4 + $0x1] ss:$0 sm:$0xff]  ;;  %v6886_v25 = vld [vmem:[%s8901_s4 + $0x2] ss:$0 sm:$0xff] }
  0x1f   : > { %5806 = vmatmul.msk.bf16.vlgmr.msra.gmra.mxu0 %vm573_vm0, %v496_v14  ;;  %5815 = vmatmul.msk.bf16.vlgmr.msra.gmra.mxu1 %vm573_vm0, %v496_v14  ;;  %v6887_v26 = vld [vmem:[%s8901_s4 + $0x3] ss:$0 sm:$0xff]  ;;  %v6888_v41 = vld [vmem:[%s8901_s4 + $0x5] ss:$0 sm:$0xff]  ;;  %v6889_v42 = vld [vmem:[%s8901_s4 + $0x4] ss:$0 sm:$0xff] }
  0x20   : > { %708 = vmatpush.bf16.msrb.mxu1 %v6725_v8  ;;  %683 = vmatpush.bf16.msrb.mxu0 %v6723_v9  ;;  %v6890_v54 = vld [vmem:[%s8901_s4 + $0x6] ss:$0 sm:$0xff]  ;;  %v6891_v55 = vld [vmem:[%s8901_s4 + $0x7] ss:$0 sm:$0xff] }
  0x21   : > { %5824 = vmatmul.msk.bf16.vlgmr.msra.gmra.mxu2 %vm573_vm0, %v496_v14  ;;  %5833 = vmatmul.msk.bf16.vlgmr.msra.gmra.mxu3 %vm573_vm0, %v496_v14 }
  0x22   : > { %733 = vmatpush.bf16.msrb.mxu2 %v6727_v10  ;;  %758 = vmatpush.bf16.msrb.mxu3 %v6729_v13 }
  0x24   : > { %709 = vmatpush.bf16.msrb.mxu1 %v6724_v12  ;;  %684 = vmatpush.bf16.msrb.mxu0 %v6722_v15 }
  0x26   : > { %734 = vmatpush.bf16.msrb.mxu2 %v6726_v16  ;;  %759 = vmatpush.bf16.msrb.mxu3 %v6728_v17 }
  0x2f   : > { %5851 = vmatmul.msk.bf16.vlgmr.msrb.gmra.mxu1 %vm573_vm0, %v496_v14  ;;  %5842 = vmatmul.msk.bf16.vlgmr.msrb.gmra.mxu0 %vm573_vm0, %v496_v14 }
  0x31   : > { %5860 = vmatmul.msk.bf16.vlgmr.msrb.gmra.mxu2 %vm573_vm0, %v496_v14  ;;  %5869 = vmatmul.msk.bf16.vlgmr.msrb.gmra.mxu3 %vm573_vm0, %v496_v14 }
  0x9c   : > { %v586_v20 = vpop.f32.mrf.mxu0  ;;  %v611_v21 = vpop.f32.mrf.mxu1 }
  0x9d   : > { %v587_v22 = vadd.f32 %v6884_v18, %v586_v20  ;;  %v612_v23 = vadd.f32 %v6885_v19, %v611_v21 }
  0x9f   : > { %v7330_v24 = vpack.c.bf16 %v587_v22, %v587_v22  ;;  %v7338_v27 = vpack.c.bf16 %v612_v23, %v612_v23 }
  0xa1   : > { %v777_v28 = vunpack.c.l.b16 %v7330_v24  ;;  %v802_v36 = vunpack.c.l.b16 %v7338_v27 }
  0xa3   : > { %v7341_v31 = vpack.c.b16 %v777_v28, %v777_v28  ;;  %v7351_v40 = vpack.c.b16 %v802_v36, %v802_v36 }
  0xa4   : > { %v636_v29 = vpop.f32.mrf.mxu2  ;;  %v661_v30 = vpop.f32.mrf.mxu3 }
  0xa5   : > { %v637_v32 = vadd.f32 %v6886_v25, %v636_v29  ;;  %v588_v33 = vpop.f32.mrf.mxu0  ;;  %v613_v34 = vpop.f32.mrf.mxu1  ;;  %v662_v35 = vadd.f32 %v6887_v26, %v661_v30  ;;  %779 = vrot.lane.b32.xlu1 %v7341_v31, %s7131_s19 }
  0xa7   : > { %v7346_v37 = vpack.c.bf16 %v637_v32, %v637_v32  ;;  %v7348_v38 = vpack.c.bf16 %v662_v35, %v662_v35 }
  0xa9   : > { %v826_v39 = vunpack.c.l.b16 %v7346_v37  ;;  %v850_v46 = vunpack.c.l.b16 %v7348_v38 }
  0xab   : > { %v827_v43 = vpack.c.b16 %v826_v39, %v826_v39  ;;  %v7365_v52 = vpack.c.b16 %v850_v46, %v850_v46 }
  0xac   : > { %v638_v44 = vpop.f32.mrf.mxu2  ;;  %v663_v45 = vpop.f32.mrf.mxu3 }
  0xad   : > { %828 = vrot.lane.b32.xlu0 %v827_v43, %s7131_s19  ;;  %v711_v47 = vpop.f32.mrf.mxu1  ;;  %v686_v48 = vpop.f32.mrf.mxu0  ;;  %804 = vrot.lane.b32.xlu1 %v7351_v40, %s7131_s19 }
  0xae   : > { %v712_v49 = vadd.f32 %v6888_v41, %v711_v47  ;;  %v687_v50 = vadd.f32 %v6889_v42, %v686_v48 }
  0xb0   : > { %v7363_v51 = vpack.c.bf16 %v712_v49, %v712_v49  ;;  %v769_v53 = vpack.c.bf16 %v687_v50, %v687_v50 }
  0xb2   : > { %v898_v56 = vunpack.c.l.b16 %v7363_v51  ;;  %v874_v60 = vunpack.c.l.b16 %v769_v53 }
  0xb4   : > { %v7374_v57 = vpack.c.b16 %v898_v56, %v898_v56  ;;  %v736_v58 = vpop.f32.mrf.mxu2  ;;  %v761_v59 = vpop.f32.mrf.mxu3  ;;  %v7380_v2 = vpack.c.b16 %v874_v60, %v874_v60 }
  0xb5   : > { %852 = vrot.lane.b32.xlu0 %v7365_v52, %s7131_s19  ;;  %v713_v61 = vpop.f32.mrf.mxu1  ;;  %v688_v62 = vpop.f32.mrf.mxu0  ;;  %v737_v63 = vadd.f32 %v6890_v54, %v736_v58  ;;  %v762_v0 = vadd.f32 %v6891_v55, %v761_v59 }
  0xb6   : > { %900 = vrot.lane.b32.xlu1 %v7374_v57, %s7131_s19 }
  0xb7   : > { %v771_v1 = vpack.c.bf16 %v737_v63, %v737_v63  ;;  %v772_v3 = vpack.c.bf16 %v762_v0, %v762_v0 }
  0xb9   : > { %v922_v4 = vunpack.c.l.b16 %v771_v1  ;;  %v946_v8 = vunpack.c.l.b16 %v772_v3 }
  0xbb   : > { %v7382_v5 = vpack.c.b16 %v922_v4, %v922_v4  ;;  %v7388_v9 = vpack.c.b16 %v946_v8, %v946_v8 }
  0xbc   : > { %v738_v6 = vpop.f32.mrf.mxu2  ;;  %v763_v7 = vpop.f32.mrf.mxu3 }
  0xbd   : > { %876 = vrot.lane.b32.xlu0 %v7380_v2, %s7131_s19  ;;  %924 = vrot.lane.b32.xlu2 %v7382_v5, %s7131_s19 }
  0xc5   : > { %1213 = vrot.lane.b32.xlu0 %v827_v43, %s7132_s24  ;;  %948 = vrot.lane.b32.xlu2 %v7388_v9, %s7131_s19 }
 0x117   : > { %v780_v10 = vpop.permute.xlu1 %779  ;;  %v925_v12 = vpop.permute.xlu2 %924 }
 0x118   : > { %v786_v11 = vsel %vm781_vm1, %v780_v10, 0  ;;  %v930_v14 = vsel %vm781_vm1, %v925_v12, 0 }
 0x119   : > { %795 = vmatpush.bf16.xpose.msra.mxu0 %v786_v11 }
 0x11f   : > { %v829_v13 = vpop.permute.xlu0 %828  ;;  %v805_v16 = vpop.permute.xlu1 %804 }
 0x120   : > { %v834_v15 = vsel %vm781_vm1, %v829_v13, 0  ;;  %v810_v17 = vsel %vm781_vm1, %v805_v16, 0  ;;  %5870 = vmatmul.msk.bf16.vlgmr.msra.gmra.mxu0 %vm781_vm1, %v7330_v24  ;;  %v949_v18 = vpop.permute.xlu2 %948 }
 0x121   : > { %843 = vmatpush.bf16.xpose.msra.mxu2 %v834_v15  ;;  %819 = vmatpush.bf16.xpose.msra.mxu1 %v810_v17  ;;  %v954_v20 = vsel %vm781_vm1, %v949_v18, 0 }
 0x127   : > { %v853_v19 = vpop.permute.xlu0 %852 }
 0x128   : > { %v858_v21 = vsel %vm781_vm1, %v853_v19, 0  ;;  %5872 = vmatmul.msk.bf16.vlgmr.msra.gmra.mxu2 %vm781_vm1, %v7346_v37  ;;  %v901_v22 = vpop.permute.xlu1 %900  ;;  %5871 = vmatmul.msk.bf16.vlgmr.msra.gmra.mxu1 %vm781_vm1, %v7338_v27  ;;  %v493_v27 = vld [vmem:[%s489_s28] sm:$0x1] }
 0x129   : > { %939 = vmatpush.bf16.xpose.msrb.mxu2 %v930_v14  ;;  %867 = vmatpush.bf16.xpose.msra.mxu3 %v858_v21  ;;  %v906_v23 = vsel %vm781_vm1, %v901_v22, 0  ;;  %v494_v29 = vsub.f32 1.0, %v493_v27 }
 0x12a   : > { %915 = vmatpush.bf16.xpose.msrb.mxu1 %v906_v23 }
 0x12b   : > { %v7419_v30 = vmul.f32 -1e+09, %v494_v29 }
 0x12d   : > { %v7422_v32 = vperm.slane %v7419_v30, 0 }
 0x12f   : > { %v877_v24 = vpop.permute.xlu0 %876 }
 0x130   : > { %v882_v25 = vsel %vm781_vm1, %v877_v24, 0  ;;  %5873 = vmatmul.msk.bf16.vlgmr.msra.gmra.mxu3 %vm781_vm1, %v7348_v38 }
 0x131   : > { %963 = vmatpush.bf16.xpose.msrb.mxu3 %v954_v20  ;;  %891 = vmatpush.bf16.xpose.msrb.mxu0 %v882_v25 }
 0x137   : > { %v1214_v26 = vpop.permute.xlu0 %1213 }
 0x138   : > { %v1219_v28 = vsel %vm1175_vm2, %v1214_v26, 0  ;;  %5874 = vmatmul.msk.bf16.vlgmr.msrb.gmra.mxu0 %vm781_vm1, %v769_v53  ;;  %5876 = vmatmul.msk.bf16.vlgmr.msrb.gmra.mxu2 %vm781_vm1, %v771_v1 }
 0x139   : > { %1228 = vmatpush.bf16.msra.mxu2 %v1219_v28  ;;  %5875 = vmatmul.msk.bf16.vlgmr.msrb.gmra.mxu1 %vm781_vm1, %v7363_v51 }
 0x140   : > { %5877 = vmatmul.msk.bf16.vlgmr.msrb.gmra.mxu3 %vm781_vm1, %v772_v3 }
 0x19d   : > { %v797_v33 = vpop.f32.mrf.mxu0 }
 0x19e   : > { %v798_v34 = vadd.f32 %v797_v33, %v7422_v32 }
 0x1a0   : > { %v970_v35 = vsel %vm969_vm3, %v798_v34, -inf }
 0x1a1   : > { %971 = vmax.xlane.f32.xlu1 %v970_v35 }
 0x1a5   : > { %v799_v36 = vpop.f32.mrf.mxu0  ;;  %v821_v37 = vpop.f32.mrf.mxu1 }
 0x1a6   : > { %v822_v38 = vadd.f32 %v821_v37, %v7422_v32 }
 0x1a8   : > { %v973_v39 = vsel %vm969_vm3, %v822_v38, -inf }
 0x1a9   : > { %974 = vmax.xlane.f32.xlu2 %v973_v39 }
 0x1ab   : > { %v845_v41 = vpop.f32.mrf.mxu2 }
 0x1ac   : > { %v846_v42 = vadd.f32 %v845_v41, %v7422_v32 }
 0x1ad   : > { %v823_v43 = vpop.f32.mrf.mxu1 }
 0x1ae   : > { %v976_v44 = vsel %vm969_vm3, %v846_v42, -inf }
 0x1b1   : > { %977 = vmax.xlane.f32.xlu2 %v976_v44 }
 0x1b3   : > { %v847_v45 = vpop.f32.mrf.mxu2  ;;  %v869_v46 = vpop.f32.mrf.mxu3 }
 0x1b4   : > { %v870_v47 = vadd.f32 %v869_v46, %v7422_v32 }
 0x1b5   : > { %v893_v48 = vpop.f32.mrf.mxu0 }
 0x1b6   : > { %v894_v49 = vadd.f32 %v893_v48, %v7422_v32  ;;  %v979_v50 = vsel %vm969_vm3, %v870_v47, -inf  ;;  %v917_v51 = vpop.f32.mrf.mxu1 }
 0x1b7   : > { %980 = vmax.xlane.f32.xlu0 %v979_v50  ;;  %v918_v53 = vadd.f32 %v917_v51, %v7422_v32 }
 0x1b8   : > { %v982_v54 = vsel %vm969_vm3, %v894_v49, -inf }
 0x1b9   : > { %983 = vmax.xlane.f32.xlu1 %v982_v54  ;;  %v985_v55 = vsel %vm969_vm3, %v918_v53, -inf }
 0x1ba   : > { %986 = vmax.xlane.f32.xlu2 %v985_v55 }
 0x1bb   : > { %v871_v56 = vpop.f32.mrf.mxu3  ;;  %v941_v58 = vpop.f32.mrf.mxu2 }
 0x1bc   : > { %v942_v59 = vadd.f32 %v941_v58, %v7422_v32 }
 0x1bd   : > { %v895_v60 = vpop.f32.mrf.mxu0 }
 0x1be   : > { %v919_v61 = vpop.f32.mrf.mxu1  ;;  %v988_v62 = vsel %vm969_vm3, %v942_v59, -inf }
 0x1c2   : > { %989 = vmax.xlane.f32.xlu2 %v988_v62 }
 0x1c3   : > { %v943_v63 = vpop.f32.mrf.mxu2  ;;  %v965_v0 = vpop.f32.mrf.mxu3 }
 0x1c4   : > { %v966_v1 = vadd.f32 %v965_v0, %v7422_v32 }
 0x1c6   : > { %v991_v3 = vsel %vm969_vm3, %v966_v1, -inf }
 0x1c7   : > { %992 = vmax.xlane.f32.xlu0 %v991_v3 }
 0x1cb   : > { %v967_v4 = vpop.f32.mrf.mxu3 }
 0x1d2   : > { %1234 = vrot.lane.b32.xlu1 %v7365_v52, %s7132_s24 }
 0x1db   : > { %1170 = vrot.lane.b32.xlu0 %v7341_v31, %s7132_s24 }
 0x214   : > { %v972_v6 = vpop.xlane.xlu1 %971 }
 0x215   : > { %v994_v7 = vsub.f32 %v798_v34, %v972_v6 }
 0x217   : > { %v1002_v8 = vmul.f32 1.442695, %v994_v7 }
 0x219   : > { %6919 = vpow2.f32 %v1002_v8 }
 0x21c   : > { %v975_v10 = vpop.xlane.xlu2 %974 }
 0x21d   : > { %v995_v11 = vsub.f32 %v822_v38, %v975_v10 }
 0x21f   : > { %v7444_v12 = vpop.eup %6919  ;;  %v1004_v13 = vmul.f32 1.442695, %v995_v11 }
 0x220   : > { %v1018_v14 = vsel %vm969_vm3, %v7444_v12, 0.0 }
 0x221   : > { %6921 = vpow2.f32 %v1004_v13  ;;  %1019 = vadd.xlane.f32.xlu2 %v1018_v14 }
 0x224   : > { %v978_v15 = vpop.xlane.xlu2 %977 }
 0x225   : > { %v996_v16 = vsub.f32 %v846_v42, %v978_v15 }
 0x227   : > { %v7448_v52 = vpop.eup %6921  ;;  %v1006_v17 = vmul.f32 1.442695, %v996_v16 }
 0x228   : > { %v1021_v31 = vsel %vm969_vm3, %v7448_v52, 0.0 }
 0x229   : > { %6923 = vpow2.f32 %v1006_v17  ;;  %1022 = vadd.xlane.f32.xlu0 %v1021_v31 }
 0x22a   : > { %v981_v18 = vpop.xlane.xlu0 %980 }
 0x22b   : > { %v997_v19 = vsub.f32 %v870_v47, %v981_v18 }
 0x22c   : > { %v984_v20 = vpop.xlane.xlu1 %983 }
 0x22d   : > { %v1008_v21 = vmul.f32 1.442695, %v997_v19  ;;  %v998_v22 = vsub.f32 %v894_v49, %v984_v20  ;;  %v987_v23 = vpop.xlane.xlu2 %986 }
 0x22e   : > { %v999_v25 = vsub.f32 %v918_v53, %v987_v23 }
 0x22f   : > { %6925 = vpow2.f32 %v1008_v21  ;;  %v1010_v24 = vmul.f32 1.442695, %v998_v22  ;;  %v7452_v26 = vpop.eup %6923 }
 0x230   : > { %v1024_v28 = vsel %vm969_vm3, %v7452_v26, 0.0  ;;  %v1012_v27 = vmul.f32 1.442695, %v999_v25 }
 0x231   : > { %6927 = vpow2.f32 %v1010_v24  ;;  %1025 = vadd.xlane.f32.xlu0 %v1024_v28 }
 0x232   : > { %6929 = vpow2.f32 %v1012_v27 }
 0x235   : > { %v7456_v29 = vpop.eup %6925  ;;  %v990_v33 = vpop.xlane.xlu2 %989 }
 0x236   : > { %v1000_v34 = vsub.f32 %v942_v59, %v990_v33  ;;  %v1027_v35 = vsel %vm969_vm3, %v7456_v29, 0.0 }
 0x237   : > { %v7460_v36 = vpop.eup %6927  ;;  %1028 = vadd.xlane.f32.xlu1 %v1027_v35 }
 0x238   : > { %v1014_v37 = vmul.f32 1.442695, %v1000_v34  ;;  %v1030_v38 = vsel %vm969_vm3, %v7460_v36, 0.0  ;;  %v7464_v42 = vpop.eup %6929 }
 0x239   : > { %1031 = vadd.xlane.f32.xlu2 %v1030_v38  ;;  %v1033_v45 = vsel %vm969_vm3, %v7464_v42, 0.0 }
 0x23a   : > { %6931 = vpow2.f32 %v1014_v37  ;;  %v993_v39 = vpop.xlane.xlu0 %992 }
 0x23b   : > { %v1001_v41 = vsub.f32 %v966_v1, %v993_v39 }
 0x23d   : > { %v1016_v43 = vmul.f32 1.442695, %v1001_v41 }
 0x23f   : > { %6933 = vpow2.f32 %v1016_v43 }
 0x240   : > { %v7466_v44 = vpop.eup %6931 }
 0x241   : > { %1034 = vadd.xlane.f32.xlu2 %v1033_v45  ;;  %v1036_v46 = vsel %vm969_vm3, %v7466_v44, 0.0 }
 0x242   : > { %1037 = vadd.xlane.f32.xlu1 %v1036_v46 }
 0x244   : > { %v1235_v47 = vpop.permute.xlu1 %1234 }
 0x245   : > { %v7472_v48 = vpop.eup %6933  ;;  %v1240_v49 = vsel %vm1175_vm2, %v1235_v47, 0  ;;  %1318 = vrot.lane.b32.xlu0 %v7388_v9, %s7132_s24 }
 0x246   : > { %1249 = vmatpush.bf16.msra.mxu3 %v1240_v49  ;;  %v1039_v50 = vsel %vm969_vm3, %v7472_v48, 0.0 }
 0x249   : > { %1040 = vadd.xlane.f32.xlu2 %v1039_v50 }
 0x24d   : > { %v1171_v51 = vpop.permute.xlu0 %1170  ;;  %1276 = vrot.lane.b32.xlu0 %v7374_v57, %s7132_s24 }
 0x24e   : > { %v1177_v53 = vsel %vm1175_vm2, %v1171_v51, 0 }
 0x24f   : > { %1186 = vmatpush.bf16.msra.mxu0 %v1177_v53 }
 0x25b   : > { %1297 = vrot.lane.b32.xlu1 %v7382_v5, %s7132_s24 }
 0x261   : > { %1192 = vrot.lane.b32.xlu2 %v7351_v40, %s7132_s24 }
 0x263   : > { %1255 = vrot.lane.b32.xlu1 %v7380_v2, %s7132_s24 }
 0x294   : > { %v1020_v9 = vpop.xlane.xlu2 %1019 }
 0x295   : > { %6935 = vrcp.f32 %v1020_v9  ;;  %v1053_v59 = vand.u32 2147483648, %v1020_v9  ;;  %v1051_v57 = vand.u32 2147483647, %v1020_v9  ;;  %vm1047_vm5 = vweird.f32 %v1020_v9 }
 0x297   : > { %v1054_v5 = vor.u32 1.1754944e-38, %v1053_v59  ;;  %vm1052_vm7 = vcmp.eq.f32.partialorder %v1051_v57, 8.507059e+37 }
 0x29b   : > { %v6936_v54 = vpop.eup %6935 }
 0x29c   : > { %v1043_v55 = vmul.f32 %v6936_v54, %v1020_v9  ;;  %v7488_v56 = vpop.xlane.xlu0 %1022  ;;  %vm1048_vm4 = vweird.f32 %v6936_v54 }
 0x29d   : > { %vm1049_vm6 = vmor %vm1047_vm5, %vm1048_vm4  ;;  %6937 = vrcp.f32 %v7488_v56  ;;  %v1068_v41 = vand.u32 2147483648, %v7488_v56  ;;  %vm1062_vm5 = vweird.f32 %v7488_v56  ;;  %v1066_v46 = vand.u32 2147483647, %v7488_v56 }
 0x29e   : > { %v1044_v58 = vsub.f32 1.0, %v1043_v55 }
 0x2a0   : > { %v1045_v60 = vmul.f32 %v6936_v54, %v1044_v58 }
 0x2a2   : > { %v1046_v61 = vadd.f32 %v6936_v54, %v1045_v60 }
 0x2a3   : > { %v7492_v1 = vpop.eup %6937 }
 0x2a4   : > { %v1050_v40 = vsel %vm1049_vm6, %v6936_v54, %v1046_v61  ;;  %v1026_v2 = vpop.xlane.xlu0 %1025  ;;  %v1058_v7 = vmul.f32 %v7492_v1, %v7488_v56  ;;  %vm1063_vm14 = vweird.f32 %v7492_v1  ;;  %v1069_v54 = vor.u32 1.1754944e-38, %v1068_v41 }
 0x2a5   : > { %v1055_v62 = vsel %vm1052_vm7, %v1054_v5, %v1050_v40  ;;  %6939 = vrcp.f32 %v1026_v2  ;;  %v1081_v11 = vand.u32 2147483647, %v1026_v2  ;;  %v1083_v13 = vand.u32 2147483648, %v1026_v2  ;;  %vm1064_vm6 = vmor %vm1062_vm5, %vm1063_vm14 }
 0x2a6   : > { %v1056_v63 = vmul.f32 %v7444_v12, %v1055_v62  ;;  %v1059_v15 = vsub.f32 1.0, %v1058_v7  ;;  %vm1077_vm9 = vweird.f32 %v1026_v2  ;;  %vm1067_vm7 = vcmp.eq.f32.partialorder %v1066_v46, 8.507059e+37 }
 0x2a7   : > { %vm1082_vm11 = vcmp.eq.f32.partialorder %v1081_v11, 8.507059e+37  ;;  %v1084_v31 = vor.u32 1.1754944e-38, %v1083_v13 }
 0x2a8   : > { %v1162_v0 = vpack.c.bf16 %v1056_v63, %v1056_v63  ;;  %v1060_v20 = vmul.f32 %v7492_v1, %v1059_v15 }
 0x2aa   : > { %v1029_v3 = vpop.xlane.xlu1 %1028  ;;  %5878 = vmatmul.msk.bf16.vlgmr.msra.gmra.mxu0 %vm969_vm3, %v1162_v0  ;;  %v1061_v35 = vadd.f32 %v7492_v1, %v1060_v20 }
 0x2ab   : > { %6941 = vrcp.f32 %v1029_v3  ;;  %v6940_v4 = vpop.eup %6939  ;;  %v1098_v22 = vand.u32 2147483648, %v1029_v3  ;;  %v1096_v28 = vand.u32 2147483647, %v1029_v3  ;;  %vm1092_vm13 = vweird.f32 %v1029_v3 }
 0x2ac   : > { %v7495_v6 = vpop.xlane.xlu2 %1031  ;;  %v1073_v8 = vmul.f32 %v6940_v4, %v1026_v2  ;;  %vm1078_vm8 = vweird.f32 %v6940_v4  ;;  %v1065_v53 = vsel %vm1064_vm6, %v7492_v1, %v1061_v35 }
 0x2ad   : > { %vm1079_vm10 = vmor %vm1077_vm9, %vm1078_vm8  ;;  %6943 = vrcp.f32 %v7495_v6  ;;  %v1099_v37 = vor.u32 1.1754944e-38, %v1098_v22  ;;  %vm1097_vm4 = vcmp.eq.f32.partialorder %v1096_v28, 8.507059e+37  ;;  %v1070_v59 = vsel %vm1067_vm7, %v1069_v54, %v1065_v53  ;;  %v1347_v54 = vld [vmem:[%s8902_s5] sm:$0x3] }
 0x2ae   : > { %v1074_v10 = vsub.f32 1.0, %v1073_v8  ;;  %v1071_v40 = vmul.f32 %v7448_v52, %v1070_v59  ;;  %v1111_v28 = vand.u32 2147483647, %v7495_v6  ;;  %v1348_v59 = vld [vmem:[%s8902_s5 + $0x2] sm:$0x3] }
 0x2b0   : > { %v1075_v12 = vmul.f32 %v6940_v4, %v1074_v10 }
 0x2b1   : > { %v6942_v14 = vpop.eup %6941 }
 0x2b2   : > { %v1088_v16 = vmul.f32 %v6942_v14, %v1029_v3  ;;  %v1076_v17 = vadd.f32 %v6940_v4, %v1075_v12  ;;  %vm1093_vm12 = vweird.f32 %v6942_v14  ;;  %v1163_v12 = vpack.c.bf16 %v1071_v40, %v1071_v40 }
 0x2b3   : > { %vm1094_vm15 = vmor %vm1092_vm13, %vm1093_vm12  ;;  %v7511_v39 = vpop.eup %6943 }
 0x2b4   : > { %v1089_v18 = vsub.f32 1.0, %v1088_v16  ;;  %v7500_v19 = vpop.xlane.xlu2 %1034  ;;  %v1080_v21 = vsel %vm1079_vm10, %v6940_v4, %v1076_v17  ;;  %v1103_v55 = vmul.f32 %v7511_v39, %v7495_v6  ;;  %vm1108_vm14 = vweird.f32 %v7511_v39 }
 0x2b5   : > { %6945 = vrcp.f32 %v7500_v19  ;;  %v7504_v23 = vpop.xlane.xlu1 %1037  ;;  %v1085_v24 = vsel %vm1082_vm11, %v1084_v31, %v1080_v21  ;;  %vm1107_vm11 = vweird.f32 %v7495_v6  ;;  %v1128_v21 = vand.u32 2147483648, %v7500_v19 }
 0x2b6   : > { %v1090_v25 = vmul.f32 %v6942_v14, %v1089_v18  ;;  %v1086_v27 = vmul.f32 %v7452_v26, %v1085_v24  ;;  %6947 = vrcp.f32 %v7504_v23  ;;  %v1104_v57 = vsub.f32 1.0, %v1103_v55 }
 0x2b7   : > { %v1319_v34 = vpop.permute.xlu0 %1318  ;;  %v1143_v2 = vand.u32 2147483648, %v7504_v23  ;;  %vm1137_vm9 = vweird.f32 %v7504_v23  ;;  %v1141_v0 = vand.u32 2147483647, %v7504_v23  ;;  %vm1122_vm5 = vweird.f32 %v7500_v19 }
 0x2b8   : > { %v1091_v33 = vadd.f32 %v6942_v14, %v1090_v25  ;;  %v1324_v38 = vsel %vm1175_vm2, %v1319_v34, 0  ;;  %v1164_v26 = vpack.c.bf16 %v1086_v27, %v1086_v27  ;;  %v1105_v52 = vmul.f32 %v7511_v39, %v1104_v57 }
 0x2b9   : > { %1333 = vmatpush.bf16.msrb.mxu3 %v1324_v38  ;;  %vm1142_vm12 = vcmp.eq.f32.partialorder %v1141_v0, 8.507059e+37  ;;  %v1126_v24 = vand.u32 2147483647, %v7500_v19  ;;  %v1129_v41 = vor.u32 1.1754944e-38, %v1128_v21 }
 0x2ba   : > { %v1095_v43 = vsel %vm1094_vm15, %v6942_v14, %v1091_v33  ;;  %5880 = vmatmul.msk.bf16.vlgmr.msra.gmra.mxu2 %vm969_vm3, %v1164_v26  ;;  %v1144_v14 = vor.u32 1.1754944e-38, %v1143_v2  ;;  %v1106_v20 = vadd.f32 %v7511_v39, %v1105_v52  ;;  %v1352_v2 = vld [vmem:[%s8902_s5 + $0xa] sm:$0x3] }
 0x2bb   : > { %v7514_v45 = vpop.eup %6945  ;;  %v1100_v47 = vsel %vm1097_vm4, %v1099_v37, %v1095_v43 }
 0x2bc   : > { %v1101_v49 = vmul.f32 %v7456_v29, %v1100_v47  ;;  %v1041_v50 = vpop.xlane.xlu2 %1040  ;;  %v6948_v51 = vpop.eup %6947  ;;  %v1118_v9 = vmul.f32 %v7514_v45, %v7500_v19  ;;  %vm1123_vm15 = vweird.f32 %v7514_v45 }
 0x2bd   : > { %6949 = vrcp.f32 %v1041_v50  ;;  %v1133_v56 = vmul.f32 %v6948_v51, %v7504_v23  ;;  %vm1138_vm8 = vweird.f32 %v6948_v51  ;;  %v1158_v15 = vand.u32 2147483648, %v1041_v50  ;;  %vm7552_vm7 = vmor %vm1122_vm5, %vm1123_vm15 }
 0x2be   : > { %v1165_v58 = vpack.c.bf16 %v1101_v49, %v1101_v49  ;;  %v1119_v60 = vsub.f32 1.0, %v1118_v9  ;;  %vm7532_vm10 = vmor %vm1137_vm9, %vm1138_vm8  ;;  %v1156_v17 = vand.u32 2147483647, %v1041_v50  ;;  %vm1152_vm4 = vweird.f32 %v1041_v50 }
 0x2bf   : > { %v1134_v29 = vsub.f32 1.0, %v1133_v56  ;;  %v1277_v62 = vpop.permute.xlu0 %1276  ;;  %v1113_v23 = vand.u32 2147483648, %v7495_v6  ;;  %v1159_v25 = vor.u32 1.1754944e-38, %v1158_v15  ;;  %vm7561_vm9 = vmor %vm1107_vm11, %vm1108_vm14  ;;  %vm1112_vm11 = vcmp.eq.f32.partialorder %v1111_v28, 8.507059e+37  ;;  %v1350_v56 = vld [vmem:[%s8902_s5 + $0x6] sm:$0x3] }
 0x2c0   : > { %5881 = vmatmul.msk.bf16.vlgmr.msra.gmra.mxu3 %vm969_vm3, %v1165_v58  ;;  %v1120_v4 = vmul.f32 %v7514_v45, %v1119_v60  ;;  %v1282_v13 = vsel %vm1175_vm2, %v1277_v62, 0  ;;  %vm1157_vm8 = vcmp.eq.f32.partialorder %v1156_v17, 8.507059e+37  ;;  %v1353_v62 = vld [vmem:[%s8902_s5 + $0xc] sm:$0x3] }
 0x2c1   : > { %v1135_v61 = vmul.f32 %v6948_v51, %v1134_v29  ;;  %v1114_v6 = vor.u32 1.1754944e-38, %v1113_v23 }
 0x2c2   : > { %v1121_v31 = vadd.f32 %v7514_v45, %v1120_v4 }
 0x2c3   : > { %v6950_v5 = vpop.eup %6949  ;;  %v1136_v63 = vadd.f32 %v6948_v51, %v1135_v61 }
 0x2c4   : > { %v1148_v1 = vmul.f32 %v6950_v5, %v1041_v50  ;;  %v1193_v3 = vpop.permute.xlu2 %1192  ;;  %vm1153_vm13 = vweird.f32 %v6950_v5  ;;  %v1125_v19 = vsel %vm7552_vm7, %v7514_v45, %v1121_v31 }
 0x2c5   : > { %v1198_v8 = vsel %vm1175_vm2, %v1193_v3, 0  ;;  %v1140_v10 = vsel %vm7532_vm10, %v6948_v51, %v1136_v63  ;;  %vm1154_vm6 = vmor %vm1152_vm4, %vm1153_vm13  ;;  %vm1127_vm10 = vcmp.eq.f32.partialorder %v1126_v24, 8.507059e+37 }
 0x2c6   : > { %v1149_v11 = vsub.f32 1.0, %v1148_v1  ;;  %1207 = vmatpush.bf16.msra.mxu1 %v1198_v8  ;;  %v1145_v18 = vsel %vm1142_vm12, %v1144_v14, %v1140_v10  ;;  %v1130_v46 = vsel %vm1127_vm10, %v1129_v41, %v1125_v19  ;;  %vm1358_vm12 = vcmask 1041408   ;;  %v1351_v1 = vld [vmem:[%s8902_s5 + $0x8] sm:$0x3] }
 0x2c7   : > { %v1146_v33 = vmul.f32 %v7466_v44, %v1145_v18  ;;  %v1110_v44 = vsel %vm7561_vm9, %v7511_v39, %v1106_v20  ;;  %v1131_v45 = vmul.f32 %v7464_v42, %v1130_v46  ;;  %v1360_v55 = vsel %vm1358_vm12, %v1347_v54, 0 }
 0x2c8   : > { %v1150_v16 = vmul.f32 %v6950_v5, %v1149_v11  ;;  %v1115_v50 = vsel %vm1112_vm11, %v1114_v6, %v1110_v44  ;;  %v1417_v58 = vsel %vm1358_vm12, %v1350_v56, 0  ;;  %v1379_v29 = vsel %vm1358_vm12, %v1348_v59, 0 }
 0x2c9   : > { %5879 = vmatmul.msk.bf16.vlgmr.msra.gmra.mxu1 %vm969_vm3, %v1163_v12  ;;  %v1168_v49 = vpack.c.bf16 %v1146_v33, %v1146_v33  ;;  %v1116_v39 = vmul.f32 %v7460_v36, %v1115_v50  ;;  %v1167_v53 = vpack.c.bf16 %v1131_v45, %v1131_v45  ;;  %v1349_v36 = vld [vmem:[%s8902_s5 + $0x4] sm:$0x3]  ;;  %1426 = vmatpush.bf16.msra.mxu3 %v1417_v58  ;;  %v1455_v63 = vsel %vm1358_vm12, %v1352_v2, 0 }
 0x2ca   : > { %1291 = vmatpush.bf16.msrb.mxu1 %v1282_v13  ;;  %v1151_v22 = vadd.f32 %v6950_v5, %v1150_v16  ;;  %v1398_v42 = vsel %vm1358_vm12, %v1349_v36, 0  ;;  %v1474_v0 = vsel %vm1358_vm12, %v1353_v62, 0  ;;  %v1436_v3 = vsel %vm1358_vm12, %v1351_v1, 0 }
 0x2cb   : > { %v1166_v9 = vpack.c.bf16 %v1116_v39, %v1116_v39 }
 0x2cc   : > { %v1155_v34 = vsel %vm1154_vm6, %v6950_v5, %v1151_v22  ;;  %v1354_v5 = vld [vmem:[%s8902_s5 + $0xe] sm:$0x3] }
 0x2cd   : > { %v1160_v37 = vsel %vm1157_vm8, %v1159_v25, %v1155_v34  ;;  %v1298_v38 = vpop.permute.xlu1 %1297  ;;  %v1493_v40 = vsel %vm1358_vm12, %v1354_v5, 0 }
 0x2ce   : > { %v1161_v43 = vmul.f32 %v7472_v48, %v1160_v37  ;;  %v1303_v26 = vsel %vm1175_vm2, %v1298_v38, 0  ;;  %1388 = vmatpush.bf16.msra.mxu1 %v1379_v29 }
 0x2cf   : > { %1312 = vmatpush.bf16.msrb.mxu2 %v1303_v26 }
 0x2d0   : > { %v1169_v47 = vpack.c.bf16 %v1161_v43, %v1161_v43 }
 0x2d2   : > { %5885 = vmatmul.msk.bf16.vlgmr.msrb.gmra.mxu3 %vm969_vm3, %v1169_v47  ;;  %5884 = vmatmul.msk.bf16.vlgmr.msrb.gmra.mxu2 %vm969_vm3, %v1168_v49 }
 0x2d3   : > { %1407 = vmatpush.bf16.msra.mxu2 %v1398_v42  ;;  %1502 = vmatpush.bf16.msrb.mxu3 %v1493_v40  ;;  %v7065_v40 = vld [vmem:[%s7295_s16] sm:$0xff]  ;;  %s7087_s16 = scalar_lea.hbm %s8911_s14, 2 }
 0x2d5   : > { %v1256_v51 = vpop.permute.xlu1 %1255 }
 0x2d6   : > { %v1261_v48 = vsel %vm1175_vm2, %v1256_v51, 0 }
 0x2d7   : > { %1270 = vmatpush.bf16.msrb.mxu0 %v1261_v48  ;;  %1483 = vmatpush.bf16.msrb.mxu2 %v1474_v0 }
 0x2d9   : > { %5883 = vmatmul.msk.bf16.vlgmr.msrb.gmra.mxu1 %vm969_vm3, %v1167_v53  ;;  %v7629_v53 = vld [vmem:[%s8906_s9] sm:$0xff] }
 0x2da   : > { %5882 = vmatmul.msk.bf16.vlgmr.msrb.gmra.mxu0 %vm969_vm3, %v1166_v9  ;;  %1464 = vmatpush.bf16.msrb.mxu1 %v1455_v63  ;;  %v1524_v56 = vperm.slane %v7629_v53, 0  ;;  %v7133_v63 = vmov 32.0  }
 0x2db   : > { %1369 = vmatpush.bf16.msra.mxu0 %v1360_v55  ;;  %6951 = vrcp.f32 %v7133_v63  ;;  %v6744_v63 = vld [vmem:[%s8900_s3 + $0xa0] sm:$0xff] }
 0x2df   : > { %1445 = vmatpush.bf16.msrb.mxu0 %v1436_v3 }
 0x2e1   : > { %v6952_v0 = vpop.eup %6951 }
 0x2e2   : > { %v1531_v1 = vmul.f32 32.0, %v6952_v0  ;;  %vm1535_vm13 = vweird.f32 %v6952_v0 }
 0x2e4   : > { %v1532_v3 = vsub.f32 1.0, %v1531_v1 }
 0x327   : > { %v1188_v60 = vpop.f32.mrf.mxu0 }
 0x328   : > { %v1339_v57 = vpack.c.bf16 %v1188_v60, %v1188_v60 }
 0x32a   : > { %5886 = vmatmul.msk.bf16.vlgmr.msra.gmra.mxu0 %vm781_vm1, %v1339_v57 }
 0x32f   : > { %v1190_v61 = vpop.f32.mrf.mxu0 }
 0x33d   : > { %v1230_v4 = vpop.f32.mrf.mxu2 }
 0x33e   : > { %v1341_v7 = vpack.c.bf16 %v1230_v4, %v1230_v4  ;;  %v1533_v4 = vmul.f32 %v6952_v0, %v1532_v3  ;;  %v6747_v3 = vld [vmem:[%s8900_s3 + $0xb8] sm:$0xff] }
 0x340   : > { %5888 = vmatmul.msk.bf16.vlgmr.msra.gmra.mxu2 %vm781_vm1, %v1341_v7  ;;  %v1534_v7 = vadd.f32 %v6952_v0, %v1533_v4  ;;  %v6749_v4 = vld [vmem:[%s8900_s3 + $0xc8] sm:$0xff] }
 0x343   : > { %v1251_v8 = vpop.f32.mrf.mxu3 }
 0x344   : > { %v1342_v52 = vpack.c.bf16 %v1251_v8, %v1251_v8  ;;  %v7636_v8 = vsel %vm1535_vm13, %v6952_v0, %v1534_v7  ;;  %v6752_v0 = vld [vmem:[%s8900_s3 + $0xe0] sm:$0xff]  ;;  %v6751_v7 = vld [vmem:[%s8900_s3 + $0xd8] sm:$0xff] }
 0x345   : > { %v1232_v13 = vpop.f32.mrf.mxu2 }
 0x346   : > { %v1209_v10 = vpop.f32.mrf.mxu1  ;;  %5889 = vmatmul.msk.bf16.vlgmr.msra.gmra.mxu3 %vm781_vm1, %v1342_v52 }
 0x347   : > { %v1340_v11 = vpack.c.bf16 %v1209_v10, %v1209_v10 }
 0x349   : > { %5887 = vmatmul.msk.bf16.vlgmr.msra.gmra.mxu1 %vm781_vm1, %v1340_v11 }
 0x34b   : > { %v1253_v14 = vpop.f32.mrf.mxu3 }
 0x34e   : > { %v1211_v15 = vpop.f32.mrf.mxu1 }
 0x34f   : > { %v6731_v15 = vld [vmem:[%s8903_s6 + $0x8] sm:$0xff] }
 0x350   : > { %1590 = vmatpush.bf16.msra.mxu0 %v6731_v15 }
 0x355   : > { %v1335_v12 = vpop.f32.mrf.mxu3  ;;  %v1314_v16 = vpop.f32.mrf.mxu2 }
 0x356   : > { %v1346_v17 = vpack.c.bf16 %v1335_v12, %v1335_v12  ;;  %v1293_v31 = vpop.f32.mrf.mxu1  ;;  %v1345_v18 = vpack.c.bf16 %v1314_v16, %v1314_v16  ;;  %v6730_v12 = vld [vmem:[%s8903_s6] sm:$0xff]  ;;  %v6739_v16 = vld [vmem:[%s8904_s7 + $0x38] sm:$0xff] }
 0x357   : > { %v1344_v20 = vpack.c.bf16 %v1293_v31, %v1293_v31  ;;  %v1272_v21 = vpop.f32.mrf.mxu0  ;;  %1591 = vmatpush.bf16.msra.mxu0 %v6730_v12  ;;  %1664 = vmatpush.bf16.msra.mxu1 %v6739_v16 }
 0x358   : > { %v1343_v22 = vpack.c.bf16 %v1272_v21, %v1272_v21  ;;  %5893 = vmatmul.msk.bf16.vlgmr.msrb.gmra.mxu3 %vm781_vm1, %v1346_v17  ;;  %5892 = vmatmul.msk.bf16.vlgmr.msrb.gmra.mxu2 %vm781_vm1, %v1345_v18  ;;  %v6738_v18 = vld [vmem:[%s8904_s7 + $0x30] sm:$0xff]  ;;  %v6737_v21 = vld [vmem:[%s8904_s7 + $0x28] sm:$0xff] }
 0x359   : > { %5891 = vmatmul.msk.bf16.vlgmr.msrb.gmra.mxu1 %vm781_vm1, %v1344_v20 }
 0x35a   : > { %5890 = vmatmul.msk.bf16.vlgmr.msrb.gmra.mxu0 %vm781_vm1, %v1343_v22  ;;  %v6736_v22 = vld [vmem:[%s8904_s7 + $0x20] sm:$0xff] }
 0x35b   : > { %1665 = vmatpush.bf16.msra.mxu1 %v6738_v18 }
 0x35d   : > { %v1337_v23 = vpop.f32.mrf.mxu3  ;;  %v1316_v24 = vpop.f32.mrf.mxu2 }
 0x35e   : > { %v1295_v25 = vpop.f32.mrf.mxu1 }
 0x35f   : > { %v1274_v28 = vpop.f32.mrf.mxu0  ;;  %1666 = vmatpush.bf16.msra.mxu1 %v6737_v21  ;;  %v6735_v25 = vld [vmem:[%s8904_s7 + $0x18] sm:$0xff] }
 0x363   : > { %1667 = vmatpush.bf16.msra.mxu1 %v6736_v22  ;;  %v1702_v22 = vperm.slane %v7629_v53, 5 }
 0x367   : > { %1668 = vmatpush.bf16.msra.mxu1 %v6735_v25 }
 0x3a7   : > { %v1371_v27 = vpop.f32.mrf.mxu0 }
 0x3a8   : > { %v1509_v44 = vsel %vm573_vm0, %v1371_v27, 0.0 }
 0x3af   : > { %v1373_v33 = vpop.f32.mrf.mxu0 }
 0x3b0   : > { %v6734_v33 = vld [vmem:[%s8904_s7 + $0x10] sm:$0xff] }
 0x3b1   : > { %1669 = vmatpush.bf16.msra.mxu1 %v6734_v33 }
 0x3c3   : > { %v1409_v34 = vpop.f32.mrf.mxu2 }
 0x3c4   : > { %v1512_v26 = vsel %vm573_vm0, %v1409_v34, 0.0 }
 0x3c6   : > { %v1390_v35 = vpop.f32.mrf.mxu1 }
 0x3c7   : > { %v1510_v37 = vsel %vm573_vm0, %v1390_v35, 0.0 }
 0x3c8   : > { %v1511_v43 = vadd.f32 %v1510_v37, %v1509_v44 }
 0x3c9   : > { %v1428_v19 = vpop.f32.mrf.mxu3 }
 0x3ca   : > { %v1513_v46 = vadd.f32 %v1512_v26, %v1511_v43  ;;  %v1514_v47 = vsel %vm573_vm0, %v1428_v19, 0.0  ;;  %v1556_v19 = vperm.slane %v7629_v53, 1 }
 0x3cb   : > { %v1411_v38 = vpop.f32.mrf.mxu2 }
 0x3cc   : > { %v1515_v50 = vadd.f32 %v1514_v47, %v1513_v46  ;;  %v1558_v38 = vperm.slane %v7629_v53, 2  ;;  %v6732_v46 = vld [vmem:[%s8904_s7] sm:$0xff] }
 0x3cd   : > { %v6892_v47 = vld [vmem:[%s8905_s8] ss:$0 sm:$0xff] }
 0x3ce   : > { %v1392_v41 = vpop.f32.mrf.mxu1 }
 0x3d1   : > { %v1430_v6 = vpop.f32.mrf.mxu3 }
 0x3d2   : > { %v6733_v6 = vld [vmem:[%s8904_s7 + $0x8] sm:$0xff] }
 0x3d3   : > { %1670 = vmatpush.bf16.msra.mxu1 %v6733_v6 }
 0x3d6   : > { %v1466_v49 = vpop.f32.mrf.mxu1 }
 0x3d7   : > { %v1447_v45 = vpop.f32.mrf.mxu0  ;;  %v1518_v48 = vsel %vm573_vm0, %v1466_v49, 0.0  ;;  %1671 = vmatpush.bf16.msra.mxu1 %v6732_v46 }
 0x3d8   : > { %v1516_v39 = vsel %vm573_vm0, %v1447_v45, 0.0 }
 0x3d9   : > { %v1517_v51 = vadd.f32 %v1516_v39, %v1515_v50 }
 0x3db   : > { %v1504_v9 = vpop.f32.mrf.mxu3  ;;  %v1485_v54 = vpop.f32.mrf.mxu2  ;;  %v1519_v55 = vadd.f32 %v1518_v48, %v1517_v51  ;;  %v1615_v48 = vperm.slane %v7629_v53, 3 }
 0x3dc   : > { %v1520_v36 = vsel %vm573_vm0, %v1485_v54, 0.0  ;;  %v1522_v58 = vsel %vm573_vm0, %v1504_v9, 0.0 }
 0x3dd   : > { %v1521_v42 = vadd.f32 %v1520_v36, %v1519_v55 }
 0x3de   : > { %v1468_v59 = vpop.f32.mrf.mxu1 }
 0x3df   : > { %v1523_v29 = vadd.f32 %v1522_v58, %v1521_v42  ;;  %v1449_v60 = vpop.f32.mrf.mxu0 }
 0x3e1   : > { %v1525_v57 = vadd.f32 %v1524_v56, %v1523_v29 }
 0x3e3   : > { %v1506_v61 = vpop.f32.mrf.mxu3  ;;  %v1487_v5 = vpop.f32.mrf.mxu2  ;;  %v1526_v2 = vadd.f32 %v7065_v40, %v1525_v57  ;;  %v6741_v57 = vld [vmem:[%s8900_s3 + $0x88] sm:$0xff] }
 0x3e4   : > { %v6743_v61 = vld [vmem:[%s8900_s3 + $0x98] sm:$0xff]  ;;  %v6745_v5 = vld [vmem:[%s8900_s3 + $0xa8] sm:$0xff]  ;;  %1792 = vmatpush.bf16.msra.mxu2 %v6741_v57 }
 0x3e5   : > { %v1527_v62 = vsel %vm573_vm0, %v1526_v2, 0.0  ;;  %v6753_v40 = vld [vmem:[%s8900_s3 + $0xe8] sm:$0xff]  ;;  %1817 = vmatpush.bf16.msra.mxu3 %v6743_v61  ;;  %1842 = vmatpush.bf16.msrb.mxu0 %v6745_v5 }
 0x3e6   : > { %1528 = vadd.xlane.f32.xlu1 %v1527_v62  ;;  %1942 = vmatpush.bf16.msrb.mxu1 %v6753_v40  ;;  %v6742_v62 = vld [vmem:[%s8900_s3 + $0x90] sm:$0xff] }
 0x3e9   : > { %1818 = vmatpush.bf16.msra.mxu3 %v6742_v62  ;;  %1843 = vmatpush.bf16.msrb.mxu0 %v6744_v63  ;;  %v6894_v63 = vld [vmem:[%s8901_s4 + $0xe] ss:$0 sm:$0xff] }
 0x3ea   : > { %1943 = vmatpush.bf16.msrb.mxu1 %v6752_v0 }
 0x3ed   : > { %1892 = vmatpush.bf16.msrb.mxu3 %v6749_v4 }
 0x459   : > { %v1529_v52 = vpop.xlane.xlu1 %1528 }
 0x45a   : > { %v1537_v10 = vmul.f32 %v7636_v8, %v1529_v52 }
 0x45c   : > { %v1538_v11 = vsub.f32 %v1526_v2, %v1537_v10  ;;  %v6740_v2 = vld [vmem:[%s8900_s3 + $0x80] sm:$0xff]  ;;  %v6746_v10 = vld [vmem:[%s8900_s3 + $0xb0] sm:$0xff] }
 0x45d   : > { %1793 = vmatpush.bf16.msra.mxu2 %v6740_v2 }
 0x45e   : > { %v1539_v13 = vmul.f32 %v1538_v11, %v1538_v11 }
 0x460   : > { %v1540_v14 = vsel %vm573_vm0, %v1539_v13, 0.0 }
 0x461   : > { %1541 = vadd.xlane.f32.xlu0 %v1540_v14  ;;  %1867 = vmatpush.bf16.msrb.mxu2 %v6747_v3  ;;  %v6750_v14 = vld [vmem:[%s8900_s3 + $0xd0] sm:$0xff] }
 0x465   : > { %1868 = vmatpush.bf16.msrb.mxu2 %v6746_v10 }
 0x4d4   : > { %v1542_v17 = vpop.xlane.xlu0 %1541 }
 0x4d5   : > { %v1543_v31 = vmul.f32 %v1542_v17, %v7636_v8 }
 0x4d7   : > { %v1544_v20 = vadd.f32 1e-05, %v1543_v31 }
 0x4d9   : > { %6953 = vrsqrt.f32 %v1544_v20  ;;  %vm1551_vm15 = vweird.f32 %v1544_v20 }
 0x4df   : > { %v6954_v23 = vpop.eup %6953 }
 0x4e0   : > { %v1546_v24 = vmul.f32 %v6954_v23, %v1544_v20  ;;  %vm1552_vm14 = vweird.f32 %v6954_v23  ;;  %v1700_v20 = vperm.slane %v7629_v53, 4  ;;  %v6754_v53 = vld [vmem:[%s8900_s3 + $0xf0] sm:$0xff] }
 0x4e1   : > { %vm1553_vm4 = vmor %vm1551_vm15, %vm1552_vm14 }
 0x4e2   : > { %v1547_v28 = vmul.f32 %v6954_v23, %v1546_v24 }
 0x4e4   : > { %v1548_v27 = vmul.f32 0.5, %v1547_v28 }
 0x4e6   : > { %v1549_v34 = vsub.f32 1.5, %v1548_v27  ;;  %v6755_v27 = vld [vmem:[%s8900_s3 + $0xf8] sm:$0xff] }
 0x4e8   : > { %v1550_v35 = vmul.f32 %v6954_v23, %v1549_v34 }
 0x4ea   : > { %v1554_v37 = vsel %vm1553_vm4, %v6954_v23, %v1550_v35  ;;  %v6895_v35 = vld [vmem:[%s8901_s4 + $0x8] ss:$0 sm:$0xff] }
 0x4eb   : > { %v1555_v44 = vmul.f32 %v1554_v37, %v1538_v11  ;;  %v6748_v11 = vld [vmem:[%s8900_s3 + $0xc0] sm:$0xff] }
 0x4ec   : > { %1893 = vmatpush.bf16.msrb.mxu3 %v6748_v11 }
 0x4ed   : > { %v1557_v41 = vmul.f32 %v1556_v19, %v1555_v44  ;;  %v6896_v19 = vld [vmem:[%s8901_s4 + $0x9] ss:$0 sm:$0xff] }
 0x4ef   : > { %v1559_v43 = vadd.f32 %v1558_v38, %v1557_v41 }
 0x4f1   : > { %v1564_v26 = vpack.c.bf16 %v1559_v43, %v1559_v43 }
 0x4f3   : > { %5902 = vmatmul.msk.bf16.vlgmr.msra.gmra.mxu0 %vm573_vm0, %v1564_v26 }
 0x4f4   : > { %1917 = vmatpush.bf16.msra.mxu0 %v6751_v7 }
 0x4f8   : > { %1918 = vmatpush.bf16.msra.mxu0 %v6750_v14 }
 0x570   : > { %v1593_v49 = vpop.f32.mrf.mxu0 }
 0x571   : > { %v1594_v50 = vadd.f32 %v6892_v47, %v1593_v49 }
 0x573   : > { %v1597_v45 = vmax.f32 %v1594_v50, 0.0 }
 0x575   : > { %v1614_v39 = vpack.c.bf16 %v1597_v45, %v1597_v45 }
 0x577   : > { %1672 = vmatmul.bf16.vlgmr.msra.gmra.mxu1 %v1614_v39 }
 0x578   : > { %v1595_v51 = vpop.f32.mrf.mxu0 }
 0x5f4   : > { %v1673_v9 = vpop.f32.mrf.mxu1 }
 0x5f5   : > { %v1674_v54 = vadd.f32 %v1673_v9, %v1615_v48  ;;  %v6898_v48 = vld [vmem:[%s8901_s4 + $0xb] ss:$0 sm:$0xff]  ;;  %v6899_v9 = vld [vmem:[%s8901_s4 + $0xc] ss:$0 sm:$0xff] }
 0x5f7   : > { %v1677_v55 = vadd.f32 %v1674_v54, %v1559_v43  ;;  %v6893_v54 = vld [vmem:[%s8901_s4 + $0xa] ss:$0 sm:$0xff] }
 0x5f9   : > { %v1678_v36 = vsel %vm573_vm0, %v1677_v55, 0.0 }
 0x5fa   : > { %1679 = vadd.xlane.f32.xlu2 %v1678_v36  ;;  %v6897_v36 = vld [vmem:[%s8901_s4 + $0xd] ss:$0 sm:$0xff] }
 0x5fc   : > { %v1675_v42 = vpop.f32.mrf.mxu1 }
 0x66d   : > { %v1680_v56 = vpop.xlane.xlu2 %1679 }
 0x66e   : > { %v1681_v58 = vmul.f32 %v1680_v56, %v7636_v8 }
 0x670   : > { %v1682_v59 = vsub.f32 %v1677_v55, %v1681_v58 }
 0x672   : > { %v1683_v29 = vmul.f32 %v1682_v59, %v1682_v59 }
 0x674   : > { %v1684_v60 = vsel %vm573_vm0, %v1683_v29, 0.0 }
 0x675   : > { %1685 = vadd.xlane.f32.xlu1 %v1684_v60 }
 0x6e8   : > { %v1686_v1 = vpop.xlane.xlu1 %1685 }
 0x6e9   : > { %v1687_v52 = vmul.f32 %v1686_v1, %v7636_v8 }
 0x6eb   : > { %v1688_v13 = vadd.f32 1e-05, %v1687_v52 }
 0x6ed   : > { %6955 = vrsqrt.f32 %v1688_v13  ;;  %vm1695_vm6 = vweird.f32 %v1688_v13 }
 0x6f3   : > { %v6956_v15 = vpop.eup %6955 }
 0x6f4   : > { %v1690_v12 = vmul.f32 %v6956_v15, %v1688_v13  ;;  %vm1696_vm5 = vweird.f32 %v6956_v15  ;;  %v6900_v13 = vld [vmem:[%s8901_s4 + $0xf] ss:$0 sm:$0xff] }
 0x6f5   : > { %vm1697_vm7 = vmor %vm1695_vm6, %vm1696_vm5 }
 0x6f6   : > { %v1691_v16 = vmul.f32 %v6956_v15, %v1690_v12 }
 0x6f8   : > { %v1692_v17 = vmul.f32 0.5, %v1691_v16 }
 0x6fa   : > { %v1693_v31 = vsub.f32 1.5, %v1692_v17 }
 0x6fc   : > { %v1694_v18 = vmul.f32 %v6956_v15, %v1693_v31 }
 0x6fe   : > { %v1698_v21 = vsel %vm1697_vm7, %v6956_v15, %v1694_v18 }
 0x6ff   : > { %v1699_v23 = vmul.f32 %v1698_v21, %v1682_v59 }
 0x701   : > { %v1701_v24 = vmul.f32 %v1700_v20, %v1699_v23 }
 0x703   : > { %v7726_v25 = vadd.f32 %v1702_v22, %v1701_v24 }
 0x705   : > { %v1704_v28 = vpack.c.bf16 %v7726_v25, %v7726_v25 }
 0x707   : > { %5983 = vmatmul.msk.bf16.vlgmr.msra.gmra.mxu2 %vm573_vm0, %v1704_v28  ;;  %5992 = vmatmul.msk.bf16.vlgmr.msra.gmra.mxu3 %vm573_vm0, %v1704_v28 }
 0x708   : > { %6001 = vmatmul.msk.bf16.vlgmr.msrb.gmra.mxu0 %vm573_vm0, %v1704_v28  ;;  %6037 = vmatmul.msk.bf16.vlgmr.msrb.gmra.mxu1 %vm573_vm0, %v1704_v28 }
 0x709   : > { %1967 = vmatpush.bf16.msra.mxu2 %v6755_v27 }
 0x70d   : > { %1968 = vmatpush.bf16.msra.mxu2 %v6754_v53 }
 0x717   : > { %6010 = vmatmul.msk.bf16.vlgmr.msrb.gmra.mxu2 %vm573_vm0, %v1704_v28  ;;  %6019 = vmatmul.msk.bf16.vlgmr.msrb.gmra.mxu3 %vm573_vm0, %v1704_v28 }
 0x718   : > { %6028 = vmatmul.msk.bf16.vlgmr.msra.gmra.mxu0 %vm573_vm0, %v1704_v28 }
 0x727   : > { %6046 = vmatmul.msk.bf16.vlgmr.msra.gmra.mxu2 %vm573_vm0, %v1704_v28 }
 0x785   : > { %v1845_v33 = vpop.f32.mrf.mxu0  ;;  %v1945_v34 = vpop.f32.mrf.mxu1 }
 0x786   : > { %v1846_v29 = vadd.f32 %v6893_v54, %v1845_v33  ;;  %v1946_v10 = vadd.f32 %v6894_v63, %v1945_v34 }
 0x788   : > { %v1976_v62 = vpack.c.bf16 %v1846_v29, %v1846_v29  ;;  %v1980_v15 = vpack.c.bf16 %v1946_v10, %v1946_v10 }
 0x78a   : > { %v1795_v37 = vpop.f32.mrf.mxu2  ;;  %v1820_v38 = vpop.f32.mrf.mxu3  ;;  %v2031_v52 = vunpack.c.l.b16 %v1976_v62  ;;  %v2127_v31 = vunpack.c.l.b16 %v1980_v15 }
 0x78b   : > { %v1796_v44 = vadd.f32 %v6895_v35, %v1795_v37  ;;  %v1821_v43 = vadd.f32 %v6896_v19, %v1820_v38 }
 0x78c   : > { %v7784_v14 = vpack.c.b16 %v2031_v52, %v2031_v52  ;;  %v7792_v21 = vpack.c.b16 %v2127_v31, %v2127_v31 }
 0x78d   : > { %v7750_v41 = vpack.c.bf16 %v1796_v44, %v1796_v44  ;;  %v1847_v26 = vpop.f32.mrf.mxu0  ;;  %v1947_v6 = vpop.f32.mrf.mxu1  ;;  %v7753_v49 = vpack.c.bf16 %v1821_v43, %v1821_v43 }
 0x78f   : > { %v1983_v46 = vunpack.c.l.b16 %v7750_v41  ;;  %v2007_v39 = vunpack.c.l.b16 %v7753_v49 }
 0x791   : > { %v1984_v47 = vpack.c.b16 %v1983_v46, %v1983_v46  ;;  %v7766_v55 = vpack.c.b16 %v2007_v39, %v2007_v39 }
 0x792   : > { %v1797_v50 = vpop.f32.mrf.mxu2  ;;  %v1822_v45 = vpop.f32.mrf.mxu3 }
 0x793   : > { %1985 = vrot.lane.b32.xlu0 %v1984_v47, %s7131_s19 }
 0x795   : > { %v1920_v51 = vpop.f32.mrf.mxu0 }
 0x796   : > { %v1921_v60 = vadd.f32 %v6897_v36, %v1920_v51 }
 0x798   : > { %v1979_v0 = vpack.c.bf16 %v1921_v60, %v1921_v60 }
 0x79a   : > { %v1870_v42 = vpop.f32.mrf.mxu2  ;;  %v1895_v56 = vpop.f32.mrf.mxu3  ;;  %v2103_v11 = vunpack.c.l.b16 %v1979_v0 }
 0x79b   : > { %v1871_v58 = vadd.f32 %v6898_v48, %v1870_v42  ;;  %v1896_v59 = vadd.f32 %v6899_v9, %v1895_v56  ;;  %2009 = vrot.lane.b32.xlu0 %v7766_v55, %s7131_s19 }
 0x79c   : > { %v7786_v12 = vpack.c.b16 %v2103_v11, %v2103_v11 }
 0x79d   : > { %v1977_v57 = vpack.c.bf16 %v1871_v58, %v1871_v58  ;;  %v1978_v61 = vpack.c.bf16 %v1896_v59, %v1896_v59  ;;  %v1922_v5 = vpop.f32.mrf.mxu0 }
 0x79f   : > { %v2055_v40 = vunpack.c.l.b16 %v1977_v57  ;;  %v2079_v2 = vunpack.c.l.b16 %v1978_v61 }
 0x7a1   : > { %v2056_v1 = vpack.c.b16 %v2055_v40, %v2055_v40  ;;  %v7776_v3 = vpack.c.b16 %v2079_v2, %v2079_v2 }
 0x7a2   : > { %v1872_v4 = vpop.f32.mrf.mxu2  ;;  %v1897_v7 = vpop.f32.mrf.mxu3 }
 0x7a3   : > { %2081 = vrot.lane.b32.xlu1 %v7776_v3, %s7131_s19  ;;  %2057 = vrot.lane.b32.xlu2 %v2056_v1, %s7131_s19 }
 0x7aa   : > { %v1970_v16 = vpop.f32.mrf.mxu2 }
 0x7ab   : > { %v1971_v17 = vadd.f32 %v6900_v13, %v1970_v16  ;;  %2105 = vrot.lane.b32.xlu1 %v7786_v12, %s7131_s19  ;;  %2033 = vrot.lane.b32.xlu2 %v7784_v14, %s7131_s19 }
 0x7ad   : > { %v1981_v18 = vpack.c.bf16 %v1971_v17, %v1971_v17 }
 0x7af   : > { %v2151_v20 = vunpack.c.l.b16 %v1981_v18 }
 0x7b1   : > { %v7794_v22 = vpack.c.b16 %v2151_v20, %v2151_v20 }
 0x7b2   : > { %v1972_v23 = vpop.f32.mrf.mxu2 }
 0x7b3   : > { %2129 = vrot.lane.b32.xlu2 %v7792_v21, %s7131_s19  ;;  %2374 = vrot.lane.b32.xlu1 %v1984_v47, %s7132_s24 }
 0x7b4   : > { %2153 = vrot.lane.b32.xlu0 %v7794_v22, %s7131_s19 }
 0x7bc   : > { %2437 = vrot.lane.b32.xlu0 %v2056_v1, %s7132_s24 }
 0x7fd   : > { %v2058_v24 = vpop.permute.xlu2 %2057 }
 0x7fe   : > { %v2063_v28 = vsel %vm781_vm1, %v2058_v24, 0 }
 0x7ff   : > { %2072 = vmatpush.bf16.xpose.msrb.mxu2 %v2063_v28 }
 0x805   : > { %v2034_v27 = vpop.permute.xlu2 %2033  ;;  %v1986_v53 = vpop.permute.xlu0 %1985 }
 0x806   : > { %v2039_v33 = vsel %vm781_vm1, %v2034_v27, 0  ;;  %v1991_v34 = vsel %vm781_vm1, %v1986_v53, 0  ;;  %6050 = vmatmul.msk.bf16.vlgmr.msrb.gmra.mxu2 %vm781_vm1, %v1977_v57 }
 0x807   : > { %2000 = vmatpush.bf16.xpose.msra.mxu3 %v1991_v34  ;;  %2048 = vmatpush.bf16.xpose.msra.mxu1 %v2039_v33 }
 0x80d   : > { %v2130_v35 = vpop.permute.xlu2 %2129  ;;  %v2010_v19 = vpop.permute.xlu0 %2009 }
 0x80e   : > { %v2135_v37 = vsel %vm781_vm1, %v2130_v35, 0  ;;  %v2015_v38 = vsel %vm781_vm1, %v2010_v19, 0  ;;  %6047 = vmatmul.msk.bf16.vlgmr.msra.gmra.mxu3 %vm781_vm1, %v7750_v41  ;;  %6049 = vmatmul.msk.bf16.vlgmr.msra.gmra.mxu1 %vm781_vm1, %v1976_v62 }
 0x80f   : > { %2024 = vmatpush.bf16.xpose.msrb.mxu0 %v2015_v38  ;;  %2144 = vmatpush.bf16.xpose.msrb.mxu1 %v2135_v37 }
 0x815   : > { %v2082_v44 = vpop.permute.xlu1 %2081 }
 0x816   : > { %v2087_v43 = vsel %vm781_vm1, %v2082_v44, 0  ;;  %6048 = vmatmul.msk.bf16.vlgmr.msrb.gmra.mxu0 %vm781_vm1, %v7753_v49 }
 0x817   : > { %2096 = vmatpush.bf16.xpose.msrb.mxu3 %v2087_v43 }
 0x81d   : > { %v2106_v26 = vpop.permute.xlu1 %2105 }
 0x81e   : > { %v2111_v6 = vsel %vm781_vm1, %v2106_v26, 0  ;;  %6051 = vmatmul.msk.bf16.vlgmr.msrb.gmra.mxu3 %vm781_vm1, %v1978_v61  ;;  %6053 = vmatmul.msk.bf16.vlgmr.msrb.gmra.mxu1 %vm781_vm1, %v1980_v15 }
 0x81f   : > { %2120 = vmatpush.bf16.xpose.msra.mxu0 %v2111_v6 }
 0x825   : > { %v2375_v41 = vpop.permute.xlu1 %2374 }
 0x826   : > { %v2380_v46 = vsel %vm1175_vm2, %v2375_v41, 0  ;;  %v2154_v47 = vpop.permute.xlu0 %2153  ;;  %6052 = vmatmul.msk.bf16.vlgmr.msra.gmra.mxu0 %vm781_vm1, %v1979_v0 }
 0x827   : > { %v2159_v50 = vsel %vm781_vm1, %v2154_v47, 0  ;;  %2389 = vmatpush.bf16.msra.mxu3 %v2380_v46 }
 0x828   : > { %2168 = vmatpush.bf16.xpose.msra.mxu2 %v2159_v50 }
 0x82e   : > { %v2438_v49 = vpop.permute.xlu0 %2437 }
 0x82f   : > { %v2443_v45 = vsel %vm1175_vm2, %v2438_v49, 0  ;;  %6054 = vmatmul.msk.bf16.vlgmr.msra.gmra.mxu2 %vm781_vm1, %v1981_v18 }
 0x830   : > { %2452 = vmatpush.bf16.msrb.mxu2 %v2443_v45 }
 0x889   : > { %v2074_v39 = vpop.f32.mrf.mxu2 }
 0x88a   : > { %v2075_v63 = vadd.f32 %v2074_v39, %v7422_v32 }
 0x88b   : > { %v2050_v51 = vpop.f32.mrf.mxu1 }
 0x88c   : > { %v2051_v48 = vadd.f32 %v2050_v51, %v7422_v32  ;;  %v2183_v7 = vsel %vm969_vm3, %v2075_v63, -inf }
 0x88e   : > { %v2180_v9 = vsel %vm969_vm3, %v2051_v48, -inf }
 0x88f   : > { %2181 = vmax.xlane.f32.xlu0 %v2180_v9 }
 0x891   : > { %v2002_v54 = vpop.f32.mrf.mxu3  ;;  %v2076_v36 = vpop.f32.mrf.mxu2 }
 0x892   : > { %v2003_v42 = vadd.f32 %v2002_v54, %v7422_v32 }
 0x893   : > { %v2026_v56 = vpop.f32.mrf.mxu0  ;;  %v2052_v58 = vpop.f32.mrf.mxu1 }
 0x894   : > { %v2027_v59 = vadd.f32 %v2026_v56, %v7422_v32  ;;  %v2174_v29 = vsel %vm969_vm3, %v2003_v42, -inf }
 0x896   : > { %v2177_v60 = vsel %vm969_vm3, %v2027_v59, -inf }
 0x897   : > { %2175 = vmax.xlane.f32.xlu0 %v2174_v29  ;;  %2178 = vmax.xlane.f32.xlu2 %v2177_v60 }
 0x899   : > { %v2004_v57 = vpop.f32.mrf.mxu3 }
 0x89b   : > { %v2028_v61 = vpop.f32.mrf.mxu0  ;;  %v2146_v5 = vpop.f32.mrf.mxu1 }
 0x89c   : > { %v2147_v40 = vadd.f32 %v2146_v5, %v7422_v32 }
 0x89e   : > { %v2192_v2 = vsel %vm969_vm3, %v2147_v40, -inf }
 0x89f   : > { %2193 = vmax.xlane.f32.xlu1 %v2192_v2 }
 0x8a1   : > { %v2098_v62 = vpop.f32.mrf.mxu3 }
 0x8a2   : > { %v2099_v11 = vadd.f32 %v2098_v62, %v7422_v32 }
 0x8a3   : > { %v2122_v0 = vpop.f32.mrf.mxu0  ;;  %v2148_v1 = vpop.f32.mrf.mxu1 }
 0x8a4   : > { %v2123_v4 = vadd.f32 %v2122_v0, %v7422_v32  ;;  %v2186_v15 = vsel %vm969_vm3, %v2099_v11, -inf }
 0x8a6   : > { %v2189_v52 = vsel %vm969_vm3, %v2123_v4, -inf }
 0x8a7   : > { %2184 = vmax.xlane.f32.xlu1 %v2183_v7  ;;  %2190 = vmax.xlane.f32.xlu0 %v2189_v52 }
 0x8a9   : > { %v2100_v10 = vpop.f32.mrf.mxu3 }
 0x8ab   : > { %v2124_v13 = vpop.f32.mrf.mxu0 }
 0x8af   : > { %2187 = vmax.xlane.f32.xlu1 %v2186_v15 }
 0x8b2   : > { %v2170_v16 = vpop.f32.mrf.mxu2 }
 0x8b3   : > { %v2171_v17 = vadd.f32 %v2170_v16, %v7422_v32 }
 0x8b5   : > { %v2195_v31 = vsel %vm969_vm3, %v2171_v17, -inf }
 0x8b6   : > { %2196 = vmax.xlane.f32.xlu2 %v2195_v31 }
 0x8ba   : > { %v2172_v18 = vpop.f32.mrf.mxu2 }
 0x8bb   : > { %2416 = vrot.lane.b32.xlu0 %v7784_v14, %s7132_s24 }
 0x8c8   : > { %2395 = vrot.lane.b32.xlu1 %v7766_v55, %s7132_s24 }
 0x902   : > { %v2182_v20 = vpop.xlane.xlu0 %2181 }
 0x903   : > { %v2200_v23 = vsub.f32 %v2051_v48, %v2182_v20 }
 0x905   : > { %v2210_v24 = vmul.f32 1.442695, %v2200_v23 }
 0x907   : > { %6957 = vpow2.f32 %v2210_v24 }
 0x90a   : > { %v2179_v28 = vpop.xlane.xlu2 %2178  ;;  %v2176_v27 = vpop.xlane.xlu0 %2175 }
 0x90b   : > { %v2199_v53 = vsub.f32 %v2027_v59, %v2179_v28  ;;  %v2198_v33 = vsub.f32 %v2003_v42, %v2176_v27 }
 0x90d   : > { %v7842_v34 = vpop.eup %6957  ;;  %v2208_v35 = vmul.f32 1.442695, %v2199_v53  ;;  %v2206_v19 = vmul.f32 1.442695, %v2198_v33 }
 0x90e   : > { %v2228_v37 = vsel %vm969_vm3, %v7842_v34, 0.0 }
 0x90f   : > { %6959 = vpow2.f32 %v2208_v35  ;;  %2229 = vadd.xlane.f32.xlu2 %v2228_v37 }
 0x910   : > { %6961 = vpow2.f32 %v2206_v19 }
 0x912   : > { %v2194_v14 = vpop.xlane.xlu1 %2193 }
 0x913   : > { %v2204_v55 = vsub.f32 %v2147_v40, %v2194_v14 }
 0x915   : > { %v7846_v38 = vpop.eup %6959  ;;  %v2218_v44 = vmul.f32 1.442695, %v2204_v55 }
 0x916   : > { %v7848_v43 = vpop.eup %6961  ;;  %v2225_v26 = vsel %vm969_vm3, %v7846_v38, 0.0 }
 0x917   : > { %6963 = vpow2.f32 %v2218_v44  ;;  %2226 = vadd.xlane.f32.xlu1 %v2225_v26  ;;  %v2222_v6 = vsel %vm969_vm3, %v7848_v43, 0.0 }
 0x918   : > { %2223 = vadd.xlane.f32.xlu2 %v2222_v6 }
 0x91a   : > { %v2185_v41 = vpop.xlane.xlu1 %2184  ;;  %v2191_v46 = vpop.xlane.xlu0 %2190 }
 0x91b   : > { %v2201_v47 = vsub.f32 %v2075_v63, %v2185_v41  ;;  %v2203_v50 = vsub.f32 %v2123_v4, %v2191_v46 }
 0x91d   : > { %v7854_v49 = vpop.eup %6963  ;;  %v2212_v45 = vmul.f32 1.442695, %v2201_v47  ;;  %v2216_v39 = vmul.f32 1.442695, %v2203_v50 }
 0x91e   : > { %v2240_v51 = vsel %vm969_vm3, %v7854_v49, 0.0 }
 0x91f   : > { %6965 = vpow2.f32 %v2212_v45 }
 0x920   : > { %6967 = vpow2.f32 %v2216_v39  ;;  %2241 = vadd.xlane.f32.xlu2 %v2240_v51 }
 0x922   : > { %v2188_v48 = vpop.xlane.xlu1 %2187 }
 0x923   : > { %v2202_v9 = vsub.f32 %v2099_v11, %v2188_v48 }
 0x925   : > { %v7858_v54 = vpop.eup %6965  ;;  %v2214_v36 = vmul.f32 1.442695, %v2202_v9 }
 0x926   : > { %v7860_v42 = vpop.eup %6967  ;;  %v2231_v56 = vsel %vm969_vm3, %v7858_v54, 0.0 }
 0x927   : > { %6969 = vpow2.f32 %v2214_v36  ;;  %2232 = vadd.xlane.f32.xlu0 %v2231_v56  ;;  %v2237_v58 = vsel %vm969_vm3, %v7860_v42, 0.0 }
 0x928   : > { %2238 = vadd.xlane.f32.xlu2 %v2237_v58 }
 0x929   : > { %v2197_v59 = vpop.xlane.xlu2 %2196 }
 0x92a   : > { %v2205_v29 = vsub.f32 %v2171_v17, %v2197_v59 }
 0x92c   : > { %v2220_v60 = vmul.f32 1.442695, %v2205_v29 }
 0x92d   : > { %v7866_v57 = vpop.eup %6969  ;;  %v2417_v61 = vpop.permute.xlu0 %2416 }
 0x92e   : > { %6971 = vpow2.f32 %v2220_v60  ;;  %v2422_v5 = vsel %vm1175_vm2, %v2417_v61, 0  ;;  %v2234_v40 = vsel %vm969_vm3, %v7866_v57, 0.0 }
 0x92f   : > { %2235 = vadd.xlane.f32.xlu0 %v2234_v40  ;;  %2431 = vmatpush.bf16.msra.mxu1 %v2422_v5 }
 0x930   : > { %2521 = vrot.lane.b32.xlu1 %v7794_v22, %s7132_s24 }
 0x934   : > { %v7873_v2 = vpop.eup %6971 }
 0x935   : > { %v2243_v62 = vsel %vm969_vm3, %v7873_v2, 0.0 }
 0x936   : > { %2244 = vadd.xlane.f32.xlu2 %v2243_v62 }
 0x938   : > { %2500 = vrot.lane.b32.xlu1 %v7792_v21, %s7132_s24 }
 0x93a   : > { %v2396_v63 = vpop.permute.xlu1 %2395 }
 0x93b   : > { %v2401_v0 = vsel %vm1175_vm2, %v2396_v63, 0 }
 0x93c   : > { %2410 = vmatpush.bf16.msrb.mxu0 %v2401_v0 }
 0x943   : > { %2479 = vrot.lane.b32.xlu0 %v7786_v12, %s7132_s24 }
 0x94e   : > { %2458 = vrot.lane.b32.xlu2 %v7776_v3, %s7132_s24 }
 0x982   : > { %v2230_v22 = vpop.xlane.xlu2 %2229 }
 0x983   : > { %6973 = vrcp.f32 %v2230_v22  ;;  %v2287_v21 = vand.u32 2147483648, %v2230_v22  ;;  %v2285_v13 = vand.u32 2147483647, %v2230_v22  ;;  %vm2281_vm9 = vweird.f32 %v2230_v22 }
 0x985   : > { %v2288_v12 = vor.u32 1.1754944e-38, %v2287_v21  ;;  %vm2286_vm11 = vcmp.eq.f32.partialorder %v2285_v13, 8.507059e+37 }
 0x989   : > { %v6974_v1 = vpop.eup %6973 }
 0x98a   : > { %v2277_v4 = vmul.f32 %v6974_v1, %v2230_v22  ;;  %v2227_v7 = vpop.xlane.xlu1 %2226  ;;  %vm2282_vm8 = vweird.f32 %v6974_v1 }
 0x98b   : > { %6975 = vrcp.f32 %v2227_v7  ;;  %v2224_v52 = vpop.xlane.xlu2 %2223  ;;  %vm2283_vm10 = vmor %vm2281_vm9, %vm2282_vm8  ;;  %v2270_v27 = vand.u32 2147483647, %v2227_v7  ;;  %v2272_v53 = vand.u32 2147483648, %v2227_v7  ;;  %vm2266_vm15 = vweird.f32 %v2227_v7 }
 0x98c   : > { %v2278_v10 = vsub.f32 1.0, %v2277_v4  ;;  %6977 = vrcp.f32 %v2224_v52  ;;  %v2257_v37 = vand.u32 2147483648, %v2224_v52  ;;  %v2255_v55 = vand.u32 2147483647, %v2224_v52 }
 0x98d   : > { %v2273_v26 = vor.u32 1.1754944e-38, %v2272_v53  ;;  %vm2251_vm5 = vweird.f32 %v2224_v52  ;;  %vm2271_vm6 = vcmp.eq.f32.partialorder %v2270_v27, 8.507059e+37 }
 0x98e   : > { %v2279_v11 = vmul.f32 %v6974_v1, %v2278_v10  ;;  %v2258_v46 = vor.u32 1.1754944e-38, %v2257_v37  ;;  %vm2256_vm8 = vcmp.eq.f32.partialorder %v2255_v55, 8.507059e+37 }
 0x990   : > { %v2280_v15 = vadd.f32 %v6974_v1, %v2279_v11 }
 0x991   : > { %v6976_v16 = vpop.eup %6975 }
 0x992   : > { %v6978_v17 = vpop.eup %6977  ;;  %v2284_v3 = vsel %vm2283_vm10, %v6974_v1, %v2280_v15  ;;  %v2262_v31 = vmul.f32 %v6976_v16, %v2227_v7  ;;  %vm2267_vm13 = vweird.f32 %v6976_v16 }
 0x993   : > { %v2289_v18 = vsel %vm2286_vm11, %v2288_v12, %v2284_v3  ;;  %v2247_v20 = vmul.f32 %v6978_v17, %v2224_v52  ;;  %v2242_v23 = vpop.xlane.xlu2 %2241  ;;  %vm2252_vm14 = vweird.f32 %v6978_v17  ;;  %vm2268_vm4 = vmor %vm2266_vm15, %vm2267_vm13 }
 0x994   : > { %v2290_v24 = vmul.f32 %v7842_v34, %v2289_v18  ;;  %v2263_v28 = vsub.f32 1.0, %v2262_v31  ;;  %6979 = vrcp.f32 %v2242_v23  ;;  %vm2253_vm7 = vmor %vm2251_vm5, %vm2252_vm14  ;;  %v2347_v61 = vand.u32 2147483648, %v2242_v23 }
 0x995   : > { %v2248_v33 = vsub.f32 1.0, %v2247_v20  ;;  %vm2341_vm10 = vweird.f32 %v2242_v23 }
 0x996   : > { %v2368_v35 = vpack.c.bf16 %v2290_v24, %v2290_v24  ;;  %v2264_v19 = vmul.f32 %v6976_v16, %v2263_v28  ;;  %v2348_v1 = vor.u32 1.1754944e-38, %v2347_v61 }
 0x997   : > { %v2249_v14 = vmul.f32 %v6978_v17, %v2248_v33 }
 0x998   : > { %v2265_v44 = vadd.f32 %v6976_v16, %v2264_v19  ;;  %6057 = vmatmul.msk.bf16.vlgmr.msra.gmra.mxu1 %vm969_vm3, %v2368_v35 }
 0x999   : > { %v2250_v6 = vadd.f32 %v6978_v17, %v2249_v14 }
 0x99a   : > { %v6980_v34 = vpop.eup %6979  ;;  %v2269_v41 = vsel %vm2268_vm4, %v6976_v16, %v2265_v44  ;;  %v7886_v47 = vpop.xlane.xlu0 %2232 }
 0x99b   : > { %v2274_v50 = vsel %vm2271_vm6, %v2273_v26, %v2269_v41  ;;  %v2254_v45 = vsel %vm2253_vm7, %v6978_v17, %v2250_v6  ;;  %v2337_v39 = vmul.f32 %v6980_v34, %v2242_v23  ;;  %v7888_v51 = vpop.xlane.xlu2 %2238  ;;  %vm2342_vm9 = vweird.f32 %v6980_v34 }
 0x99c   : > { %v2275_v48 = vmul.f32 %v7846_v38, %v2274_v50  ;;  %v2259_v9 = vsel %vm2256_vm8, %v2258_v46, %v2254_v45  ;;  %6981 = vrcp.f32 %v7888_v51  ;;  %v2345_v38 = vand.u32 2147483647, %v2242_v23  ;;  %vm2343_vm11 = vmor %vm2341_vm10, %vm2342_vm9 }
 0x99d   : > { %v2260_v36 = vmul.f32 %v7848_v43, %v2259_v9  ;;  %v2338_v56 = vsub.f32 1.0, %v2337_v39  ;;  %6983 = vrcp.f32 %v7886_v47  ;;  %v2302_v11 = vand.u32 2147483648, %v7886_v47 }
 0x99e   : > { %v2367_v58 = vpack.c.bf16 %v2275_v48, %v2275_v48  ;;  %vm2346_vm13 = vcmp.eq.f32.partialorder %v2345_v38, 8.507059e+37  ;;  %v2332_v13 = vand.u32 2147483648, %v7888_v51  ;;  %v2300_v16 = vand.u32 2147483647, %v7886_v47 }
 0x99f   : > { %v2366_v59 = vpack.c.bf16 %v2260_v36, %v2260_v36  ;;  %v2339_v29 = vmul.f32 %v6980_v34, %v2338_v56  ;;  %vm2296_vm4 = vweird.f32 %v7886_v47  ;;  %vm2326_vm5 = vweird.f32 %v7888_v51 }
 0x9a0   : > { %6056 = vmatmul.msk.bf16.vlgmr.msrb.gmra.mxu0 %vm969_vm3, %v2367_v58  ;;  %v2330_v24 = vand.u32 2147483647, %v7888_v51  ;;  %v2303_v28 = vor.u32 1.1754944e-38, %v2302_v11  ;;  %v2333_v53 = vor.u32 1.1754944e-38, %v2332_v13  ;;  %vm2301_vm8 = vcmp.eq.f32.partialorder %v2300_v16, 8.507059e+37 }
 0x9a1   : > { %v2340_v60 = vadd.f32 %v6980_v34, %v2339_v29  ;;  %6055 = vmatmul.msk.bf16.vlgmr.msra.gmra.mxu3 %vm969_vm3, %v2366_v59  ;;  %v6066_v13 = vld [vmem:[%s8902_s5 + $0x16] sm:$0x3]  ;;  %v6068_v16 = vld [vmem:[%s8902_s5 + $0x1a] sm:$0x3] }
 0x9a2   : > { %v6982_v5 = vpop.eup %6981  ;;  %v2522_v40 = vpop.permute.xlu1 %2521  ;;  %vm2331_vm10 = vcmp.eq.f32.partialorder %v2330_v24, 8.507059e+37 }
 0x9a3   : > { %v7896_v62 = vpop.xlane.xlu0 %2235  ;;  %v2322_v43 = vmul.f32 %v6982_v5, %v7888_v51  ;;  %v2527_v63 = vsel %vm1175_vm2, %v2522_v40, 0  ;;  %v6984_v0 = vpop.eup %6983  ;;  %v2344_v22 = vsel %vm2343_vm11, %v6980_v34, %v2340_v60  ;;  %vm2327_vm15 = vweird.f32 %v6982_v5 }
 0x9a4   : > { %6985 = vrcp.f32 %v7896_v62  ;;  %2536 = vmatpush.bf16.msra.mxu2 %v2527_v63  ;;  %v2292_v7 = vmul.f32 %v6984_v0, %v7886_v47  ;;  %v2349_v52 = vsel %vm2346_vm13, %v2348_v1, %v2344_v22  ;;  %vm2297_vm14 = vweird.f32 %v6984_v0  ;;  %vm7914_vm7 = vmor %vm2326_vm5, %vm2327_vm15  ;;  %v6064_v1 = vld [vmem:[%s8902_s5 + $0x12] sm:$0x3] }
 0x9a5   : > { %v2323_v4 = vsub.f32 1.0, %v2322_v43  ;;  %v2350_v3 = vmul.f32 %v7854_v49, %v2349_v52  ;;  %vm2298_vm6 = vmor %vm2296_vm4, %vm2297_vm14  ;;  %v2317_v55 = vand.u32 2147483648, %v7896_v62  ;;  %v2315_v6 = vand.u32 2147483647, %v7896_v62  ;;  %v6069_v52 = vld [vmem:[%s8902_s5 + $0x1c] sm:$0x3] }
 0x9a6   : > { %v2293_v21 = vsub.f32 1.0, %v2292_v7  ;;  %vm2311_vm11 = vweird.f32 %v7896_v62 }
 0x9a7   : > { %v2324_v10 = vmul.f32 %v6982_v5, %v2323_v4  ;;  %v2372_v19 = vpack.c.bf16 %v2350_v3, %v2350_v3  ;;  %v2318_v39 = vor.u32 1.1754944e-38, %v2317_v55  ;;  %vm2316_vm14 = vcmp.eq.f32.partialorder %v2315_v6, 8.507059e+37 }
 0x9a8   : > { %v2294_v15 = vmul.f32 %v6984_v0, %v2293_v21  ;;  %v2582_v4 = vsel %vm1358_vm12, %v6064_v1, 0 }
 0x9a9   : > { %v7905_v12 = vpop.xlane.xlu2 %2244  ;;  %v2325_v31 = vadd.f32 %v6982_v5, %v2324_v10  ;;  %v2677_v10 = vsel %vm1358_vm12, %v6069_v52, 0 }
 0x9aa   : > { %v6986_v17 = vpop.eup %6985  ;;  %6987 = vrcp.f32 %v7905_v12  ;;  %v2501_v18 = vpop.permute.xlu1 %2500  ;;  %v2295_v20 = vadd.f32 %v6984_v0, %v2294_v15  ;;  %v2362_v56 = vand.u32 2147483648, %v7905_v12  ;;  %v2360_v29 = vand.u32 2147483647, %v7905_v12 }
 0x9ab   : > { %v2307_v23 = vmul.f32 %v6986_v17, %v7896_v62  ;;  %v2506_v27 = vsel %vm1175_vm2, %v2501_v18, 0  ;;  %v2329_v37 = vsel %vm7914_vm7, %v6982_v5, %v2325_v31  ;;  %vm2312_vm9 = vweird.f32 %v6986_v17  ;;  %v6067_v18 = vld [vmem:[%s8902_s5 + $0x18] sm:$0x3] }
 0x9ac   : > { %v2299_v33 = vsel %vm2298_vm6, %v6984_v0, %v2295_v20  ;;  %2515 = vmatpush.bf16.msrb.mxu1 %v2506_v27  ;;  %v2334_v41 = vsel %vm2331_vm10, %v2333_v53, %v2329_v37  ;;  %vm2313_vm13 = vmor %vm2311_vm11, %vm2312_vm9  ;;  %vm2356_vm4 = vweird.f32 %v7905_v12  ;;  %vm2361_vm6 = vcmp.eq.f32.partialorder %v2360_v29, 8.507059e+37  ;;  %v6065_v0 = vld [vmem:[%s8902_s5 + $0x14] sm:$0x3]  ;;  %v6070_v27 = vld [vmem:[%s8902_s5 + $0x1e] sm:$0x3] }
 0x9ad   : > { %v2308_v35 = vsub.f32 1.0, %v2307_v23  ;;  %v2304_v14 = vsel %vm2301_vm8, %v2303_v28, %v2299_v33  ;;  %v2335_v9 = vmul.f32 %v7860_v42, %v2334_v41  ;;  %v2363_v42 = vor.u32 1.1754944e-38, %v2362_v56 }
 0x9ae   : > { %v2305_v44 = vmul.f32 %v7858_v54, %v2304_v14  ;;  %v2601_v22 = vsel %vm1358_vm12, %v6065_v0, 0  ;;  %v2620_v15 = vsel %vm1358_vm12, %v6066_v13, 0  ;;  %v2639_v20 = vsel %vm1358_vm12, %v6067_v18, 0 }
 0x9af   : > { %v2309_v26 = vmul.f32 %v6986_v17, %v2308_v35  ;;  %6061 = vmatmul.msk.bf16.vlgmr.msrb.gmra.mxu1 %vm969_vm3, %v2372_v19  ;;  %v2371_v40 = vpack.c.bf16 %v2335_v9, %v2335_v9  ;;  %v2696_v49 = vsel %vm1358_vm12, %v6070_v27, 0  ;;  %v6765_v27 = vld [vmem:[%s8904_s7 + $0x78] sm:$0xff] }
 0x9b0   : > { %v6988_v34 = vpop.eup %6987  ;;  %v2369_v46 = vpack.c.bf16 %v2305_v44, %v2305_v44  ;;  %2610 = vmatpush.bf16.msra.mxu1 %v2601_v22 }
 0x9b1   : > { %v2310_v47 = vadd.f32 %v6986_v17, %v2309_v26  ;;  %v2352_v50 = vmul.f32 %v6988_v34, %v7905_v12  ;;  %v2459_v45 = vpop.permute.xlu2 %2458  ;;  %vm2357_vm15 = vweird.f32 %v6988_v34  ;;  %v2658_v12 = vsel %vm1358_vm12, %v6068_v16, 0 }
 0x9b2   : > { %v2464_v54 = vsel %vm1175_vm2, %v2459_v45, 0  ;;  %6058 = vmatmul.msk.bf16.vlgmr.msrb.gmra.mxu2 %vm969_vm3, %v2369_v46  ;;  %vm2358_vm5 = vmor %vm2356_vm4, %vm2357_vm15 }
 0x9b3   : > { %v2314_v51 = vsel %vm2313_vm13, %v6986_v17, %v2310_v47  ;;  %v2353_v48 = vsub.f32 1.0, %v2352_v50  ;;  %2473 = vmatpush.bf16.msrb.mxu3 %v2464_v54  ;;  %2629 = vmatpush.bf16.msrb.mxu2 %v2620_v15 }
 0x9b4   : > { %v2319_v36 = vsel %vm2316_vm14, %v2318_v39, %v2314_v51  ;;  %2686 = vmatpush.bf16.msrb.mxu1 %v2677_v10 }
 0x9b5   : > { %v2320_v58 = vmul.f32 %v7866_v57, %v2319_v36  ;;  %v2354_v59 = vmul.f32 %v6988_v34, %v2353_v48  ;;  %v2480_v60 = vpop.permute.xlu0 %2479 }
 0x9b6   : > { %v2485_v61 = vsel %vm1175_vm2, %v2480_v60, 0 }
 0x9b7   : > { %v2370_v5 = vpack.c.bf16 %v2320_v58, %v2320_v58  ;;  %v2355_v38 = vadd.f32 %v6988_v34, %v2354_v59  ;;  %2494 = vmatpush.bf16.msra.mxu0 %v2485_v61 }
 0x9b9   : > { %v2359_v62 = vsel %vm2358_vm5, %v6988_v34, %v2355_v38  ;;  %6059 = vmatmul.msk.bf16.vlgmr.msrb.gmra.mxu3 %vm969_vm3, %v2370_v5 }
 0x9ba   : > { %v2364_v57 = vsel %vm2361_vm6, %v2363_v42, %v2359_v62  ;;  %6060 = vmatmul.msk.bf16.vlgmr.msra.gmra.mxu0 %vm969_vm3, %v2371_v40 }
 0x9bb   : > { %v2365_v43 = vmul.f32 %v7873_v2, %v2364_v57  ;;  %2591 = vmatpush.bf16.msrb.mxu0 %v2582_v4  ;;  %v6063_v2 = vld [vmem:[%s8902_s5 + $0x10] sm:$0x3] }
 0x9bc   : > { %v2563_v7 = vsel %vm1358_vm12, %v6063_v2, 0  ;;  %v7987_v2 = vld [vmem:[%s8906_s9 + $0x8] sm:$0xff] }
 0x9bd   : > { %v2373_v63 = vpack.c.bf16 %v2365_v43, %v2365_v43  ;;  %2572 = vmatpush.bf16.msra.mxu3 %v2563_v7 }
 0x9bf   : > { %2667 = vmatpush.bf16.msra.mxu0 %v2658_v12 }
 0x9c1   : > { %2648 = vmatpush.bf16.msrb.mxu3 %v2639_v20 }
 0x9c2   : > { %6062 = vmatmul.msk.bf16.vlgmr.msra.gmra.mxu2 %vm969_vm3, %v2373_v63 }
 0x9c3   : > { %2705 = vmatpush.bf16.msra.mxu2 %v2696_v49 }
 0xa15   : > { %v2433_v21 = vpop.f32.mrf.mxu1 }
 0xa16   : > { %v2544_v11 = vpack.c.bf16 %v2433_v21, %v2433_v21 }
 0xa18   : > { %6073 = vmatmul.msk.bf16.vlgmr.msra.gmra.mxu1 %vm781_vm1, %v2544_v11  ;;  %v2728_v11 = vperm.slane %v7987_v2, 0 }
 0xa1d   : > { %v2412_v17 = vpop.f32.mrf.mxu0  ;;  %v2435_v3 = vpop.f32.mrf.mxu1 }
 0xa1e   : > { %v2543_v31 = vpack.c.bf16 %v2412_v17, %v2412_v17 }
 0xa20   : > { %6072 = vmatmul.msk.bf16.vlgmr.msrb.gmra.mxu0 %vm781_vm1, %v2543_v31 }
 0xa21   : > { %2864 = vmatpush.bf16.msrb.mxu0 %v6765_v27 }
 0xa24   : > { %v2391_v23 = vpop.f32.mrf.mxu3 }
 0xa25   : > { %v2542_v24 = vpack.c.bf16 %v2391_v23, %v2391_v23  ;;  %v2414_v28 = vpop.f32.mrf.mxu0 }
 0xa26   : > { %v6757_v28 = vld [vmem:[%s8903_s6 + $0x18] sm:$0xff] }
 0xa27   : > { %6071 = vmatmul.msk.bf16.vlgmr.msra.gmra.mxu3 %vm781_vm1, %v2542_v24 }
 0xa28   : > { %2789 = vmatpush.bf16.msra.mxu3 %v6757_v28 }
 0xa2c   : > { %v2393_v53 = vpop.f32.mrf.mxu3  ;;  %v2517_v33 = vpop.f32.mrf.mxu1 }
 0xa2d   : > { %v2548_v35 = vpack.c.bf16 %v2517_v33, %v2517_v33  ;;  %v6764_v33 = vld [vmem:[%s8904_s7 + $0x70] sm:$0xff] }
 0xa2e   : > { %2865 = vmatpush.bf16.msrb.mxu0 %v6764_v33 }
 0xa2f   : > { %6077 = vmatmul.msk.bf16.vlgmr.msrb.gmra.mxu1 %vm781_vm1, %v2548_v35 }
 0xa34   : > { %v2519_v19 = vpop.f32.mrf.mxu1 }
 0xa35   : > { %v2454_v37 = vpop.f32.mrf.mxu2  ;;  %v6763_v19 = vld [vmem:[%s8904_s7 + $0x68] sm:$0xff] }
 0xa36   : > { %v2545_v14 = vpack.c.bf16 %v2454_v37, %v2454_v37  ;;  %2866 = vmatpush.bf16.msrb.mxu0 %v6763_v19  ;;  %v6762_v37 = vld [vmem:[%s8904_s7 + $0x60] sm:$0xff] }
 0xa37   : > { %v2496_v55 = vpop.f32.mrf.mxu0 }
 0xa38   : > { %v2547_v44 = vpack.c.bf16 %v2496_v55, %v2496_v55  ;;  %6074 = vmatmul.msk.bf16.vlgmr.msrb.gmra.mxu2 %vm781_vm1, %v2545_v14 }
 0xa3a   : > { %6076 = vmatmul.msk.bf16.vlgmr.msra.gmra.mxu0 %vm781_vm1, %v2547_v44  ;;  %v6761_v44 = vld [vmem:[%s8904_s7 + $0x58] sm:$0xff] }
 0xa3b   : > { %2867 = vmatpush.bf16.msrb.mxu0 %v6762_v37  ;;  %v2902_v37 = vperm.slane %v7987_v2, 5 }
 0xa3c   : > { %v2475_v26 = vpop.f32.mrf.mxu3 }
 0xa3d   : > { %v2546_v6 = vpack.c.bf16 %v2475_v26, %v2475_v26  ;;  %v2456_v34 = vpop.f32.mrf.mxu2 }
 0xa3e   : > { %v6760_v34 = vld [vmem:[%s8904_s7 + $0x50] sm:$0xff] }
 0xa3f   : > { %6075 = vmatmul.msk.bf16.vlgmr.msrb.gmra.mxu3 %vm781_vm1, %v2546_v6  ;;  %v2498_v41 = vpop.f32.mrf.mxu0  ;;  %2868 = vmatpush.bf16.msrb.mxu0 %v6761_v44 }
 0xa43   : > { %2869 = vmatpush.bf16.msrb.mxu0 %v6760_v34  ;;  %v6902_v34 = vld [vmem:[%s8901_s4 + $0x10] ss:$0 sm:$0xff] }
 0xa44   : > { %v2477_v46 = vpop.f32.mrf.mxu3 }
 0xa45   : > { %v2538_v47 = vpop.f32.mrf.mxu2 }
 0xa46   : > { %v2549_v50 = vpack.c.bf16 %v2538_v47, %v2538_v47  ;;  %v2753_v47 = vperm.slane %v7987_v2, 1 }
 0xa48   : > { %6078 = vmatmul.msk.bf16.vlgmr.msra.gmra.mxu2 %vm781_vm1, %v2549_v50 }
 0xa4d   : > { %v2540_v45 = vpop.f32.mrf.mxu2 }
 0xa4e   : > { %v2755_v45 = vperm.slane %v7987_v2, 2 }
 0xa95   : > { %v2612_v39 = vpop.f32.mrf.mxu1 }
 0xa96   : > { %v2716_v38 = vsel %vm573_vm0, %v2612_v39, 0.0 }
 0xa9d   : > { %v2593_v54 = vpop.f32.mrf.mxu0  ;;  %v2614_v51 = vpop.f32.mrf.mxu1 }
 0xa9e   : > { %v2714_v60 = vsel %vm573_vm0, %v2593_v54, 0.0 }
 0xaa5   : > { %v2595_v48 = vpop.f32.mrf.mxu0 }
 0xaaa   : > { %v2574_v9 = vpop.f32.mrf.mxu3 }
 0xaab   : > { %v2713_v29 = vsel %vm573_vm0, %v2574_v9, 0.0  ;;  %v6759_v9 = vld [vmem:[%s8904_s7 + $0x48] sm:$0xff] }
 0xaac   : > { %v2688_v36 = vpop.f32.mrf.mxu1  ;;  %v2715_v61 = vadd.f32 %v2714_v60, %v2713_v29  ;;  %2870 = vmatpush.bf16.msrb.mxu0 %v6759_v9 }
 0xaad   : > { %v2724_v52 = vsel %vm573_vm0, %v2688_v36, 0.0  ;;  %v6758_v36 = vld [vmem:[%s8904_s7 + $0x40] sm:$0xff] }
 0xaae   : > { %v2717_v62 = vadd.f32 %v2716_v38, %v2715_v61 }
 0xab0   : > { %2871 = vmatpush.bf16.msrb.mxu0 %v6758_v36 }
 0xab2   : > { %v2576_v56 = vpop.f32.mrf.mxu3 }
 0xab3   : > { %v6901_v56 = vld [vmem:[%s8905_s8 + $0x1] ss:$0 sm:$0xff] }
 0xab4   : > { %v2690_v58 = vpop.f32.mrf.mxu1 }
 0xab7   : > { %v2669_v59 = vpop.f32.mrf.mxu0 }
 0xab8   : > { %v2722_v1 = vsel %vm573_vm0, %v2669_v59, 0.0 }
 0xabb   : > { %v2631_v5 = vpop.f32.mrf.mxu2 }
 0xabc   : > { %v2718_v40 = vsel %vm573_vm0, %v2631_v5, 0.0  ;;  %v2815_v5 = vperm.slane %v7987_v2, 3 }
 0xabd   : > { %v2719_v57 = vadd.f32 %v2718_v40, %v2717_v62 }
 0xabf   : > { %v2671_v42 = vpop.f32.mrf.mxu0 }
 0xac2   : > { %v2650_v43 = vpop.f32.mrf.mxu3 }
 0xac3   : > { %v2720_v63 = vsel %vm573_vm0, %v2650_v43, 0.0  ;;  %v2633_v0 = vpop.f32.mrf.mxu2 }
 0xac4   : > { %v2721_v22 = vadd.f32 %v2720_v63, %v2719_v57 }
 0xac6   : > { %v2723_v4 = vadd.f32 %v2722_v1, %v2721_v22 }
 0xac8   : > { %v2725_v21 = vadd.f32 %v2724_v52, %v2723_v4  ;;  %v6767_v4 = vld [vmem:[%s8900_s3 + $0x108] sm:$0xff] }
 0xac9   : > { %v6771_v52 = vld [vmem:[%s8900_s3 + $0x128] sm:$0xff]  ;;  %2992 = vmatpush.bf16.msra.mxu1 %v6767_v4 }
 0xaca   : > { %v2652_v7 = vpop.f32.mrf.mxu3 }
 0xacb   : > { %v2707_v10 = vpop.f32.mrf.mxu2  ;;  %v6769_v7 = vld [vmem:[%s8900_s3 + $0x118] sm:$0xff] }
 0xacc   : > { %v2726_v13 = vsel %vm573_vm0, %v2707_v10, 0.0  ;;  %v6779_v10 = vld [vmem:[%s8900_s3 + $0x168] sm:$0xff]  ;;  %3017 = vmatpush.bf16.msrb.mxu2 %v6769_v7 }
 0xacd   : > { %v2727_v15 = vadd.f32 %v2726_v13, %v2725_v21  ;;  %3142 = vmatpush.bf16.msra.mxu0 %v6779_v10  ;;  %v6766_v21 = vld [vmem:[%s8900_s3 + $0x100] sm:$0xff] }
 0xace   : > { %v6770_v13 = vld [vmem:[%s8900_s3 + $0x120] sm:$0xff]  ;;  %2993 = vmatpush.bf16.msra.mxu1 %v6766_v21 }
 0xacf   : > { %v2729_v16 = vadd.f32 %v2728_v11, %v2727_v15  ;;  %v6768_v11 = vld [vmem:[%s8900_s3 + $0x110] sm:$0xff]  ;;  %v6778_v15 = vld [vmem:[%s8900_s3 + $0x160] sm:$0xff] }
 0xad0   : > { %3018 = vmatpush.bf16.msrb.mxu2 %v6768_v11 }
 0xad1   : > { %v2730_v12 = vadd.f32 %v2729_v16, %v7726_v25  ;;  %v6756_v25 = vld [vmem:[%s8903_s6 + $0x10] sm:$0xff]  ;;  %3143 = vmatpush.bf16.msra.mxu0 %v6778_v15 }
 0xad2   : > { %2790 = vmatpush.bf16.msra.mxu3 %v6756_v25 }
 0xad3   : > { %v2709_v17 = vpop.f32.mrf.mxu2  ;;  %v2731_v3 = vsel %vm573_vm0, %v2730_v12, 0.0 }
 0xad4   : > { %2732 = vadd.xlane.f32.xlu0 %v2731_v3  ;;  %v6775_v17 = vld [vmem:[%s8900_s3 + $0x148] sm:$0xff]  ;;  %v6777_v3 = vld [vmem:[%s8900_s3 + $0x158] sm:$0xff] }
 0xad5   : > { %3092 = vmatpush.bf16.msra.mxu2 %v6775_v17 }
 0xad6   : > { %3042 = vmatpush.bf16.msrb.mxu3 %v6771_v52 }
 0xada   : > { %3043 = vmatpush.bf16.msrb.mxu3 %v6770_v13 }
 0xb47   : > { %v2733_v31 = vpop.xlane.xlu0 %2732 }
 0xb48   : > { %v2734_v18 = vmul.f32 %v2733_v31, %v7636_v8 }
 0xb4a   : > { %v2735_v20 = vsub.f32 %v2730_v12, %v2734_v18  ;;  %v6773_v12 = vld [vmem:[%s8900_s3 + $0x138] sm:$0xff]  ;;  %v6772_v18 = vld [vmem:[%s8900_s3 + $0x130] sm:$0xff] }
 0xb4b   : > { %3067 = vmatpush.bf16.msrb.mxu1 %v6773_v12 }
 0xb4c   : > { %v2736_v23 = vmul.f32 %v2735_v20, %v2735_v20 }
 0xb4e   : > { %v2737_v24 = vsel %vm573_vm0, %v2736_v23, 0.0 }
 0xb4f   : > { %2738 = vadd.xlane.f32.xlu1 %v2737_v24  ;;  %v6776_v24 = vld [vmem:[%s8900_s3 + $0x150] sm:$0xff]  ;;  %3068 = vmatpush.bf16.msrb.mxu1 %v6772_v18 }
 0xbc2   : > { %v2739_v49 = vpop.xlane.xlu1 %2738 }
 0xbc3   : > { %v2740_v53 = vmul.f32 %v2739_v49, %v7636_v8 }
 0xbc5   : > { %v2741_v35 = vadd.f32 1e-05, %v2740_v53 }
 0xbc7   : > { %6989 = vrsqrt.f32 %v2741_v35  ;;  %vm2748_vm8 = vweird.f32 %v2741_v35 }
 0xbcd   : > { %v6990_v14 = vpop.eup %6989 }
 0xbce   : > { %v2743_v55 = vmul.f32 %v6990_v14, %v2741_v35  ;;  %vm2749_vm7 = vweird.f32 %v6990_v14  ;;  %v2900_v35 = vperm.slane %v7987_v2, 4  ;;  %v6780_v2 = vld [vmem:[%s8900_s3 + $0x170] sm:$0xff] }
 0xbcf   : > { %vm2750_vm9 = vmor %vm2748_vm8, %vm2749_vm7 }
 0xbd0   : > { %v2744_v26 = vmul.f32 %v6990_v14, %v2743_v55 }
 0xbd2   : > { %v2745_v6 = vmul.f32 0.5, %v2744_v26 }
 0xbd4   : > { %v2746_v41 = vsub.f32 1.5, %v2745_v6  ;;  %v6781_v6 = vld [vmem:[%s8900_s3 + $0x178] sm:$0xff] }
 0xbd6   : > { %v2747_v46 = vmul.f32 %v6990_v14, %v2746_v41 }
 0xbd8   : > { %v2751_v50 = vsel %vm2750_vm9, %v6990_v14, %v2747_v46 }
 0xbd9   : > { %v2752_v39 = vmul.f32 %v2751_v50, %v2735_v20  ;;  %v6774_v20 = vld [vmem:[%s8900_s3 + $0x140] sm:$0xff] }
 0xbda   : > { %3093 = vmatpush.bf16.msra.mxu2 %v6774_v20 }
 0xbdb   : > { %v2754_v54 = vmul.f32 %v2753_v47, %v2752_v39  ;;  %v6905_v39 = vld [vmem:[%s8901_s4 + $0x12] ss:$0 sm:$0xff] }
 0xbdd   : > { %v2756_v51 = vadd.f32 %v2755_v45, %v2754_v54  ;;  %v6904_v45 = vld [vmem:[%s8901_s4 + $0x11] ss:$0 sm:$0xff] }
 0xbdf   : > { %v2762_v48 = vpack.c.bf16 %v2756_v51, %v2756_v51 }
 0xbe1   : > { %6093 = vmatmul.msk.bf16.vlgmr.msra.gmra.mxu3 %vm573_vm0, %v2762_v48 }
 0xbe2   : > { %3117 = vmatpush.bf16.msra.mxu3 %v6777_v3 }
 0xbe6   : > { %3118 = vmatpush.bf16.msra.mxu3 %v6776_v24 }
 0xc64   : > { %v2792_v58 = vpop.f32.mrf.mxu3 }
 0xc65   : > { %v2793_v59 = vadd.f32 %v6901_v56, %v2792_v58 }
 0xc67   : > { %v2796_v29 = vmax.f32 %v2793_v59, 0.0 }
 0xc69   : > { %v2814_v60 = vpack.c.bf16 %v2796_v29, %v2796_v29 }
 0xc6b   : > { %2872 = vmatmul.bf16.vlgmr.msrb.gmra.mxu0 %v2814_v60 }
 0xc6c   : > { %v2794_v61 = vpop.f32.mrf.mxu3 }
 0xce8   : > { %v2873_v38 = vpop.f32.mrf.mxu0 }
 0xce9   : > { %v2874_v40 = vadd.f32 %v2873_v38, %v2815_v5 }
 0xceb   : > { %v2877_v42 = vadd.f32 %v2874_v40, %v2756_v51 }
 0xced   : > { %v2878_v62 = vsel %vm573_vm0, %v2877_v42, 0.0 }
 0xcee   : > { %2879 = vadd.xlane.f32.xlu2 %v2878_v62 }
 0xcf0   : > { %v2875_v57 = vpop.f32.mrf.mxu0 }
 0xd61   : > { %v2880_v43 = vpop.xlane.xlu2 %2879 }
 0xd62   : > { %v2881_v63 = vmul.f32 %v2880_v43, %v7636_v8  ;;  %v6907_v43 = vld [vmem:[%s8901_s4 + $0x14] ss:$0 sm:$0xff] }
 0xd64   : > { %v2882_v0 = vsub.f32 %v2877_v42, %v2881_v63  ;;  %v6908_v63 = vld [vmem:[%s8901_s4 + $0x15] ss:$0 sm:$0xff] }
 0xd66   : > { %v2883_v22 = vmul.f32 %v2882_v0, %v2882_v0 }
 0xd68   : > { %v2884_v1 = vsel %vm573_vm0, %v2883_v22, 0.0  ;;  %v6903_v22 = vld [vmem:[%s8901_s4 + $0x16] ss:$0 sm:$0xff] }
 0xd69   : > { %2885 = vadd.xlane.f32.xlu0 %v2884_v1 }
 0xddc   : > { %v2886_v16 = vpop.xlane.xlu0 %2885 }
 0xddd   : > { %v2887_v31 = vmul.f32 %v2886_v16, %v7636_v8 }
 0xddf   : > { %v2888_v23 = vadd.f32 1e-05, %v2887_v31  ;;  %v6909_v31 = vld [vmem:[%s8901_s4 + $0x17] ss:$0 sm:$0xff] }
 0xde1   : > { %6991 = vrsqrt.f32 %v2888_v23  ;;  %vm2895_vm11 = vweird.f32 %v2888_v23 }
 0xde7   : > { %v6992_v28 = vpop.eup %6991 }
 0xde8   : > { %v2890_v25 = vmul.f32 %v6992_v28, %v2888_v23  ;;  %vm2896_vm10 = vweird.f32 %v6992_v28 }
 0xde9   : > { %vm2897_vm13 = vmor %vm2895_vm11, %vm2896_vm10 }
 0xdea   : > { %v2891_v27 = vmul.f32 %v6992_v28, %v2890_v25 }
 0xdec   : > { %v2892_v49 = vmul.f32 0.5, %v2891_v27 }
 0xdee   : > { %v2893_v53 = vsub.f32 1.5, %v2892_v49 }
 0xdf0   : > { %v2894_v33 = vmul.f32 %v6992_v28, %v2893_v53 }
 0xdf2   : > { %v2898_v19 = vsel %vm2897_vm13, %v6992_v28, %v2894_v33 }
 0xdf3   : > { %v2899_v14 = vmul.f32 %v2898_v19, %v2882_v0  ;;  %v6906_v0 = vld [vmem:[%s8901_s4 + $0x13] ss:$0 sm:$0xff] }
 0xdf5   : > { %v2901_v55 = vmul.f32 %v2900_v35, %v2899_v14 }
 0xdf7   : > { %v8082_v44 = vadd.f32 %v2902_v37, %v2901_v55 }
 0xdf9   : > { %v2904_v26 = vpack.c.bf16 %v8082_v44, %v8082_v44 }
 0xdfb   : > { %6190 = vmatmul.msk.bf16.vlgmr.msra.gmra.mxu1 %vm573_vm0, %v2904_v26  ;;  %6199 = vmatmul.msk.bf16.vlgmr.msrb.gmra.mxu2 %vm573_vm0, %v2904_v26 }
 0xdfc   : > { %6208 = vmatmul.msk.bf16.vlgmr.msrb.gmra.mxu3 %vm573_vm0, %v2904_v26  ;;  %6244 = vmatmul.msk.bf16.vlgmr.msra.gmra.mxu0 %vm573_vm0, %v2904_v26 }
 0xdfd   : > { %3167 = vmatpush.bf16.msra.mxu1 %v6781_v6 }
 0xe01   : > { %3168 = vmatpush.bf16.msra.mxu1 %v6780_v2 }
 0xe0b   : > { %6217 = vmatmul.msk.bf16.vlgmr.msrb.gmra.mxu1 %vm573_vm0, %v2904_v26  ;;  %6226 = vmatmul.msk.bf16.vlgmr.msra.gmra.mxu2 %vm573_vm0, %v2904_v26 }
 0xe0c   : > { %6235 = vmatmul.msk.bf16.vlgmr.msra.gmra.mxu3 %vm573_vm0, %v2904_v26 }
 0xe1b   : > { %6253 = vmatmul.msk.bf16.vlgmr.msra.gmra.mxu1 %vm573_vm0, %v2904_v26 }
 0xe78   : > { %v2995_v41 = vpop.f32.mrf.mxu1 }
 0xe79   : > { %v2996_v46 = vadd.f32 %v6902_v34, %v2995_v41  ;;  %v3145_v47 = vpop.f32.mrf.mxu0 }
 0xe7a   : > { %v3146_v13 = vadd.f32 %v6903_v22, %v3145_v47 }
 0xe7b   : > { %v8103_v50 = vpack.c.bf16 %v2996_v46, %v2996_v46 }
 0xe7c   : > { %v3180_v18 = vpack.c.bf16 %v3146_v13, %v3146_v13 }
 0xe7d   : > { %v3183_v54 = vunpack.c.l.b16 %v8103_v50 }
 0xe7e   : > { %v3020_v51 = vpop.f32.mrf.mxu2  ;;  %v3327_v49 = vunpack.c.l.b16 %v3180_v18 }
 0xe7f   : > { %v8112_v48 = vpack.c.b16 %v3183_v54, %v3183_v54  ;;  %v3021_v9 = vadd.f32 %v6904_v45, %v3020_v51  ;;  %v3045_v36 = vpop.f32.mrf.mxu3 }
 0xe80   : > { %v3046_v56 = vadd.f32 %v6905_v39, %v3045_v36  ;;  %v2997_v58 = vpop.f32.mrf.mxu1  ;;  %v8155_v19 = vpack.c.b16 %v3327_v49, %v3327_v49 }
 0xe81   : > { %v8114_v59 = vpack.c.bf16 %v3021_v9, %v3021_v9  ;;  %v3147_v29 = vpop.f32.mrf.mxu0  ;;  %3185 = vrot.lane.b32.xlu1 %v8112_v48, %s7131_s19 }
 0xe82   : > { %v8118_v60 = vpack.c.bf16 %v3046_v56, %v3046_v56 }
 0xe83   : > { %v3207_v61 = vunpack.c.l.b16 %v8114_v59 }
 0xe84   : > { %v3231_v5 = vunpack.c.l.b16 %v8118_v60 }
 0xe85   : > { %v8122_v38 = vpack.c.b16 %v3207_v61, %v3207_v61 }
 0xe86   : > { %v3022_v40 = vpop.f32.mrf.mxu2  ;;  %v8124_v42 = vpack.c.b16 %v3231_v5, %v3231_v5 }
 0xe87   : > { %v3047_v62 = vpop.f32.mrf.mxu3  ;;  %3209 = vrot.lane.b32.xlu0 %v8122_v38, %s7131_s19 }
 0xe88   : > { %v3070_v57 = vpop.f32.mrf.mxu1 }
 0xe89   : > { %3233 = vrot.lane.b32.xlu1 %v8124_v42, %s7131_s19  ;;  %v3071_v21 = vadd.f32 %v6906_v0, %v3070_v57 }
 0xe8b   : > { %v3177_v17 = vpack.c.bf16 %v3071_v21, %v3071_v21 }
 0xe8d   : > { %v3255_v25 = vunpack.c.l.b16 %v3177_v17 }
 0xe8e   : > { %v3095_v1 = vpop.f32.mrf.mxu2 }
 0xe8f   : > { %v3096_v4 = vadd.f32 %v6907_v43, %v3095_v1  ;;  %v3120_v7 = vpop.f32.mrf.mxu3  ;;  %v8153_v33 = vpack.c.b16 %v3255_v25, %v3255_v25 }
 0xe90   : > { %v3121_v52 = vadd.f32 %v6908_v63, %v3120_v7  ;;  %v3072_v10 = vpop.f32.mrf.mxu1 }
 0xe91   : > { %v3178_v11 = vpack.c.bf16 %v3096_v4, %v3096_v4 }
 0xe92   : > { %v3179_v15 = vpack.c.bf16 %v3121_v52, %v3121_v52 }
 0xe93   : > { %v3279_v16 = vunpack.c.l.b16 %v3178_v11 }
 0xe94   : > { %v3303_v12 = vunpack.c.l.b16 %v3179_v15 }
 0xe95   : > { %v8142_v3 = vpack.c.b16 %v3279_v16, %v3279_v16 }
 0xe96   : > { %v8147_v20 = vpack.c.b16 %v3303_v12, %v3303_v12  ;;  %v3097_v23 = vpop.f32.mrf.mxu2 }
 0xe97   : > { %v3122_v24 = vpop.f32.mrf.mxu3  ;;  %3281 = vrot.lane.b32.xlu2 %v8142_v3, %s7131_s19 }
 0xe98   : > { %3305 = vrot.lane.b32.xlu0 %v8147_v20, %s7131_s19  ;;  %v3170_v28 = vpop.f32.mrf.mxu1 }
 0xe99   : > { %v3171_v27 = vadd.f32 %v6909_v31, %v3170_v28 }
 0xe9b   : > { %v3181_v53 = vpack.c.bf16 %v3171_v27, %v3171_v27 }
 0xe9d   : > { %v3351_v35 = vunpack.c.l.b16 %v3181_v53 }
 0xe9f   : > { %v8157_v37 = vpack.c.b16 %v3351_v35, %v3351_v35  ;;  %3257 = vrot.lane.b32.xlu2 %v8153_v33, %s7131_s19 }
 0xea0   : > { %3329 = vrot.lane.b32.xlu0 %v8155_v19, %s7131_s19  ;;  %v3172_v14 = vpop.f32.mrf.mxu1 }
 0xea1   : > { %3353 = vrot.lane.b32.xlu1 %v8157_v37, %s7131_s19 }
 0xef1   : > { %v3282_v55 = vpop.permute.xlu2 %3281 }
 0xef2   : > { %v3287_v2 = vsel %vm781_vm1, %v3282_v55, 0 }
 0xef3   : > { %v3186_v26 = vpop.permute.xlu1 %3185 }
 0xef4   : > { %v3191_v6 = vsel %vm781_vm1, %v3186_v26, 0 }
 0xef5   : > { %3200 = vmatpush.bf16.xpose.msrb.mxu2 %v3191_v6 }
 0xef9   : > { %v3210_v34 = vpop.permute.xlu0 %3209  ;;  %v3258_v41 = vpop.permute.xlu2 %3257 }
 0xefa   : > { %v3215_v46 = vsel %vm781_vm1, %v3210_v34, 0  ;;  %v3263_v47 = vsel %vm781_vm1, %v3258_v41, 0 }
 0xefb   : > { %3224 = vmatpush.bf16.xpose.msrb.mxu3 %v3215_v46  ;;  %3272 = vmatpush.bf16.xpose.msrb.mxu1 %v3263_v47  ;;  %v3234_v45 = vpop.permute.xlu1 %3233 }
 0xefc   : > { %v3239_v39 = vsel %vm781_vm1, %v3234_v45, 0  ;;  %6254 = vmatmul.msk.bf16.vlgmr.msrb.gmra.mxu2 %vm781_vm1, %v8103_v50 }
 0xefd   : > { %3296 = vmatpush.bf16.xpose.msra.mxu2 %v3287_v2  ;;  %3248 = vmatpush.bf16.xpose.msrb.mxu0 %v3239_v39 }
 0xf02   : > { %6255 = vmatmul.msk.bf16.vlgmr.msrb.gmra.mxu3 %vm781_vm1, %v8114_v59  ;;  %6257 = vmatmul.msk.bf16.vlgmr.msrb.gmra.mxu1 %vm781_vm1, %v3177_v17 }
 0xf04   : > { %6256 = vmatmul.msk.bf16.vlgmr.msrb.gmra.mxu0 %vm781_vm1, %v8118_v60 }
 0xf0a   : > { %v3306_v54 = vpop.permute.xlu0 %3305 }
 0xf0b   : > { %v3311_v51 = vsel %vm781_vm1, %v3306_v54, 0 }
 0xf0c   : > { %3320 = vmatpush.bf16.xpose.msra.mxu3 %v3311_v51  ;;  %6258 = vmatmul.msk.bf16.vlgmr.msra.gmra.mxu2 %vm781_vm1, %v3178_v11 }
 0xf12   : > { %v3330_v9 = vpop.permute.xlu0 %3329 }
 0xf13   : > { %v3335_v36 = vsel %vm781_vm1, %v3330_v9, 0  ;;  %6259 = vmatmul.msk.bf16.vlgmr.msra.gmra.mxu3 %vm781_vm1, %v3179_v15  ;;  %v3354_v50 = vpop.permute.xlu1 %3353 }
 0xf14   : > { %3344 = vmatpush.bf16.xpose.msra.mxu0 %v3335_v36  ;;  %v3359_v56 = vsel %vm781_vm1, %v3354_v50, 0 }
 0xf15   : > { %3368 = vmatpush.bf16.xpose.msra.mxu1 %v3359_v56 }
 0xf1b   : > { %6260 = vmatmul.msk.bf16.vlgmr.msra.gmra.mxu0 %vm781_vm1, %v3180_v18 }
 0xf1c   : > { %6261 = vmatmul.msk.bf16.vlgmr.msra.gmra.mxu1 %vm781_vm1, %v3181_v53 }
 0xf7f   : > { %v3202_v58 = vpop.f32.mrf.mxu2  ;;  %v3274_v59 = vpop.f32.mrf.mxu1 }
 0xf80   : > { %v3203_v29 = vadd.f32 %v3202_v58, %v7422_v32  ;;  %v3275_v1 = vadd.f32 %v3274_v59, %v7422_v32 }
 0xf81   : > { %v3250_v60 = vpop.f32.mrf.mxu0 }
 0xf82   : > { %v3251_v61 = vadd.f32 %v3250_v60, %v7422_v32  ;;  %v3374_v5 = vsel %vm969_vm3, %v3203_v29, -inf  ;;  %v3383_v10 = vsel %vm969_vm3, %v3275_v1, -inf }
 0xf83   : > { %3375 = vmax.xlane.f32.xlu2 %v3374_v5 }
 0xf84   : > { %v3380_v40 = vsel %vm969_vm3, %v3251_v61, -inf }
 0xf85   : > { %v3226_v62 = vpop.f32.mrf.mxu3  ;;  %3381 = vmax.xlane.f32.xlu1 %v3380_v40 }
 0xf86   : > { %v3227_v57 = vadd.f32 %v3226_v62, %v7422_v32 }
 0xf87   : > { %v3204_v43 = vpop.f32.mrf.mxu2  ;;  %v3276_v63 = vpop.f32.mrf.mxu1 }
 0xf88   : > { %v3377_v0 = vsel %vm969_vm3, %v3227_v57, -inf }
 0xf89   : > { %3378 = vmax.xlane.f32.xlu0 %v3377_v0  ;;  %v3252_v22 = vpop.f32.mrf.mxu0 }
 0xf8d   : > { %v3228_v4 = vpop.f32.mrf.mxu3 }
 0xf8f   : > { %v3298_v7 = vpop.f32.mrf.mxu2 }
 0xf90   : > { %v3299_v52 = vadd.f32 %v3298_v7, %v7422_v32 }
 0xf91   : > { %3384 = vmax.xlane.f32.xlu0 %v3383_v10 }
 0xf92   : > { %v3386_v21 = vsel %vm969_vm3, %v3299_v52, -inf }
 0xf93   : > { %3387 = vmax.xlane.f32.xlu2 %v3386_v21 }
 0xf96   : > { %v3322_v11 = vpop.f32.mrf.mxu3 }
 0xf97   : > { %v3323_v13 = vadd.f32 %v3322_v11, %v7422_v32  ;;  %v3300_v15 = vpop.f32.mrf.mxu2 }
 0xf98   : > { %v3346_v16 = vpop.f32.mrf.mxu0 }
 0xf99   : > { %v3347_v12 = vadd.f32 %v3346_v16, %v7422_v32  ;;  %v3370_v17 = vpop.f32.mrf.mxu1  ;;  %v3389_v18 = vsel %vm969_vm3, %v3323_v13, -inf }
 0xf9a   : > { %v8197_v31 = vadd.f32 %v3370_v17, %v7422_v32 }
 0xf9b   : > { %3390 = vmax.xlane.f32.xlu2 %v3389_v18  ;;  %v3392_v23 = vsel %vm969_vm3, %v3347_v12, -inf }
 0xf9c   : > { %3393 = vmax.xlane.f32.xlu1 %v3392_v23  ;;  %v3395_v24 = vsel %vm969_vm3, %v8197_v31, -inf }
 0xf9d   : > { %3396 = vmax.xlane.f32.xlu0 %v3395_v24 }
 0xf9e   : > { %v3324_v28 = vpop.f32.mrf.mxu3 }
 0xfa0   : > { %v3348_v25 = vpop.f32.mrf.mxu0 }
 0xfa1   : > { %v3372_v27 = vpop.f32.mrf.mxu1 }
 0xfb3   : > { %3574 = vrot.lane.b32.xlu2 %v8112_v48, %s7132_s24 }
 0xfb5   : > { %3595 = vrot.lane.b32.xlu1 %v8122_v38, %s7132_s24 }
 0xff6   : > { %v3376_v32 = vpop.xlane.xlu2 %3375 }
 0xff7   : > { %v3398_v49 = vsub.f32 %v3203_v29, %v3376_v32 }
 0xff8   : > { %v3382_v53 = vpop.xlane.xlu1 %3381 }
 0xff9   : > { %v3406_v35 = vmul.f32 1.442695, %v3398_v49  ;;  %v3400_v14 = vsub.f32 %v3251_v61, %v3382_v53 }
 0xffb   : > { %6993 = vpow2.f32 %v3406_v35  ;;  %v3410_v55 = vmul.f32 1.442695, %v3400_v14 }
 0xffc   : > { %v3379_v26 = vpop.xlane.xlu0 %3378 }
 0xffd   : > { %6995 = vpow2.f32 %v3410_v55  ;;  %v3399_v6 = vsub.f32 %v3227_v57, %v3379_v26 }
 0xfff   : > { %v3408_v2 = vmul.f32 1.442695, %v3399_v6 }
0x1001   : > { %v8207_v34 = vpop.eup %6993  ;;  %6997 = vpow2.f32 %v3408_v2 }
0x1002   : > { %v3422_v48 = vsel %vm969_vm3, %v8207_v34, 0.0 }
0x1003   : > { %v8211_v41 = vpop.eup %6995  ;;  %3423 = vadd.xlane.f32.xlu2 %v3422_v48 }
0x1004   : > { %v3385_v38 = vpop.xlane.xlu0 %3384  ;;  %v3428_v46 = vsel %vm969_vm3, %v8211_v41, 0.0 }
0x1005   : > { %v3401_v47 = vsub.f32 %v3275_v1, %v3385_v38  ;;  %3429 = vadd.xlane.f32.xlu0 %v3428_v46 }
0x1006   : > { %v3388_v45 = vpop.xlane.xlu2 %3387 }
0x1007   : > { %v8215_v39 = vpop.eup %6997  ;;  %v3412_v54 = vmul.f32 1.442695, %v3401_v47  ;;  %v3402_v51 = vsub.f32 %v3299_v52, %v3388_v45 }
0x1008   : > { %v3425_v9 = vsel %vm969_vm3, %v8215_v39, 0.0 }
0x1009   : > { %6999 = vpow2.f32 %v3412_v54  ;;  %v3414_v36 = vmul.f32 1.442695, %v3402_v51  ;;  %3426 = vadd.xlane.f32.xlu1 %v3425_v9 }
0x100b   : > { %7001 = vpow2.f32 %v3414_v36 }
0x100e   : > { %v3391_v50 = vpop.xlane.xlu2 %3390 }
0x100f   : > { %v8219_v56 = vpop.eup %6999  ;;  %v3394_v58 = vpop.xlane.xlu1 %3393  ;;  %v3403_v61 = vsub.f32 %v3323_v13, %v3391_v50 }
0x1010   : > { %v3404_v59 = vsub.f32 %v3347_v12, %v3394_v58  ;;  %v3431_v29 = vsel %vm969_vm3, %v8219_v56, 0.0  ;;  %v3397_v43 = vpop.xlane.xlu0 %3396 }
0x1011   : > { %v8223_v60 = vpop.eup %7001  ;;  %3432 = vadd.xlane.f32.xlu1 %v3431_v29  ;;  %v3416_v62 = vmul.f32 1.442695, %v3403_v61  ;;  %v3405_v22 = vsub.f32 %v8197_v31, %v3397_v43 }
0x1012   : > { %v3418_v5 = vmul.f32 1.442695, %v3404_v59  ;;  %v3434_v40 = vsel %vm969_vm3, %v8223_v60, 0.0 }
0x1013   : > { %3435 = vadd.xlane.f32.xlu2 %v3434_v40  ;;  %v3420_v4 = vmul.f32 1.442695, %v3405_v22 }
0x1014   : > { %7003 = vpow2.f32 %v3418_v5 }
0x1015   : > { %7005 = vpow2.f32 %v3416_v62 }
0x1016   : > { %v3575_v57 = vpop.permute.xlu2 %3574  ;;  %7007 = vpow2.f32 %v3420_v4 }
0x1017   : > { %v3580_v63 = vsel %vm1175_vm2, %v3575_v57, 0 }
0x1018   : > { %3589 = vmatpush.bf16.msrb.mxu2 %v3580_v63 }
0x101a   : > { %v8228_v0 = vpop.eup %7003 }
0x101b   : > { %v3440_v1 = vsel %vm969_vm3, %v8228_v0, 0.0  ;;  %v8233_v7 = vpop.eup %7005 }
0x101c   : > { %3441 = vadd.xlane.f32.xlu0 %v3440_v1  ;;  %v3437_v52 = vsel %vm969_vm3, %v8233_v7, 0.0  ;;  %v8237_v21 = vpop.eup %7007 }
0x101d   : > { %v3443_v13 = vsel %vm969_vm3, %v8237_v21, 0.0 }
0x1024   : > { %3438 = vadd.xlane.f32.xlu0 %v3437_v52 }
0x1027   : > { %v3596_v10 = vpop.permute.xlu1 %3595 }
0x1028   : > { %v3601_v11 = vsel %vm1175_vm2, %v3596_v10, 0 }
0x1029   : > { %3610 = vmatpush.bf16.msrb.mxu3 %v3601_v11 }
0x102a   : > { %3637 = vrot.lane.b32.xlu1 %v8153_v33, %s7132_s24 }
0x102b   : > { %3658 = vrot.lane.b32.xlu2 %v8142_v3, %s7132_s24 }
0x102c   : > { %3444 = vadd.xlane.f32.xlu0 %v3443_v13 }
0x1032   : > { %3700 = vrot.lane.b32.xlu1 %v8155_v19, %s7132_s24 }
0x1033   : > { %3679 = vrot.lane.b32.xlu2 %v8147_v20, %s7132_s24 }
0x103b   : > { %3721 = vrot.lane.b32.xlu2 %v8157_v37, %s7132_s24 }
0x1040   : > { %3616 = vrot.lane.b32.xlu0 %v8124_v42, %s7132_s24 }
0x1076   : > { %v3424_v33 = vpop.xlane.xlu2 %3423 }
0x1077   : > { %7009 = vrcp.f32 %v3424_v33  ;;  %v3457_v17 = vand.u32 2147483648, %v3424_v33  ;;  %v3455_v19 = vand.u32 2147483647, %v3424_v33  ;;  %vm3451_vm15 = vweird.f32 %v3424_v33 }
0x1078   : > { %v8254_v32 = vpop.xlane.xlu0 %3429 }
0x1079   : > { %v3458_v37 = vor.u32 1.1754944e-38, %v3457_v17  ;;  %vm3456_vm5 = vcmp.eq.f32.partialorder %v3455_v19, 8.507059e+37 }
0x107c   : > { %v3427_v15 = vpop.xlane.xlu1 %3426 }
0x107d   : > { %v7010_v3 = vpop.eup %7009  ;;  %7011 = vrcp.f32 %v3427_v15  ;;  %v3472_v49 = vand.u32 2147483648, %v3427_v15  ;;  %v3470_v14 = vand.u32 2147483647, %v3427_v15  ;;  %vm3466_vm7 = vweird.f32 %v3427_v15 }
0x107e   : > { %v3447_v16 = vmul.f32 %v7010_v3, %v3424_v33  ;;  %vm3452_vm14 = vweird.f32 %v7010_v3 }
0x107f   : > { %vm3453_vm4 = vmor %vm3451_vm15, %vm3452_vm14  ;;  %v3473_v2 = vor.u32 1.1754944e-38, %v3472_v49  ;;  %vm3471_vm9 = vcmp.eq.f32.partialorder %v3470_v14, 8.507059e+37 }
0x1080   : > { %v3448_v12 = vsub.f32 1.0, %v3447_v16 }
0x1082   : > { %v3449_v31 = vmul.f32 %v7010_v3, %v3448_v12 }
0x1083   : > { %v7012_v18 = vpop.eup %7011 }
0x1084   : > { %v3450_v23 = vadd.f32 %v7010_v3, %v3449_v31  ;;  %v3462_v20 = vmul.f32 %v7012_v18, %v3427_v15  ;;  %v3433_v24 = vpop.xlane.xlu1 %3432  ;;  %vm3467_vm6 = vweird.f32 %v7012_v18 }
0x1085   : > { %7013 = vrcp.f32 %v3433_v24  ;;  %vm3468_vm8 = vmor %vm3466_vm7, %vm3467_vm6  ;;  %v3502_v29 = vand.u32 2147483648, %v3433_v24  ;;  %vm3496_vm13 = vweird.f32 %v3433_v24  ;;  %v3500_v62 = vand.u32 2147483647, %v3433_v24 }
0x1086   : > { %v3454_v42 = vsel %vm3453_vm4, %v7010_v3, %v3450_v23  ;;  %v3463_v28 = vsub.f32 1.0, %v3462_v20  ;;  %v3436_v25 = vpop.xlane.xlu2 %3435 }
0x1087   : > { %v3459_v27 = vsel %vm3456_vm5, %v3458_v37, %v3454_v42  ;;  %7015 = vrcp.f32 %v3436_v25  ;;  %v3517_v61 = vand.u32 2147483648, %v3436_v25  ;;  %vm3511_vm15 = vweird.f32 %v3436_v25 }
0x1088   : > { %v3460_v53 = vmul.f32 %v8207_v34, %v3459_v27  ;;  %v3464_v35 = vmul.f32 %v7012_v18, %v3463_v28  ;;  %7017 = vrcp.f32 %v8254_v32  ;;  %v3503_v1 = vor.u32 1.1754944e-38, %v3502_v29 }
0x1089   : > { %v3518_v22 = vor.u32 1.1754944e-38, %v3517_v61  ;;  %vm3501_vm6 = vcmp.eq.f32.partialorder %v3500_v62, 8.507059e+37 }
0x108a   : > { %v3566_v55 = vpack.c.bf16 %v3460_v53, %v3460_v53  ;;  %v3465_v26 = vadd.f32 %v7012_v18, %v3464_v35 }
0x108b   : > { %v7014_v6 = vpop.eup %7013 }
0x108c   : > { %v3469_v48 = vsel %vm3468_vm8, %v7012_v18, %v3465_v26  ;;  %v3492_v38 = vmul.f32 %v7014_v6, %v3433_v24  ;;  %6262 = vmatmul.msk.bf16.vlgmr.msrb.gmra.mxu2 %vm969_vm3, %v3566_v55  ;;  %vm3497_vm10 = vweird.f32 %v7014_v6 }
0x108d   : > { %v7016_v46 = vpop.eup %7015  ;;  %v3474_v47 = vsel %vm3471_vm9, %v3473_v2, %v3469_v48  ;;  %vm8264_vm14 = vmor %vm3496_vm13, %vm3497_vm10  ;;  %vm3481_vm13 = vweird.f32 %v8254_v32  ;;  %v3487_v48 = vand.u32 2147483648, %v8254_v32 }
0x108e   : > { %v3475_v45 = vmul.f32 %v8215_v39, %v3474_v47  ;;  %v3493_v54 = vsub.f32 1.0, %v3492_v38  ;;  %v3507_v34 = vmul.f32 %v7016_v46, %v3436_v25  ;;  %v3659_v51 = vpop.permute.xlu2 %3658  ;;  %vm3512_vm11 = vweird.f32 %v7016_v46  ;;  %v8270_v10 = vpop.eup %7017 }
0x108f   : > { %v3664_v9 = vsel %vm1175_vm2, %v3659_v51, 0  ;;  %v8260_v36 = vpop.xlane.xlu0 %3441  ;;  %v3515_v39 = vand.u32 2147483647, %v3436_v25  ;;  %vm3513_vm4 = vmor %vm3511_vm15, %vm3512_vm11  ;;  %v3477_v16 = vmul.f32 %v8270_v10, %v8254_v32  ;;  %vm3482_vm9 = vweird.f32 %v8270_v10 }
0x1090   : > { %v3567_v50 = vpack.c.bf16 %v3475_v45, %v3475_v45  ;;  %v3494_v58 = vmul.f32 %v7014_v6, %v3493_v54  ;;  %v3508_v59 = vsub.f32 1.0, %v3507_v34  ;;  %3673 = vmatpush.bf16.msra.mxu2 %v3664_v9  ;;  %v3485_v47 = vand.u32 2147483647, %v8254_v32 }
0x1091   : > { %vm3516_vm5 = vcmp.eq.f32.partialorder %v3515_v39, 8.507059e+37  ;;  %v3478_v23 = vsub.f32 1.0, %v3477_v16  ;;  %v3488_v29 = vor.u32 1.1754944e-38, %v3487_v48 }
0x1092   : > { %v3495_v5 = vadd.f32 %v7014_v6, %v3494_v58  ;;  %v3509_v40 = vmul.f32 %v7016_v46, %v3508_v59  ;;  %6263 = vmatmul.msk.bf16.vlgmr.msrb.gmra.mxu3 %vm969_vm3, %v3567_v50 }
0x1094   : > { %v3510_v43 = vadd.f32 %v7016_v46, %v3509_v40  ;;  %v3499_v63 = vsel %vm8264_vm14, %v7014_v6, %v3495_v5  ;;  %vm8287_vm14 = vmor %vm3481_vm13, %vm3482_vm9  ;;  %vm3541_vm9 = vweird.f32 %v8260_v36 }
0x1095   : > { %v3504_v15 = vsel %vm3501_vm6, %v3503_v1, %v3499_v63 }
0x1096   : > { %v3514_v4 = vsel %vm3513_vm4, %v7016_v46, %v3510_v43  ;;  %v3680_v52 = vpop.permute.xlu2 %3679  ;;  %v3505_v17 = vmul.f32 %v8219_v56, %v3504_v15  ;;  %v3479_v56 = vmul.f32 %v8270_v10, %v3478_v23  ;;  %vm3486_vm4 = vcmp.eq.f32.partialorder %v3485_v47, 8.507059e+37 }
0x1097   : > { %v3519_v11 = vsel %vm3516_vm5, %v3518_v22, %v3514_v4  ;;  %v3685_v13 = vsel %vm1175_vm2, %v3680_v52, 0  ;;  %v3439_v33 = vpop.xlane.xlu0 %3438 }
0x1098   : > { %v3520_v3 = vmul.f32 %v8223_v60, %v3519_v11  ;;  %7019 = vrcp.f32 %v3439_v33  ;;  %3694 = vmatpush.bf16.msra.mxu3 %v3685_v13  ;;  %v3569_v24 = vpack.c.bf16 %v3505_v17, %v3505_v17  ;;  %v3532_v25 = vand.u32 2147483648, %v3439_v33 }
0x1099   : > { %v3530_v49 = vand.u32 2147483647, %v3439_v33  ;;  %vm3526_vm8 = vweird.f32 %v3439_v33  ;;  %v3480_v14 = vadd.f32 %v8270_v10, %v3479_v56  ;;  %v6272_v56 = vld [vmem:[%s8902_s5 + $0x24] sm:$0x3] }
0x109a   : > { %v3570_v12 = vpack.c.bf16 %v3520_v3, %v3520_v3  ;;  %v3533_v55 = vor.u32 1.1754944e-38, %v3532_v25  ;;  %v3801_v25 = vsel %vm1358_vm12, %v6272_v56, 0 }
0x109b   : > { %vm3531_vm11 = vcmp.eq.f32.partialorder %v3530_v49, 8.507059e+37  ;;  %v3484_v34 = vsel %vm8287_vm14, %v8270_v10, %v3480_v14 }
0x109c   : > { %6266 = vmatmul.msk.bf16.vlgmr.msra.gmra.mxu2 %vm969_vm3, %v3570_v12  ;;  %v3638_v31 = vpop.permute.xlu1 %3637  ;;  %v3489_v32 = vsel %vm3486_vm4, %v3488_v29, %v3484_v34  ;;  %v6270_v12 = vld [vmem:[%s8902_s5 + $0x20] sm:$0x3] }
0x109d   : > { %v3643_v19 = vsel %vm1175_vm2, %v3638_v31, 0  ;;  %v3490_v62 = vmul.f32 %v8211_v41, %v3489_v32  ;;  %v3547_v41 = vand.u32 2147483648, %v8260_v36  ;;  %v3763_v17 = vsel %vm1358_vm12, %v6270_v12, 0 }
0x109e   : > { %v7020_v18 = vpop.eup %7019  ;;  %v3722_v20 = vpop.permute.xlu2 %3721  ;;  %3652 = vmatpush.bf16.msrb.mxu1 %v3643_v19  ;;  %3772 = vmatpush.bf16.msrb.mxu2 %v3763_v17 }
0x109f   : > { %v3522_v37 = vmul.f32 %v7020_v18, %v3439_v33  ;;  %v3727_v60 = vsel %vm1175_vm2, %v3722_v20, 0  ;;  %v3445_v42 = vpop.xlane.xlu0 %3444  ;;  %vm3527_vm7 = vweird.f32 %v7020_v18  ;;  %v3568_v10 = vpack.c.bf16 %v3490_v62, %v3490_v62 }
0x10a0   : > { %7021 = vrcp.f32 %v3445_v42  ;;  %vm3528_vm10 = vmor %vm3526_vm8, %vm3527_vm7  ;;  %v3562_v9 = vand.u32 2147483648, %v3445_v42  ;;  %v3560_v59 = vand.u32 2147483647, %v3445_v42  ;;  %vm3556_vm5 = vweird.f32 %v3445_v42 }
0x10a1   : > { %7023 = vrcp.f32 %v8260_v36  ;;  %v3523_v28 = vsub.f32 1.0, %v3522_v37  ;;  %6265 = vmatmul.msk.bf16.vlgmr.msrb.gmra.mxu1 %vm969_vm3, %v3569_v24  ;;  %v3548_v33 = vor.u32 1.1754944e-38, %v3547_v41  ;;  %v6275_v24 = vld [vmem:[%s8902_s5 + $0x2a] sm:$0x3] }
0x10a2   : > { %3736 = vmatpush.bf16.msra.mxu1 %v3727_v60  ;;  %vm3561_vm7 = vcmp.eq.f32.partialorder %v3560_v59, 8.507059e+37  ;;  %v3858_v60 = vsel %vm1358_vm12, %v6275_v24, 0 }
0x10a3   : > { %v3524_v27 = vmul.f32 %v7020_v18, %v3523_v28 }
0x10a4   : > { %v3701_v43 = vpop.permute.xlu1 %3700 }
0x10a5   : > { %v3525_v53 = vadd.f32 %v7020_v18, %v3524_v27  ;;  %v3706_v52 = vsel %vm1175_vm2, %v3701_v43, 0 }
0x10a6   : > { %v7022_v35 = vpop.eup %7021 }
0x10a7   : > { %v7024_v26 = vpop.eup %7023  ;;  %v3529_v6 = vsel %vm3528_vm10, %v7020_v18, %v3525_v53  ;;  %v3552_v2 = vmul.f32 %v7022_v35, %v3445_v42  ;;  %vm3557_vm15 = vweird.f32 %v7022_v35  ;;  %v6274_v18 = vld [vmem:[%s8902_s5 + $0x28] sm:$0x3]  ;;  %v6277_v42 = vld [vmem:[%s8902_s5 + $0x2e] sm:$0x3] }
0x10a8   : > { %v3534_v38 = vsel %vm3531_vm11, %v3533_v55, %v3529_v6  ;;  %v3537_v51 = vmul.f32 %v7024_v26, %v8260_v36  ;;  %vm3558_vm6 = vmor %vm3556_vm5, %vm3557_vm15  ;;  %vm3542_vm8 = vweird.f32 %v7024_v26  ;;  %v3839_v23 = vsel %vm1358_vm12, %v6274_v18, 0 }
0x10a9   : > { %v3535_v45 = vmul.f32 %v8233_v7, %v3534_v38  ;;  %v3553_v54 = vsub.f32 1.0, %v3552_v2  ;;  %v3563_v7 = vor.u32 1.1754944e-38, %v3562_v9  ;;  %vm3543_vm10 = vmor %vm3541_vm9, %vm3542_vm8  ;;  %3848 = vmatpush.bf16.msra.mxu2 %v3839_v23  ;;  %v3896_v28 = vsel %vm1358_vm12, %v6277_v42, 0  ;;  %v6276_v2 = vld [vmem:[%s8902_s5 + $0x2c] sm:$0x3] }
0x10aa   : > { %v3538_v5 = vsub.f32 1.0, %v3537_v51  ;;  %v3877_v48 = vsel %vm1358_vm12, %v6276_v2, 0  ;;  %v6790_v2 = vld [vmem:[%s8904_s7 + $0xb0] sm:$0xff] }
0x10ab   : > { %v3571_v50 = vpack.c.bf16 %v3535_v45, %v3535_v45  ;;  %v3554_v58 = vmul.f32 %v7022_v35, %v3553_v54 }
0x10ac   : > { %v3539_v22 = vmul.f32 %v7024_v26, %v3538_v5 }
0x10ad   : > { %v3555_v61 = vadd.f32 %v7022_v35, %v3554_v58  ;;  %6267 = vmatmul.msk.bf16.vlgmr.msra.gmra.mxu3 %vm969_vm3, %v3571_v50 }
0x10ae   : > { %v3540_v11 = vadd.f32 %v7024_v26, %v3539_v22 }
0x10af   : > { %v3559_v40 = vsel %vm3558_vm6, %v7022_v35, %v3555_v61 }
0x10b0   : > { %v3564_v39 = vsel %vm3561_vm7, %v3563_v7, %v3559_v40  ;;  %v3544_v13 = vsel %vm3543_vm10, %v7024_v26, %v3540_v11  ;;  %vm4826_vm7 = vcmask 57344  }
0x10b1   : > { %v3565_v57 = vmul.f32 %v8237_v21, %v3564_v39  ;;  %v3545_v21 = vand.u32 2147483647, %v8260_v36  ;;  %v6271_v36 = vld [vmem:[%s8902_s5 + $0x22] sm:$0x3] }
0x10b2   : > { %v3617_v63 = vpop.permute.xlu0 %3616  ;;  %v3782_v31 = vsel %vm1358_vm12, %v6271_v36, 0 }
0x10b3   : > { %v3573_v1 = vpack.c.bf16 %v3565_v57, %v3565_v57  ;;  %v3622_v4 = vsel %vm1175_vm2, %v3617_v63, 0  ;;  %vm3546_vm11 = vcmp.eq.f32.partialorder %v3545_v21, 8.507059e+37  ;;  %3791 = vmatpush.bf16.msrb.mxu3 %v3782_v31  ;;  %v8358_v31 = vld [vmem:[%s8906_s9 + $0x10] sm:$0xff] }
0x10b4   : > { %3631 = vmatpush.bf16.msrb.mxu0 %v3622_v4  ;;  %v3549_v15 = vsel %vm3546_vm11, %v3548_v33, %v3544_v13 }
0x10b5   : > { %6269 = vmatmul.msk.bf16.vlgmr.msra.gmra.mxu1 %vm969_vm3, %v3573_v1  ;;  %v3550_v3 = vmul.f32 %v8228_v0, %v3549_v15  ;;  %v6273_v0 = vld [vmem:[%s8902_s5 + $0x26] sm:$0x3] }
0x10b6   : > { %v3820_v19 = vsel %vm1358_vm12, %v6273_v0, 0 }
0x10b7   : > { %6264 = vmatmul.msk.bf16.vlgmr.msrb.gmra.mxu0 %vm969_vm3, %v3568_v10  ;;  %v3572_v16 = vpack.c.bf16 %v3550_v3, %v3550_v3  ;;  %3829 = vmatpush.bf16.msrb.mxu1 %v3820_v19 }
0x10b8   : > { %3715 = vmatpush.bf16.msra.mxu0 %v3706_v52  ;;  %3867 = vmatpush.bf16.msra.mxu3 %v3858_v60 }
0x10bb   : > { %3905 = vmatpush.bf16.msra.mxu1 %v3896_v28 }
0x10bc   : > { %3810 = vmatpush.bf16.msrb.mxu0 %v3801_v25 }
0x10c7   : > { %6268 = vmatmul.msk.bf16.vlgmr.msra.gmra.mxu0 %vm969_vm3, %v3572_v16 }
0x10c8   : > { %3886 = vmatpush.bf16.msra.mxu0 %v3877_v48 }
0x110f   : > { %v3591_v20 = vpop.f32.mrf.mxu2 }
0x1110   : > { %v3742_v37 = vpack.c.bf16 %v3591_v20, %v3591_v20  ;;  %v3928_v20 = vperm.slane %v8358_v31, 0 }
0x1112   : > { %6278 = vmatmul.msk.bf16.vlgmr.msrb.gmra.mxu2 %vm781_vm1, %v3742_v37 }
0x1115   : > { %v3612_v27 = vpop.f32.mrf.mxu3 }
0x1116   : > { %v3743_v49 = vpack.c.bf16 %v3612_v27, %v3612_v27 }
0x1117   : > { %v3593_v53 = vpop.f32.mrf.mxu2 }
0x1118   : > { %6279 = vmatmul.msk.bf16.vlgmr.msrb.gmra.mxu3 %vm781_vm1, %v3743_v49 }
0x111d   : > { %v3614_v35 = vpop.f32.mrf.mxu3 }
0x111e   : > { %v3654_v14 = vpop.f32.mrf.mxu1 }
0x111f   : > { %v3745_v55 = vpack.c.bf16 %v3654_v14, %v3654_v14  ;;  %v3675_v26 = vpop.f32.mrf.mxu2  ;;  %v6783_v14 = vld [vmem:[%s8903_s6 + $0x28] sm:$0xff] }
0x1120   : > { %v3746_v6 = vpack.c.bf16 %v3675_v26, %v3675_v26  ;;  %3989 = vmatpush.bf16.msrb.mxu2 %v6783_v14 }
0x1121   : > { %6281 = vmatmul.msk.bf16.vlgmr.msrb.gmra.mxu1 %vm781_vm1, %v3745_v55  ;;  %v6791_v55 = vld [vmem:[%s8904_s7 + $0xb8] sm:$0xff] }
0x1122   : > { %6282 = vmatmul.msk.bf16.vlgmr.msra.gmra.mxu2 %vm781_vm1, %v3746_v6  ;;  %4064 = vmatpush.bf16.msrb.mxu3 %v6791_v55 }
0x1126   : > { %v3656_v38 = vpop.f32.mrf.mxu1  ;;  %4065 = vmatpush.bf16.msrb.mxu3 %v6790_v2  ;;  %v4100_v2 = vperm.slane %v8358_v31, 4 }
0x1127   : > { %v3677_v46 = vpop.f32.mrf.mxu2  ;;  %v6789_v38 = vld [vmem:[%s8904_s7 + $0xa8] sm:$0xff] }
0x1128   : > { %v6788_v46 = vld [vmem:[%s8904_s7 + $0xa0] sm:$0xff] }
0x112a   : > { %4066 = vmatpush.bf16.msrb.mxu3 %v6789_v38  ;;  %v4102_v38 = vperm.slane %v8358_v31, 5 }
0x112e   : > { %4067 = vmatpush.bf16.msrb.mxu3 %v6788_v46 }
0x1130   : > { %v3696_v47 = vpop.f32.mrf.mxu3 }
0x1131   : > { %v3747_v45 = vpack.c.bf16 %v3696_v47, %v3696_v47 }
0x1132   : > { %v3738_v54 = vpop.f32.mrf.mxu1 }
0x1133   : > { %v3749_v34 = vpack.c.bf16 %v3738_v54, %v3738_v54  ;;  %6283 = vmatmul.msk.bf16.vlgmr.msra.gmra.mxu3 %vm781_vm1, %v3747_v45  ;;  %v6787_v54 = vld [vmem:[%s8904_s7 + $0x98] sm:$0xff] }
0x1134   : > { %v3633_v51 = vpop.f32.mrf.mxu0  ;;  %4068 = vmatpush.bf16.msrb.mxu3 %v6787_v54 }
0x1135   : > { %v3744_v9 = vpack.c.bf16 %v3633_v51, %v3633_v51  ;;  %6285 = vmatmul.msk.bf16.vlgmr.msra.gmra.mxu1 %vm781_vm1, %v3749_v34 }
0x1137   : > { %6280 = vmatmul.msk.bf16.vlgmr.msrb.gmra.mxu0 %vm781_vm1, %v3744_v9  ;;  %v6786_v9 = vld [vmem:[%s8904_s7 + $0x90] sm:$0xff] }
0x1138   : > { %v3698_v50 = vpop.f32.mrf.mxu3  ;;  %4069 = vmatpush.bf16.msrb.mxu3 %v6786_v9  ;;  %v6811_v9 = vld [vmem:[%s8900_s3 + $0x198] sm:$0xff] }
0x113a   : > { %v3740_v58 = vpop.f32.mrf.mxu1 }
0x113c   : > { %v3635_v59 = vpop.f32.mrf.mxu0 }
0x113d   : > { %v3953_v59 = vperm.slane %v8358_v31, 1 }
0x1144   : > { %v3717_v29 = vpop.f32.mrf.mxu0 }
0x1145   : > { %v3748_v61 = vpack.c.bf16 %v3717_v29, %v3717_v29 }
0x1147   : > { %6284 = vmatmul.msk.bf16.vlgmr.msra.gmra.mxu0 %vm781_vm1, %v3748_v61  ;;  %v3955_v61 = vperm.slane %v8358_v31, 2 }
0x114c   : > { %v3719_v32 = vpop.f32.mrf.mxu0 }
0x1195   : > { %v3774_v7 = vpop.f32.mrf.mxu2 }
0x1196   : > { %v3913_v52 = vsel %vm573_vm0, %v3774_v7, 0.0 }
0x119b   : > { %v3793_v5 = vpop.f32.mrf.mxu3 }
0x119c   : > { %v3914_v1 = vsel %vm573_vm0, %v3793_v5, 0.0 }
0x119d   : > { %v3776_v40 = vpop.f32.mrf.mxu2  ;;  %v3915_v11 = vadd.f32 %v3914_v1, %v3913_v52  ;;  %v4015_v52 = vperm.slane %v8358_v31, 3  ;;  %v6809_v31 = vld [vmem:[%s8900_s3 + $0x188] sm:$0xff] }
0x119e   : > { %v3831_v39 = vpop.f32.mrf.mxu1 }
0x119f   : > { %v3918_v33 = vsel %vm573_vm0, %v3831_v39, 0.0  ;;  %v6785_v39 = vld [vmem:[%s8904_s7 + $0x88] sm:$0xff] }
0x11a0   : > { %4070 = vmatpush.bf16.msrb.mxu3 %v6785_v39  ;;  %v6819_v39 = vld [vmem:[%s8900_s3 + $0x1d8] sm:$0xff] }
0x11a3   : > { %v3795_v62 = vpop.f32.mrf.mxu3 }
0x11a4   : > { %v6784_v62 = vld [vmem:[%s8904_s7 + $0x80] sm:$0xff] }
0x11a5   : > { %v3850_v57 = vpop.f32.mrf.mxu2  ;;  %4071 = vmatpush.bf16.msrb.mxu3 %v6784_v62  ;;  %v6814_v62 = vld [vmem:[%s8900_s3 + $0x1b0] sm:$0xff] }
0x11a6   : > { %v3833_v43 = vpop.f32.mrf.mxu1  ;;  %v3920_v12 = vsel %vm573_vm0, %v3850_v57, 0.0  ;;  %v6910_v57 = vld [vmem:[%s8905_s8 + $0x2] ss:$0 sm:$0xff] }
0x11ad   : > { %v3852_v63 = vpop.f32.mrf.mxu2 }
0x11b2   : > { %v3907_v22 = vpop.f32.mrf.mxu1 }
0x11b3   : > { %v3926_v24 = vsel %vm573_vm0, %v3907_v22, 0.0 }
0x11b4   : > { %v3812_v4 = vpop.f32.mrf.mxu0 }
0x11b5   : > { %v3916_v10 = vsel %vm573_vm0, %v3812_v4, 0.0 }
0x11b6   : > { %v3869_v41 = vpop.f32.mrf.mxu3  ;;  %v3917_v21 = vadd.f32 %v3916_v10, %v3915_v11 }
0x11b7   : > { %v3922_v36 = vsel %vm573_vm0, %v3869_v41, 0.0 }
0x11b8   : > { %v3919_v15 = vadd.f32 %v3918_v33, %v3917_v21 }
0x11ba   : > { %v3909_v13 = vpop.f32.mrf.mxu1  ;;  %v3921_v17 = vadd.f32 %v3920_v12, %v3919_v15 }
0x11bc   : > { %v3814_v3 = vpop.f32.mrf.mxu0  ;;  %v3923_v0 = vadd.f32 %v3922_v36, %v3921_v17  ;;  %v6793_v17 = vld [vmem:[%s8900_s3 + $0x188] sm:$0xff]  ;;  %v6795_v36 = vld [vmem:[%s8900_s3 + $0x198] sm:$0xff] }
0x11bd   : > { %4192 = vmatpush.bf16.msrb.mxu0 %v6793_v17  ;;  %4217 = vmatpush.bf16.msrb.mxu1 %v6795_v36 }
0x11be   : > { %v3871_v16 = vpop.f32.mrf.mxu3 }
0x11c4   : > { %v3888_v19 = vpop.f32.mrf.mxu0 }
0x11c5   : > { %v3924_v18 = vsel %vm573_vm0, %v3888_v19, 0.0  ;;  %v6805_v19 = vld [vmem:[%s8900_s3 + $0x1e8] sm:$0xff] }
0x11c6   : > { %v3925_v23 = vadd.f32 %v3924_v18, %v3923_v0  ;;  %v6797_v0 = vld [vmem:[%s8900_s3 + $0x1a8] sm:$0xff]  ;;  %4342 = vmatpush.bf16.msra.mxu3 %v6805_v19  ;;  %v6792_v18 = vld [vmem:[%s8900_s3 + $0x180] sm:$0xff] }
0x11c7   : > { %4193 = vmatpush.bf16.msrb.mxu0 %v6792_v18 }
0x11c8   : > { %v3927_v37 = vadd.f32 %v3926_v24, %v3925_v23  ;;  %v6794_v23 = vld [vmem:[%s8900_s3 + $0x190] sm:$0xff]  ;;  %v6804_v24 = vld [vmem:[%s8900_s3 + $0x1e0] sm:$0xff] }
0x11c9   : > { %4218 = vmatpush.bf16.msrb.mxu1 %v6794_v23 }
0x11ca   : > { %v3929_v60 = vadd.f32 %v3928_v20, %v3927_v37  ;;  %v6796_v20 = vld [vmem:[%s8900_s3 + $0x1a0] sm:$0xff]  ;;  %4343 = vmatpush.bf16.msra.mxu3 %v6804_v24 }
0x11cc   : > { %v3890_v42 = vpop.f32.mrf.mxu0  ;;  %v3930_v28 = vadd.f32 %v3929_v60, %v8082_v44  ;;  %v6782_v44 = vld [vmem:[%s8903_s6 + $0x20] sm:$0xff]  ;;  %v6799_v60 = vld [vmem:[%s8900_s3 + $0x1b8] sm:$0xff] }
0x11cd   : > { %3990 = vmatpush.bf16.msrb.mxu2 %v6782_v44  ;;  %v6801_v42 = vld [vmem:[%s8900_s3 + $0x1c8] sm:$0xff]  ;;  %4267 = vmatpush.bf16.msra.mxu0 %v6799_v60 }
0x11ce   : > { %v3931_v56 = vsel %vm573_vm0, %v3930_v28, 0.0  ;;  %4292 = vmatpush.bf16.msra.mxu1 %v6801_v42 }
0x11cf   : > { %3932 = vadd.xlane.f32.xlu0 %v3931_v56 }
0x11d1   : > { %4242 = vmatpush.bf16.msra.mxu2 %v6797_v0 }
0x11d5   : > { %4243 = vmatpush.bf16.msra.mxu2 %v6796_v20 }
0x1242   : > { %v3933_v25 = vpop.xlane.xlu0 %3932 }
0x1243   : > { %v3934_v27 = vmul.f32 %v3933_v25, %v7636_v8  ;;  %v6798_v25 = vld [vmem:[%s8900_s3 + $0x1b0] sm:$0xff] }
0x1244   : > { %4268 = vmatpush.bf16.msra.mxu0 %v6798_v25 }
0x1245   : > { %v3935_v49 = vsub.f32 %v3930_v28, %v3934_v27  ;;  %v6803_v28 = vld [vmem:[%s8900_s3 + $0x1d8] sm:$0xff]  ;;  %v6800_v27 = vld [vmem:[%s8900_s3 + $0x1c0] sm:$0xff] }
0x1246   : > { %4293 = vmatpush.bf16.msra.mxu1 %v6800_v27 }
0x1247   : > { %v3936_v53 = vmul.f32 %v3935_v49, %v3935_v49 }
0x1249   : > { %v3937_v35 = vsel %vm573_vm0, %v3936_v53, 0.0  ;;  %v6802_v53 = vld [vmem:[%s8900_s3 + $0x1d0] sm:$0xff] }
0x124a   : > { %3938 = vadd.xlane.f32.xlu1 %v3937_v35 }
0x12bd   : > { %v3939_v26 = vpop.xlane.xlu1 %3938 }
0x12be   : > { %v3940_v6 = vmul.f32 %v3939_v26, %v7636_v8 }
0x12c0   : > { %v3941_v48 = vadd.f32 1e-05, %v3940_v6 }
0x12c2   : > { %7025 = vrsqrt.f32 %v3941_v48  ;;  %vm3948_vm14 = vweird.f32 %v3941_v48 }
0x12c8   : > { %v7026_v47 = vpop.eup %7025 }
0x12c9   : > { %v3943_v45 = vmul.f32 %v7026_v47, %v3941_v48  ;;  %vm3949_vm13 = vweird.f32 %v7026_v47 }
0x12ca   : > { %vm3950_vm15 = vmor %vm3948_vm14, %vm3949_vm13 }
0x12cb   : > { %v3944_v34 = vmul.f32 %v7026_v47, %v3943_v45 }
0x12cd   : > { %v3945_v51 = vmul.f32 0.5, %v3944_v34  ;;  %v6807_v34 = vld [vmem:[%s8900_s3 + $0x1f8] sm:$0xff] }
0x12cf   : > { %v3946_v50 = vsub.f32 1.5, %v3945_v51  ;;  %v6813_v51 = vld [vmem:[%s8900_s3 + $0x1a8] sm:$0xff] }
0x12d1   : > { %v3947_v58 = vmul.f32 %v7026_v47, %v3946_v50  ;;  %v6806_v50 = vld [vmem:[%s8900_s3 + $0x1f0] sm:$0xff] }
0x12d3   : > { %v3951_v29 = vsel %vm3950_vm15, %v7026_v47, %v3947_v58  ;;  %v6812_v58 = vld [vmem:[%s8900_s3 + $0x1a0] sm:$0xff] }
0x12d4   : > { %v3952_v32 = vmul.f32 %v3951_v29, %v3935_v49  ;;  %v6810_v29 = vld [vmem:[%s8900_s3 + $0x190] sm:$0xff] }
0x12d6   : > { %v3954_v7 = vmul.f32 %v3953_v59, %v3952_v32  ;;  %v6808_v59 = vld [vmem:[%s8900_s3 + $0x180] sm:$0xff] }
0x12d7   : > { %v492_v32 = vld [vmem:[%s8488_s29] sm:$0x1] }
0x12d8   : > { %v3956_v5 = vadd.f32 %v3955_v61, %v3954_v7  ;;  %v6821_v61 = vld [vmem:[%s8900_s3 + $0x1e8] sm:$0xff]  ;;  %v8491_v7 = vpack.c.bf16 %v492_v32, %v492_v32 }
0x12da   : > { %v3962_v40 = vpack.c.bf16 %v3956_v5, %v3956_v5 }
0x12dc   : > { %6300 = vmatmul.msk.bf16.vlgmr.msrb.gmra.mxu2 %vm573_vm0, %v3962_v40  ;;  %v6815_v40 = vld [vmem:[%s8900_s3 + $0x1b8] sm:$0xff] }
0x12dd   : > { %4317 = vmatpush.bf16.msrb.mxu2 %v6803_v28 }
0x12e1   : > { %4318 = vmatpush.bf16.msrb.mxu2 %v6802_v53 }
0x135f   : > { %v3992_v43 = vpop.f32.mrf.mxu2 }
0x1360   : > { %v3993_v63 = vadd.f32 %v6910_v57, %v3992_v43  ;;  %v6818_v57 = vld [vmem:[%s8900_s3 + $0x1d0] sm:$0xff]  ;;  %v6817_v43 = vld [vmem:[%s8900_s3 + $0x1c8] sm:$0xff] }
0x1362   : > { %v3996_v22 = vmax.f32 %v3993_v63, 0.0  ;;  %v6816_v63 = vld [vmem:[%s8900_s3 + $0x1c0] sm:$0xff] }
0x1364   : > { %v4014_v1 = vpack.c.bf16 %v3996_v22, %v3996_v22  ;;  %v6911_v22 = vld [vmem:[%s8901_s4 + $0x18] ss:$0 sm:$0xff] }
0x1366   : > { %4072 = vmatmul.bf16.vlgmr.msrb.gmra.mxu3 %v4014_v1  ;;  %v6912_v1 = vld [vmem:[%s8901_s4 + $0x19] ss:$0 sm:$0xff] }
0x1367   : > { %v3994_v4 = vpop.f32.mrf.mxu2  ;;  %4486 = vmatpush.bf16.msrb.mxu3 %v6813_v51 }
0x1368   : > { %v6823_v4 = vld [vmem:[%s8900_s3 + $0x1f8] sm:$0xff] }
0x136b   : > { %4487 = vmatpush.bf16.msrb.mxu3 %v6812_v58 }
0x13e9   : > { %v4073_v10 = vpop.f32.mrf.mxu3 }
0x13ea   : > { %v4074_v11 = vadd.f32 %v4073_v10, %v4015_v52 }
0x13ec   : > { %v4077_v41 = vadd.f32 %v4074_v11, %v3956_v5  ;;  %v6820_v5 = vld [vmem:[%s8900_s3 + $0x1e0] sm:$0xff] }
0x13ee   : > { %v4078_v21 = vsel %vm573_vm0, %v4077_v41, 0.0 }
0x13ef   : > { %4079 = vadd.xlane.f32.xlu2 %v4078_v21  ;;  %v6822_v21 = vld [vmem:[%s8900_s3 + $0x1f0] sm:$0xff] }
0x13f1   : > { %v4075_v13 = vpop.f32.mrf.mxu3 }
0x1462   : > { %v4080_v33 = vpop.xlane.xlu2 %4079 }
0x1463   : > { %v4081_v15 = vmul.f32 %v4080_v33, %v7636_v8 }
0x1465   : > { %v4082_v3 = vsub.f32 %v4077_v41, %v4081_v15  ;;  %v6913_v15 = vld [vmem:[%s8901_s4 + $0x1a] ss:$0 sm:$0xff] }
0x1467   : > { %v4083_v16 = vmul.f32 %v4082_v3, %v4082_v3 }
0x1469   : > { %v4084_v12 = vsel %vm573_vm0, %v4083_v16, 0.0 }
0x146a   : > { %4085 = vadd.xlane.f32.xlu0 %v4084_v12 }
0x14dd   : > { %v4086_v37 = vpop.xlane.xlu0 %4085 }
0x14de   : > { %v4087_v56 = vmul.f32 %v4086_v37, %v7636_v8 }
0x14e0   : > { %v4088_v49 = vadd.f32 1e-05, %v4087_v56  ;;  %v6915_v56 = vld [vmem:[%s8901_s4 + $0x1b] ss:$0 sm:$0xff] }
0x14e2   : > { %7027 = vrsqrt.f32 %v4088_v49  ;;  %vm4095_vm5 = vweird.f32 %v4088_v49 }
0x14e8   : > { %v7028_v35 = vpop.eup %7027 }
0x14e9   : > { %v4090_v14 = vmul.f32 %v7028_v35, %v4088_v49  ;;  %vm4096_vm4 = vweird.f32 %v7028_v35 }
0x14ea   : > { %vm4097_vm6 = vmor %vm4095_vm5, %vm4096_vm4 }
0x14eb   : > { %v4091_v44 = vmul.f32 %v7028_v35, %v4090_v14 }
0x14ed   : > { %v4092_v55 = vmul.f32 0.5, %v4091_v44 }
0x14ef   : > { %v4093_v26 = vsub.f32 1.5, %v4092_v55 }
0x14f1   : > { %v4094_v6 = vmul.f32 %v7028_v35, %v4093_v26  ;;  %v6917_v26 = vld [vmem:[%s8901_s4 + $0x1d] ss:$0 sm:$0xff] }
0x14f3   : > { %v4098_v48 = vsel %vm4097_vm6, %v7028_v35, %v4094_v6 }
0x14f4   : > { %v4099_v46 = vmul.f32 %v4098_v48, %v4082_v3  ;;  %v6914_v3 = vld [vmem:[%s8901_s4 + $0x1e] ss:$0 sm:$0xff] }
0x14f6   : > { %v4101_v47 = vmul.f32 %v4100_v2, %v4099_v46  ;;  %v6916_v2 = vld [vmem:[%s8901_s4 + $0x1c] ss:$0 sm:$0xff] }
0x14f8   : > { %v4103_v45 = vadd.f32 %v4102_v38, %v4101_v47 }
0x14fa   : > { %v4104_v54 = vpack.c.bf16 %v4103_v45, %v4103_v45 }
0x14fc   : > { %6397 = vmatmul.msk.bf16.vlgmr.msrb.gmra.mxu0 %vm573_vm0, %v4104_v54  ;;  %6406 = vmatmul.msk.bf16.vlgmr.msrb.gmra.mxu1 %vm573_vm0, %v4104_v54 }
0x14fd   : > { %6415 = vmatmul.msk.bf16.vlgmr.msra.gmra.mxu2 %vm573_vm0, %v4104_v54  ;;  %6451 = vmatmul.msk.bf16.vlgmr.msra.gmra.mxu3 %vm573_vm0, %v4104_v54 }
0x14fe   : > { %4367 = vmatpush.bf16.msrb.mxu0 %v6807_v34  ;;  %4436 = vmatpush.bf16.msrb.mxu1 %v6809_v31  ;;  %v6918_v31 = vld [vmem:[%s8901_s4 + $0x1f] ss:$0 sm:$0xff] }
0x14ff   : > { %4461 = vmatpush.bf16.msra.mxu2 %v6811_v9  ;;  %4586 = vmatpush.bf16.msra.mxu3 %v6821_v61 }
0x1502   : > { %4368 = vmatpush.bf16.msrb.mxu0 %v6806_v50  ;;  %4437 = vmatpush.bf16.msrb.mxu1 %v6808_v59 }
0x1503   : > { %4462 = vmatpush.bf16.msra.mxu2 %v6810_v29  ;;  %4587 = vmatpush.bf16.msra.mxu3 %v6820_v5 }
0x150c   : > { %6424 = vmatmul.msk.bf16.vlgmr.msra.gmra.mxu0 %vm573_vm0, %v4104_v54  ;;  %6433 = vmatmul.msk.bf16.vlgmr.msra.gmra.mxu1 %vm573_vm0, %v4104_v54 }
0x150d   : > { %6442 = vmatmul.msk.bf16.vlgmr.msrb.gmra.mxu2 %vm573_vm0, %v4104_v54  ;;  %6527 = vmatmul.msk.bf16.vlgmr.msrb.gmra.mxu3 %vm573_vm0, %v8491_v7 }
0x150e   : > { %4511 = vmatpush.bf16.msra.mxu0 %v6815_v40  ;;  %4561 = vmatpush.bf16.msrb.mxu2 %v6819_v39 }
0x150f   : > { %4536 = vmatpush.bf16.msra.mxu1 %v6817_v43 }
0x1512   : > { %4512 = vmatpush.bf16.msra.mxu0 %v6814_v62  ;;  %4562 = vmatpush.bf16.msrb.mxu2 %v6818_v57 }
0x1513   : > { %4537 = vmatpush.bf16.msra.mxu1 %v6816_v63 }
0x151c   : > { %6460 = vmatmul.msk.bf16.vlgmr.msrb.gmra.mxu0 %vm573_vm0, %v4104_v54  ;;  %6509 = vmatmul.msk.bf16.vlgmr.msrb.gmra.mxu1 %vm573_vm0, %v8491_v7 }
0x151d   : > { %6518 = vmatmul.msk.bf16.vlgmr.msra.gmra.mxu2 %vm573_vm0, %v8491_v7  ;;  %6563 = vmatmul.msk.bf16.vlgmr.msra.gmra.mxu3 %vm573_vm0, %v8491_v7 }
0x151e   : > { %4611 = vmatpush.bf16.msrb.mxu0 %v6823_v4 }
0x1522   : > { %4612 = vmatpush.bf16.msrb.mxu0 %v6822_v21 }
0x152c   : > { %6536 = vmatmul.msk.bf16.vlgmr.msra.gmra.mxu0 %vm573_vm0, %v8491_v7  ;;  %6545 = vmatmul.msk.bf16.vlgmr.msra.gmra.mxu1 %vm573_vm0, %v8491_v7 }
0x152d   : > { %6554 = vmatmul.msk.bf16.vlgmr.msrb.gmra.mxu2 %vm573_vm0, %v8491_v7 }
0x153c   : > { %6572 = vmatmul.msk.bf16.vlgmr.msrb.gmra.mxu0 %vm573_vm0, %v8491_v7 }
0x1579   : > { %v4195_v52 = vpop.f32.mrf.mxu0  ;;  %v4220_v10 = vpop.f32.mrf.mxu1 }
0x157a   : > { %v4196_v11 = vadd.f32 %v6911_v22, %v4195_v52  ;;  %v4221_v41 = vadd.f32 %v6912_v1, %v4220_v10  ;;  %v6495_v52 = vld [vmem:[%s8901_s4 + $0x1a] sm:$0x1] }
0x157c   : > { %v4626_v13 = vpack.c.bf16 %v4196_v11, %v4196_v11  ;;  %v4627_v33 = vpack.c.bf16 %v4221_v41, %v4221_v41 }
0x157e   : > { %v4635_v16 = vunpack.c.l.b16 %v4626_v13  ;;  %v4659_v12 = vunpack.c.l.b16 %v4627_v33 }
0x1580   : > { %v8550_v17 = vpack.c.b16 %v4635_v16, %v4635_v16  ;;  %v8552_v36 = vpack.c.b16 %v4659_v12, %v4659_v12  ;;  %v4245_v0 = vpop.f32.mrf.mxu2  ;;  %v4345_v19 = vpop.f32.mrf.mxu3 }
0x1581   : > { %v4246_v18 = vadd.f32 %v6913_v15, %v4245_v0  ;;  %v4346_v23 = vadd.f32 %v6914_v3, %v4345_v19  ;;  %v4197_v20 = vpop.f32.mrf.mxu0  ;;  %v4222_v24 = vpop.f32.mrf.mxu1  ;;  %v6496_v3 = vld [vmem:[%s8901_s4 + $0x1b] sm:$0x1] }
0x1582   : > { %4661 = vrot.lane.b32.xlu1 %v8552_v36, %s7131_s19  ;;  %4637 = vrot.lane.b32.xlu0 %v8550_v17, %s7131_s19  ;;  %v6493_v20 = vld [vmem:[%s8901_s4 + $0x18] sm:$0x1]  ;;  %v6494_v24 = vld [vmem:[%s8901_s4 + $0x19] sm:$0x1] }
0x1583   : > { %v4628_v37 = vpack.c.bf16 %v4246_v18, %v4246_v18  ;;  %v4632_v60 = vpack.c.bf16 %v4346_v23, %v4346_v23 }
0x1585   : > { %v4683_v42 = vunpack.c.l.b16 %v4628_v37  ;;  %v4779_v28 = vunpack.c.l.b16 %v4632_v60 }
0x1587   : > { %v8563_v25 = vpack.c.b16 %v4683_v42, %v4683_v42  ;;  %v8565_v27 = vpack.c.b16 %v4779_v28, %v4779_v28 }
0x1588   : > { %v4247_v49 = vpop.f32.mrf.mxu2  ;;  %v4347_v53 = vpop.f32.mrf.mxu3 }
0x1589   : > { %4685 = vrot.lane.b32.xlu2 %v8563_v25, %s7131_s19  ;;  %v4270_v35 = vpop.f32.mrf.mxu0  ;;  %v4295_v14 = vpop.f32.mrf.mxu1 }
0x158a   : > { %v4271_v44 = vadd.f32 %v6915_v56, %v4270_v35  ;;  %4781 = vrot.lane.b32.xlu0 %v8565_v27, %s7131_s19  ;;  %v4296_v54 = vadd.f32 %v6916_v2, %v4295_v14 }
0x158c   : > { %v4629_v55 = vpack.c.bf16 %v4271_v44, %v4271_v44  ;;  %v4630_v9 = vpack.c.bf16 %v4296_v54, %v4296_v54  ;;  %v6498_v54 = vld [vmem:[%s8901_s4 + $0x1d] sm:$0x1] }
0x158e   : > { %v4707_v6 = vunpack.c.l.b16 %v4629_v55  ;;  %v4731_v61 = vunpack.c.l.b16 %v4630_v9  ;;  %v6499_v55 = vld [vmem:[%s8901_s4 + $0x1e] sm:$0x1] }
0x1590   : > { %v8577_v48 = vpack.c.b16 %v4707_v6, %v4707_v6  ;;  %v4320_v38 = vpop.f32.mrf.mxu2  ;;  %v8588_v40 = vpack.c.b16 %v4731_v61, %v4731_v61  ;;  %v4489_v57 = vpop.f32.mrf.mxu3 }
0x1591   : > { %v4321_v46 = vadd.f32 %v6917_v26, %v4320_v38  ;;  %v4272_v47 = vpop.f32.mrf.mxu0  ;;  %v4297_v45 = vpop.f32.mrf.mxu1  ;;  %v4490_v21 = vadd.f32 %v6495_v52, %v4489_v57 }
0x1592   : > { %4709 = vrot.lane.b32.xlu2 %v8577_v48, %s7131_s19 }
0x1593   : > { %v4631_v34 = vpack.c.bf16 %v4321_v46, %v4321_v46  ;;  %v4620_v33 = vpack.c.bf16 %v4490_v21, %v4490_v21 }
0x1595   : > { %v4755_v51 = vunpack.c.l.b16 %v4631_v34 }
0x1597   : > { %v8584_v50 = vpack.c.b16 %v4755_v51, %v4755_v51 }
0x1598   : > { %v4322_v58 = vpop.f32.mrf.mxu2  ;;  %v4491_v43 = vpop.f32.mrf.mxu3 }
0x1599   : > { %4757 = vrot.lane.b32.xlu1 %v8584_v50, %s7131_s19  ;;  %v4370_v59 = vpop.f32.mrf.mxu0  ;;  %v4439_v63 = vpop.f32.mrf.mxu1  ;;  %v6497_v58 = vld [vmem:[%s8901_s4 + $0x1c] sm:$0x1] }
0x159a   : > { %v4371_v29 = vadd.f32 %v6918_v31, %v4370_v59  ;;  %v4440_v42 = vadd.f32 %v6493_v20, %v4439_v63  ;;  %v6500_v59 = vld [vmem:[%s8901_s4 + $0x1f] sm:$0x1] }
0x159c   : > { %v4633_v32 = vpack.c.bf16 %v4371_v29, %v4371_v29  ;;  %v4618_v14 = vpack.c.bf16 %v4440_v42, %v4440_v42 }
0x159e   : > { %v4803_v5 = vunpack.c.l.b16 %v4633_v32 }
0x15a0   : > { %v8590_v39 = vpack.c.b16 %v4803_v5, %v4803_v5  ;;  %v4464_v1 = vpop.f32.mrf.mxu2  ;;  %v4589_v10 = vpop.f32.mrf.mxu3 }
0x15a1   : > { %4733 = vrot.lane.b32.xlu1 %v8588_v40, %s7131_s19  ;;  %v4372_v62 = vpop.f32.mrf.mxu0  ;;  %v4441_v22 = vpop.f32.mrf.mxu1  ;;  %v4465_v49 = vadd.f32 %v6494_v24, %v4464_v1  ;;  %v4590_v2 = vadd.f32 %v6499_v55, %v4589_v10 }
0x15a2   : > { %4805 = vrot.lane.b32.xlu0 %v8590_v39, %s7131_s19  ;;  %s5716_s19 = scalar_lea.hbm %s8911_s14, %s7230_s17 }
0x15a3   : > { %v4619_v44 = vpack.c.bf16 %v4465_v49, %v4465_v49  ;;  %v4624_v47 = vpack.c.bf16 %v4590_v2, %v4590_v2  ;;  %s5720_s25 = sshll.u32 %s5716_s19, 4  ;;  %s5721_s25 = int_to_ptr.hbm [resolvable:$true] %s5720_s25 }
0x15a4   : > { %s7081_s21 = sshra.s32 %s5721_s25, 4  ;;  %s7082_s21 = int_to_ptr.hbm [resolvable:$true] %s7081_s21 }
0x15a5   : > { %s7083_s26 = scalar_lea.hbm %s7082_s21, 1  ;;  %p7088_p0 = scmp.lt.s32.totalorder %s7082_s21, %s8911_s14 }
0x15a6   : > { %p7084_p11 = scmp.ne.s32.totalorder %s7082_s21, %s7083_s26  ;;  %p7089_p1 = scmp.lt.s32.totalorder %s7087_s16, %s7083_s26 }
0x15a8   : > { %v4466_v4 = vpop.f32.mrf.mxu2  ;;  %v4591_v15 = vpop.f32.mrf.mxu3  ;;  %p7085_p12 = pnand %p7084_p11, %p7247_p5  ;;  %p7090_p2 = por %p7089_p1, %p7088_p0 }
0x15a9   : > { %v4514_v13 = vpop.f32.mrf.mxu0  ;;  %v4539_v53 = vpop.f32.mrf.mxu1 }
0x15aa   : > { %v4515_v0 = vadd.f32 %v6496_v3, %v4514_v13  ;;  %v4540_v5 = vadd.f32 %v6497_v58, %v4539_v53  ;;  %p7086_p13 = pneg %p7085_p12 }
0x15ac   : > { %v4621_v23 = vpack.c.bf16 %v4515_v0, %v4515_v0  ;;  %v4622_v43 = vpack.c.bf16 %v4540_v5, %v4540_v5  ;;  %p7091_p3 = pnand %p7090_p2, %p7086_p13 }
0x15b0   : > { %v4564_v19 = vpop.f32.mrf.mxu2 }
0x15b1   : > { %v4516_v18 = vpop.f32.mrf.mxu0  ;;  %v4541_v46 = vpop.f32.mrf.mxu1  ;;  %v4565_v31 = vadd.f32 %v6498_v54, %v4564_v19 }
0x15b3   : > { %v4623_v9 = vpack.c.bf16 %v4565_v31, %v4565_v31 }
0x15b8   : > { %v4566_v35 = vpop.f32.mrf.mxu2 }
0x15b9   : > { %v4614_v38 = vpop.f32.mrf.mxu0 }
0x15ba   : > { %v4615_v57 = vadd.f32 %v6500_v59, %v4614_v38 }
0x15bc   : > { %v4625_v63 = vpack.c.bf16 %v4615_v57, %v4615_v57 }
0x15c1   : > { %v4616_v45 = vpop.f32.mrf.mxu0 }
0x15e3   : > { %v4686_v11 = vpop.permute.xlu2 %4685 }
0x15e4   : > { %v4691_v41 = vsel %vm781_vm1, %v4686_v11, 0 }
0x15e5   : > { %4700 = vmatpush.bf16.xpose.msrb.mxu3 %v4691_v41 }
0x15ec   : > { %6575 = vmatmul.msk.bf16.vlgmr.msrb.gmra.mxu3 %vm781_vm1, %v4620_v33  ;;  %v4710_v16 = vpop.permute.xlu2 %4709 }
0x15ed   : > { %v4715_v12 = vsel %vm781_vm1, %v4710_v16, 0 }
0x15ee   : > { %4724 = vmatpush.bf16.xpose.msra.mxu0 %v4715_v12 }
0x15f4   : > { %v4662_v37 = vpop.permute.xlu1 %4661  ;;  %v4638_v60 = vpop.permute.xlu0 %4637 }
0x15f5   : > { %v4667_v28 = vsel %vm781_vm1, %v4662_v37, 0  ;;  %v4643_v56 = vsel %vm781_vm1, %v4638_v60, 0  ;;  %6576 = vmatmul.msk.bf16.vlgmr.msra.gmra.mxu0 %vm781_vm1, %v4621_v23 }
0x15f6   : > { %4652 = vmatpush.bf16.xpose.msrb.mxu1 %v4643_v56  ;;  %4676 = vmatpush.bf16.xpose.msra.mxu2 %v4667_v28 }
0x15fc   : > { %v4782_v26 = vpop.permute.xlu0 %4781 }
0x15fd   : > { %v4787_v6 = vsel %vm781_vm1, %v4782_v26, 0  ;;  %6573 = vmatmul.msk.bf16.vlgmr.msrb.gmra.mxu1 %vm781_vm1, %v4618_v14  ;;  %6574 = vmatmul.msk.bf16.vlgmr.msra.gmra.mxu2 %vm781_vm1, %v4619_v44 }
0x15fe   : > { %4796 = vmatpush.bf16.xpose.msra.mxu3 %v4787_v6 }
0x1605   : > { %6579 = vmatmul.msk.bf16.vlgmr.msra.gmra.mxu3 %vm781_vm1, %v4624_v47 }
0x160b   : > { %v4758_v34 = vpop.permute.xlu1 %4757 }
0x160c   : > { %v4763_v51 = vsel %vm781_vm1, %v4758_v34, 0 }
0x160d   : > { %4772 = vmatpush.bf16.xpose.msrb.mxu2 %v4763_v51 }
0x1613   : > { %v4734_v29 = vpop.permute.xlu1 %4733 }
0x1614   : > { %v4739_v61 = vsel %vm781_vm1, %v4734_v29, 0  ;;  %6578 = vmatmul.msk.bf16.vlgmr.msrb.gmra.mxu2 %vm781_vm1, %v4623_v9  ;;  %v4806_v32 = vpop.permute.xlu0 %4805 }
0x1615   : > { %v4811_v62 = vsel %vm781_vm1, %v4806_v32, 0  ;;  %4748 = vmatpush.bf16.xpose.msra.mxu1 %v4739_v61 }
0x1616   : > { %4820 = vmatpush.bf16.xpose.msrb.mxu0 %v4811_v62 }
0x161c   : > { %6577 = vmatmul.msk.bf16.vlgmr.msra.gmra.mxu1 %vm781_vm1, %v4622_v43 }
0x161d   : > { %6580 = vmatmul.msk.bf16.vlgmr.msrb.gmra.mxu0 %vm781_vm1, %v4625_v63 }
0x166f   : > { %v4702_v22 = vpop.f32.mrf.mxu3 }
0x1670   : > { %v4703_v1 = vadd.f32 %v4702_v22, %v7419_v30 }
0x1672   : > { %v4833_v4 = vsel %vm4826_vm7, %v4703_v1, -inf  ;;  %v4726_v52 = vpop.f32.mrf.mxu0 }
0x1673   : > { %4834 = vmax.xlane.f32.xlu1 %v4833_v4  ;;  %v4727_v12 = vadd.f32 %v4726_v52, %v7419_v30 }
0x1675   : > { %v4836_v23 = vsel %vm4826_vm7, %v4727_v12, -inf }
0x1677   : > { %v4704_v10 = vpop.f32.mrf.mxu3 }
0x167a   : > { %v4654_v11 = vpop.f32.mrf.mxu1  ;;  %v4728_v41 = vpop.f32.mrf.mxu0 }
0x167b   : > { %v4655_v21 = vadd.f32 %v4654_v11, %v7419_v30 }
0x167d   : > { %v4827_v13 = vsel %vm4826_vm7, %v4655_v21, -inf }
0x167e   : > { %4828 = vmax.xlane.f32.xlu0 %v4827_v13 }
0x1680   : > { %v4678_v33 = vpop.f32.mrf.mxu2 }
0x1681   : > { %v4679_v15 = vadd.f32 %v4678_v33, %v7419_v30 }
0x1682   : > { %v4656_v3 = vpop.f32.mrf.mxu1 }
0x1683   : > { %v4830_v16 = vsel %vm4826_vm7, %v4679_v15, -inf }
0x1684   : > { %4831 = vmax.xlane.f32.xlu2 %v4830_v16 }
0x1688   : > { %v4798_v0 = vpop.f32.mrf.mxu3  ;;  %v4680_v19 = vpop.f32.mrf.mxu2 }
0x1689   : > { %v8644_v18 = vadd.f32 %v4798_v0, %v7419_v30 }
0x168b   : > { %v4845_v20 = vsel %vm4826_vm7, %v8644_v18, -inf }
0x168c   : > { %4837 = vmax.xlane.f32.xlu2 %v4836_v23  ;;  %4846 = vmax.xlane.f32.xlu0 %v4845_v20 }
0x1690   : > { %v4800_v24 = vpop.f32.mrf.mxu3 }
0x1697   : > { %v4774_v37 = vpop.f32.mrf.mxu2 }
0x1698   : > { %v4775_v60 = vadd.f32 %v4774_v37, %v7419_v30 }
0x1699   : > { %v4750_v42 = vpop.f32.mrf.mxu1 }
0x169a   : > { %v4751_v28 = vadd.f32 %v4750_v42, %v7419_v30  ;;  %v4842_v56 = vsel %vm4826_vm7, %v4775_v60, -inf  ;;  %v4822_v49 = vpop.f32.mrf.mxu0 }
0x169b   : > { %4843 = vmax.xlane.f32.xlu1 %v4842_v56  ;;  %v4823_v35 = vadd.f32 %v4822_v49, %v7419_v30 }
0x169c   : > { %v4839_v53 = vsel %vm4826_vm7, %v4751_v28, -inf }
0x169d   : > { %4840 = vmax.xlane.f32.xlu2 %v4839_v53  ;;  %v4848_v44 = vsel %vm4826_vm7, %v4823_v35, -inf }
0x169f   : > { %v4776_v14 = vpop.f32.mrf.mxu2 }
0x16a1   : > { %v4752_v55 = vpop.f32.mrf.mxu1 }
0x16a2   : > { %v4824_v26 = vpop.f32.mrf.mxu0 }
0x16a3   : > { %4849 = vmax.xlane.f32.xlu1 %v4848_v44 }
0x16e6   : > { %v4835_v6 = vpop.xlane.xlu1 %4834 }
0x16e7   : > { %v4853_v2 = vsub.f32 %v4703_v1, %v4835_v6 }
0x16e9   : > { %v4863_v38 = vmul.f32 1.442695, %v4853_v2 }
0x16eb   : > { %7029 = vpow2.f32 %v4863_v38 }
0x16f1   : > { %v8655_v46 = vpop.eup %7029  ;;  %v4829_v47 = vpop.xlane.xlu0 %4828 }
0x16f2   : > { %v4851_v45 = vsub.f32 %v4655_v21, %v4829_v47  ;;  %v4881_v54 = vsel %vm4826_vm7, %v8655_v46, 0.0 }
0x16f3   : > { %4882 = vadd.xlane.f32.xlu2 %v4881_v54 }
0x16f4   : > { %v4859_v30 = vmul.f32 1.442695, %v4851_v45 }
0x16f6   : > { %7031 = vpow2.f32 %v4859_v30 }
0x16f7   : > { %v4832_v34 = vpop.xlane.xlu2 %4831 }
0x16f8   : > { %v4852_v51 = vsub.f32 %v4679_v15, %v4832_v34 }
0x16fa   : > { %v4861_v31 = vmul.f32 1.442695, %v4852_v51 }
0x16fc   : > { %v8659_v9 = vpop.eup %7031  ;;  %7033 = vpow2.f32 %v4861_v31 }
0x16fd   : > { %v4875_v58 = vsel %vm4826_vm7, %v8659_v9, 0.0 }
0x16fe   : > { %4876 = vadd.xlane.f32.xlu1 %v4875_v58 }
0x16ff   : > { %v4838_v59 = vpop.xlane.xlu2 %4837  ;;  %v4847_v11 = vpop.xlane.xlu0 %4846 }
0x1700   : > { %v4854_v29 = vsub.f32 %v4727_v12, %v4838_v59 }
0x1702   : > { %v8663_v61 = vpop.eup %7033  ;;  %v4865_v32 = vmul.f32 1.442695, %v4854_v29 }
0x1703   : > { %v4878_v5 = vsel %vm4826_vm7, %v8663_v61, 0.0 }
0x1704   : > { %7035 = vpow2.f32 %v4865_v32  ;;  %4879 = vadd.xlane.f32.xlu0 %v4878_v5 }
0x170a   : > { %v8667_v62 = vpop.eup %7035 }
0x170b   : > { %5069 = vrot.lane.b32.xlu2 %v8563_v25, %s7132_s24  ;;  %v4884_v57 = vsel %vm4826_vm7, %v8667_v62, 0.0 }
0x170c   : > { %4885 = vadd.xlane.f32.xlu0 %v4884_v57 }
0x170e   : > { %v4844_v43 = vpop.xlane.xlu1 %4843 }
0x170f   : > { %v4856_v63 = vsub.f32 %v4775_v60, %v4844_v43 }
0x1710   : > { %v4841_v1 = vpop.xlane.xlu2 %4840 }
0x1711   : > { %v4869_v22 = vmul.f32 1.442695, %v4856_v63  ;;  %v4855_v4 = vsub.f32 %v4751_v28, %v4841_v1 }
0x1713   : > { %7037 = vpow2.f32 %v4869_v22  ;;  %v4867_v10 = vmul.f32 1.442695, %v4855_v4 }
0x1715   : > { %7039 = vpow2.f32 %v4867_v10 }
0x1716   : > { %v4850_v41 = vpop.xlane.xlu1 %4849 }
0x1717   : > { %5027 = vrot.lane.b32.xlu1 %v8550_v17, %s7132_s24  ;;  %v4857_v17 = vsub.f32 %v8644_v18, %v4847_v11  ;;  %v4858_v21 = vsub.f32 %v4823_v35, %v4850_v41 }
0x1719   : > { %v8677_v52 = vpop.eup %7037  ;;  %v4871_v13 = vmul.f32 1.442695, %v4857_v17 }
0x171a   : > { %v4890_v25 = vsel %vm4826_vm7, %v8677_v52, 0.0 }
0x171b   : > { %v8682_v33 = vpop.eup %7039  ;;  %7041 = vpow2.f32 %v4871_v13 }
0x171c   : > { %v4887_v15 = vsel %vm4826_vm7, %v8682_v33, 0.0 }
0x1720   : > { %5048 = vrot.lane.b32.xlu0 %v8552_v36, %s7132_s24  ;;  %v4873_v36 = vmul.f32 1.442695, %v4858_v21 }
0x1721   : > { %v8686_v3 = vpop.eup %7041 }
0x1722   : > { %7043 = vpow2.f32 %v4873_v36  ;;  %v4893_v12 = vsel %vm4826_vm7, %v8686_v3, 0.0 }
0x1728   : > { %v8688_v16 = vpop.eup %7043 }
0x1729   : > { %v4896_v0 = vsel %vm4826_vm7, %v8688_v16, 0.0 }
0x1734   : > { %4891 = vadd.xlane.f32.xlu2 %v4890_v25 }
0x1741   : > { %4888 = vadd.xlane.f32.xlu1 %v4887_v15 }
0x1749   : > { %4894 = vadd.xlane.f32.xlu1 %v4893_v12 }
0x174a   : > { %4897 = vadd.xlane.f32.xlu0 %v4896_v0 }
0x174c   : > { %5090 = vrot.lane.b32.xlu2 %v8577_v48, %s7132_s24 }
0x1754   : > { %5132 = vrot.lane.b32.xlu2 %v8584_v50, %s7132_s24 }
0x175c   : > { %5111 = vrot.lane.b32.xlu2 %v8588_v40, %s7132_s24 }
0x1762   : > { %5153 = vrot.lane.b32.xlu1 %v8565_v27, %s7132_s24 }
0x1766   : > { %v4883_v19 = vpop.xlane.xlu2 %4882 }
0x1767   : > { %7045 = vrcp.f32 %v4883_v19  ;;  %v4940_v37 = vand.u32 2147483648, %v4883_v19  ;;  %v4938_v40 = vand.u32 2147483647, %v4883_v19  ;;  %vm4934_vm9 = vweird.f32 %v4883_v19 }
0x1769   : > { %v4941_v27 = vor.u32 1.1754944e-38, %v4940_v37  ;;  %vm4939_vm11 = vcmp.eq.f32.partialorder %v4938_v40, 8.507059e+37 }
0x176a   : > { %5174 = vrot.lane.b32.xlu1 %v8590_v39, %s7132_s24 }
0x176d   : > { %v7046_v18 = vpop.eup %7045 }
0x176e   : > { %v4930_v23 = vmul.f32 %v7046_v18, %v4883_v19  ;;  %v5070_v20 = vpop.permute.xlu2 %5069  ;;  %vm4935_vm8 = vweird.f32 %v7046_v18 }
0x176f   : > { %v5075_v24 = vsel %vm1175_vm2, %v5070_v20, 0  ;;  %vm4936_vm10 = vmor %vm4934_vm9, %vm4935_vm8 }
0x1770   : > { %v4931_v48 = vsub.f32 1.0, %v4930_v23  ;;  %5084 = vmatpush.bf16.msrb.mxu3 %v5075_v24 }
0x1771   : > { %v4877_v50 = vpop.xlane.xlu1 %4876 }
0x1772   : > { %v4932_v60 = vmul.f32 %v7046_v18, %v4931_v48  ;;  %7047 = vrcp.f32 %v4877_v50  ;;  %v4910_v2 = vand.u32 2147483648, %v4877_v50  ;;  %vm4904_vm14 = vweird.f32 %v4877_v50 }
0x1773   : > { %v4908_v47 = vand.u32 2147483647, %v4877_v50 }
0x1774   : > { %v4933_v42 = vadd.f32 %v7046_v18, %v4932_v60  ;;  %v4911_v30 = vor.u32 1.1754944e-38, %v4910_v2 }
0x1775   : > { %vm4909_vm4 = vcmp.eq.f32.partialorder %v4908_v47, 8.507059e+37 }
0x1776   : > { %v4937_v28 = vsel %vm4936_vm10, %v7046_v18, %v4933_v42 }
0x1777   : > { %v4942_v39 = vsel %vm4939_vm11, %v4941_v27, %v4937_v28  ;;  %v4880_v56 = vpop.xlane.xlu0 %4879 }
0x1778   : > { %v7048_v49 = vpop.eup %7047  ;;  %v4943_v53 = vmul.f32 %v8655_v46, %v4942_v39  ;;  %7049 = vrcp.f32 %v4880_v56  ;;  %v4925_v58 = vand.u32 2147483648, %v4880_v56  ;;  %vm4919_vm6 = vweird.f32 %v4880_v56 }
0x1779   : > { %v4900_v35 = vmul.f32 %v7048_v49, %v4877_v50  ;;  %vm4905_vm13 = vweird.f32 %v7048_v49  ;;  %v4923_v59 = vand.u32 2147483647, %v4880_v56 }
0x177a   : > { %v5021_v14 = vpack.c.bf16 %v4943_v53, %v4943_v53  ;;  %vm4906_vm15 = vmor %vm4904_vm14, %vm4905_vm13  ;;  %v4926_v63 = vor.u32 1.1754944e-38, %v4925_v58 }
0x177b   : > { %v4901_v44 = vsub.f32 1.0, %v4900_v35  ;;  %vm4924_vm8 = vcmp.eq.f32.partialorder %v4923_v59, 8.507059e+37 }
0x177c   : > { %6583 = vmatmul.msk.bf16.vlgmr.msrb.gmra.mxu3 %vm969_vm3, %v5021_v14 }
0x177d   : > { %v4902_v55 = vmul.f32 %v7048_v49, %v4901_v44 }
0x177e   : > { %v7050_v26 = vpop.eup %7049 }
0x177f   : > { %v4903_v6 = vadd.f32 %v7048_v49, %v4902_v55  ;;  %v4915_v38 = vmul.f32 %v7050_v26, %v4880_v56  ;;  %vm4920_vm5 = vweird.f32 %v7050_v26  ;;  %v4886_v32 = vpop.xlane.xlu0 %4885 }
0x1780   : > { %vm4921_vm7 = vmor %vm4919_vm6, %vm4920_vm5  ;;  %7051 = vrcp.f32 %v4886_v32  ;;  %v4955_v13 = vand.u32 2147483648, %v4886_v32  ;;  %vm4949_vm10 = vweird.f32 %v4886_v32  ;;  %v4953_v36 = vand.u32 2147483647, %v4886_v32 }
0x1781   : > { %v4916_v45 = vsub.f32 1.0, %v4915_v38  ;;  %v4907_v54 = vsel %vm4906_vm15, %v7048_v49, %v4903_v6 }
0x1782   : > { %v4912_v46 = vsel %vm4909_vm4, %v4911_v30, %v4907_v54  ;;  %vm4954_vm13 = vcmp.eq.f32.partialorder %v4953_v36, 8.507059e+37 }
0x1783   : > { %v4917_v34 = vmul.f32 %v7050_v26, %v4916_v45  ;;  %v4913_v31 = vmul.f32 %v8659_v9, %v4912_v46 }
0x1785   : > { %v4918_v51 = vadd.f32 %v7050_v26, %v4917_v34  ;;  %v5019_v43 = vpack.c.bf16 %v4913_v31, %v4913_v31 }
0x1786   : > { %v7052_v10 = vpop.eup %7051 }
0x1787   : > { %v4922_v57 = vsel %vm4921_vm7, %v7050_v26, %v4918_v51  ;;  %v4945_v11 = vmul.f32 %v7052_v10, %v4886_v32  ;;  %vm4950_vm9 = vweird.f32 %v7052_v10 }
0x1788   : > { %v4927_v22 = vsel %vm4924_vm8, %v4926_v63, %v4922_v57  ;;  %vm4951_vm11 = vmor %vm4949_vm10, %vm4950_vm9 }
0x1789   : > { %v5028_v29 = vpop.permute.xlu1 %5027  ;;  %v4928_v1 = vmul.f32 %v8663_v61, %v4927_v22  ;;  %v4946_v41 = vsub.f32 1.0, %v4945_v11  ;;  %v4956_v61 = vor.u32 1.1754944e-38, %v4955_v13 }
0x178a   : > { %v5033_v5 = vsel %vm1175_vm2, %v5028_v29, 0 }
0x178b   : > { %5042 = vmatpush.bf16.msrb.mxu1 %v5033_v5  ;;  %v5020_v25 = vpack.c.bf16 %v4928_v1, %v4928_v1  ;;  %v4947_v17 = vmul.f32 %v7052_v10, %v4946_v41 }
0x178d   : > { %v4948_v21 = vadd.f32 %v7052_v10, %v4947_v17 }
0x178e   : > { %6581 = vmatmul.msk.bf16.vlgmr.msrb.gmra.mxu1 %vm969_vm3, %v5019_v43 }
0x178f   : > { %v4952_v12 = vsel %vm4951_vm11, %v7052_v10, %v4948_v21 }
0x1790   : > { %v4957_v0 = vsel %vm4954_vm13, %v4956_v61, %v4952_v12 }
0x1791   : > { %v4958_v18 = vmul.f32 %v8667_v62, %v4957_v0 }
0x1792   : > { %v5049_v9 = vpop.permute.xlu0 %5048 }
0x1793   : > { %v5054_v4 = vsel %vm1175_vm2, %v5049_v9, 0  ;;  %v5022_v37 = vpack.c.bf16 %v4958_v18, %v4958_v18 }
0x1794   : > { %5063 = vmatpush.bf16.msra.mxu2 %v5054_v4 }
0x1797   : > { %6582 = vmatmul.msk.bf16.vlgmr.msra.gmra.mxu2 %vm969_vm3, %v5020_v25 }
0x17a7   : > { %v4892_v15 = vpop.xlane.xlu2 %4891 }
0x17a8   : > { %7053 = vrcp.f32 %v4892_v15  ;;  %v4985_v50 = vand.u32 2147483648, %v4892_v15  ;;  %v4983_v40 = vand.u32 2147483647, %v4892_v15  ;;  %vm4979_vm15 = vweird.f32 %v4892_v15 }
0x17aa   : > { %v4986_v28 = vor.u32 1.1754944e-38, %v4985_v50  ;;  %vm4984_vm5 = vcmp.eq.f32.partialorder %v4983_v40, 8.507059e+37 }
0x17ae   : > { %v7054_v19 = vpop.eup %7053 }
0x17af   : > { %v4975_v23 = vmul.f32 %v7054_v19, %v4892_v15  ;;  %v5091_v20 = vpop.permute.xlu2 %5090  ;;  %vm4980_vm14 = vweird.f32 %v7054_v19 }
0x17b0   : > { %v5096_v24 = vsel %vm1175_vm2, %v5091_v20, 0  ;;  %vm4981_vm4 = vmor %vm4979_vm15, %vm4980_vm14 }
0x17b1   : > { %v4976_v48 = vsub.f32 1.0, %v4975_v23  ;;  %5105 = vmatpush.bf16.msra.mxu0 %v5096_v24  ;;  %v6589_v24 = vld [vmem:[%s8902_s5 + $0x30] sm:$0x3] }
0x17b3   : > { %v4977_v60 = vmul.f32 %v7054_v19, %v4976_v48  ;;  %v6590_v48 = vld [vmem:[%s8902_s5 + $0x32] sm:$0x3] }
0x17b4   : > { %6584 = vmatmul.msk.bf16.vlgmr.msra.gmra.mxu0 %vm969_vm3, %v5022_v37  ;;  %v4889_v42 = vpop.xlane.xlu1 %4888  ;;  %v5235_v37 = vsel %vm1358_vm12, %v6590_v48, 0 }
0x17b5   : > { %v4978_v27 = vadd.f32 %v7054_v19, %v4977_v60  ;;  %7055 = vrcp.f32 %v4889_v42  ;;  %v4970_v2 = vand.u32 2147483648, %v4889_v42  ;;  %v4968_v45 = vand.u32 2147483647, %v4889_v42 }
0x17b6   : > { %vm4964_vm7 = vweird.f32 %v4889_v42 }
0x17b7   : > { %v4982_v62 = vsel %vm4981_vm4, %v7054_v19, %v4978_v27  ;;  %v5133_v39 = vpop.permute.xlu2 %5132  ;;  %v4971_v34 = vor.u32 1.1754944e-38, %v4970_v2  ;;  %vm4969_vm9 = vcmp.eq.f32.partialorder %v4968_v45, 8.507059e+37  ;;  %v6596_v45 = vld [vmem:[%s8902_s5 + $0x3e] sm:$0x3] }
0x17b8   : > { %v4987_v56 = vsel %vm4984_vm5, %v4986_v28, %v4982_v62  ;;  %v5138_v49 = vsel %vm1175_vm2, %v5133_v39, 0  ;;  %v6592_v28 = vld [vmem:[%s8902_s5 + $0x36] sm:$0x3] }
0x17b9   : > { %v4988_v53 = vmul.f32 %v8677_v52, %v4987_v56  ;;  %5147 = vmatpush.bf16.msrb.mxu2 %v5138_v49  ;;  %v5273_v62 = vsel %vm1358_vm12, %v6592_v28, 0  ;;  %v7066_v28 = vld [vmem:[%s8488_s29] sm:$0x1]  ;;  %s478_s29 = sand.u32 1, %s7121_s30  }
0x17ba   : > { %s479_s24 = scalar_lea.vmem [#allocation2], %s478_s29  ;;  %s5708_s27 = scalar_lea.sflag [#allocation3], %s478_s29 }
0x17bb   : > { %v7056_v35 = vpop.eup %7055  ;;  %v5024_v14 = vpack.c.bf16 %v4988_v53, %v4988_v53  ;;  %v6594_v53 = vld [vmem:[%s8902_s5 + $0x3a] sm:$0x3]  ;;  %s5718_s15 = sshll.u32 %s479_s24, 4  ;;  %s5719_s15 = int_to_ptr.vmem [resolvable:$true] %s5718_s15 }
0x17bc   : > { %v4960_v44 = vmul.f32 %v7056_v35, %v4889_v42  ;;  %v4895_v55 = vpop.xlane.xlu1 %4894  ;;  %vm4965_vm6 = vweird.f32 %v7056_v35 }
0x17bd   : > { %7057 = vrcp.f32 %v4895_v55  ;;  %6586 = vmatmul.msk.bf16.vlgmr.msrb.gmra.mxu2 %vm969_vm3, %v5024_v14  ;;  %v4898_v26 = vpop.xlane.xlu0 %4897  ;;  %vm4966_vm8 = vmor %vm4964_vm7, %vm4965_vm6  ;;  %v5000_v22 = vand.u32 2147483648, %v4895_v55  ;;  %vm4994_vm11 = vweird.f32 %v4895_v55  ;;  %v4998_v1 = vand.u32 2147483647, %v4895_v55 }
0x17be   : > { %v4961_v6 = vsub.f32 1.0, %v4960_v44  ;;  %7059 = vrcp.f32 %v4898_v26  ;;  %vm5009_vm4 = vweird.f32 %v4898_v26  ;;  %v5013_v17 = vand.u32 2147483647, %v4898_v26  ;;  %5244 = vmatpush.bf16.msra.mxu2 %v5235_v37  ;;  %v6593_v44 = vld [vmem:[%s8902_s5 + $0x38] sm:$0x3] }
0x17bf   : > { %v5112_v38 = vpop.permute.xlu2 %5111  ;;  %v5001_v10 = vor.u32 1.1754944e-38, %v5000_v22  ;;  %vm4999_vm14 = vcmp.eq.f32.partialorder %v4998_v1, 8.507059e+37 }
0x17c0   : > { %v4962_v47 = vmul.f32 %v7056_v35, %v4961_v6  ;;  %v5117_v54 = vsel %vm1175_vm2, %v5112_v38, 0  ;;  %vm5014_vm6 = vcmp.eq.f32.partialorder %v5013_v17, 8.507059e+37  ;;  %v6595_v38 = vld [vmem:[%s8902_s5 + $0x3c] sm:$0x3] }
0x17c1   : > { %5126 = vmatpush.bf16.msra.mxu1 %v5117_v54  ;;  %v5349_v54 = vsel %vm1358_vm12, %v6596_v45, 0  ;;  %v6832_v45 = vld [vmem:[%s8904_s7 + $0xf0] sm:$0xff] }
0x17c2   : > { %v4963_v52 = vadd.f32 %v7056_v35, %v4962_v47  ;;  %v5330_v47 = vsel %vm1358_vm12, %v6595_v38, 0 }
0x17c3   : > { %v7058_v30 = vpop.eup %7057 }
0x17c4   : > { %v7060_v46 = vpop.eup %7059  ;;  %v4967_v51 = vsel %vm4966_vm8, %v7056_v35, %v4963_v52  ;;  %v4990_v31 = vmul.f32 %v7058_v30, %v4895_v55  ;;  %vm4995_vm10 = vweird.f32 %v7058_v30  ;;  %v5311_v35 = vsel %vm1358_vm12, %v6594_v53, 0 }
0x17c5   : > { %v4972_v58 = vsel %vm4969_vm9, %v4971_v34, %v4967_v51  ;;  %v5005_v59 = vmul.f32 %v7060_v46, %v4898_v26  ;;  %vm4996_vm13 = vmor %vm4994_vm11, %vm4995_vm10  ;;  %vm5010_vm15 = vweird.f32 %v7060_v46  ;;  %5320 = vmatpush.bf16.msrb.mxu2 %v5311_v35  ;;  %v5292_v55 = vsel %vm1358_vm12, %v6593_v44, 0 }
0x17c6   : > { %v4973_v29 = vmul.f32 %v8682_v33, %v4972_v58  ;;  %v4991_v32 = vsub.f32 1.0, %v4990_v31  ;;  %v5015_v33 = vand.u32 2147483648, %v4898_v26  ;;  %vm5011_vm5 = vmor %vm5009_vm4, %vm5010_vm15  ;;  %vm5705_vm10 = vcmask 16384  }
0x17c7   : > { %v5006_v43 = vsub.f32 1.0, %v5005_v59 }
0x17c8   : > { %v5023_v5 = vpack.c.bf16 %v4973_v29, %v4973_v29  ;;  %v4992_v57 = vmul.f32 %v7058_v30, %v4991_v32  ;;  %v5016_v15 = vor.u32 1.1754944e-38, %v5015_v33 }
0x17c9   : > { %v5007_v4 = vmul.f32 %v7060_v46, %v5006_v43 }
0x17ca   : > { %v4993_v63 = vadd.f32 %v7058_v30, %v4992_v57  ;;  %6585 = vmatmul.msk.bf16.vlgmr.msra.gmra.mxu1 %vm969_vm3, %v5023_v5 }
0x17cb   : > { %v5008_v11 = vadd.f32 %v7060_v46, %v5007_v4 }
0x17cc   : > { %v4997_v9 = vsel %vm4996_vm13, %v7058_v30, %v4993_v63 }
0x17cd   : > { %v5002_v25 = vsel %vm4999_vm14, %v5001_v10, %v4997_v9  ;;  %v5012_v13 = vsel %vm5011_vm5, %v7060_v46, %v5008_v11 }
0x17ce   : > { %v5003_v41 = vmul.f32 %v8686_v3, %v5002_v25  ;;  %v5017_v61 = vsel %vm5014_vm6, %v5016_v15, %v5012_v13  ;;  %v6591_v3 = vld [vmem:[%s8902_s5 + $0x34] sm:$0x3]  ;;  %v8774_v15 = vld [vmem:[%s8906_s9 + $0x18] sm:$0xff] }
0x17cf   : > { %v5018_v0 = vmul.f32 %v8688_v16, %v5017_v61  ;;  %v5254_v23 = vsel %vm1358_vm12, %v6591_v3, 0  ;;  %v5216_v16 = vsel %vm1358_vm12, %v6589_v24, 0  ;;  %5407 = vst [vmem:[#allocation1] sm:$0xff] %v8774_v15 }
0x17d0   : > { %v5025_v12 = vpack.c.bf16 %v5003_v41, %v5003_v41  ;;  %5225 = vmatpush.bf16.msrb.mxu1 %v5216_v16 }
0x17d1   : > { %v5026_v20 = vpack.c.bf16 %v5018_v0, %v5018_v0 }
0x17d4   : > { %v5154_v21 = vpop.permute.xlu1 %5153  ;;  %5301 = vmatpush.bf16.msra.mxu1 %v5292_v55 }
0x17d5   : > { %v5159_v36 = vsel %vm1175_vm2, %v5154_v21, 0 }
0x17d6   : > { %5168 = vmatpush.bf16.msra.mxu3 %v5159_v36 }
0x17d9   : > { %6587 = vmatmul.msk.bf16.vlgmr.msra.gmra.mxu3 %vm969_vm3, %v5025_v12 }
0x17da   : > { %5263 = vmatpush.bf16.msrb.mxu3 %v5254_v23 }
0x17dc   : > { %v5175_v19 = vpop.permute.xlu1 %5174 }
0x17dd   : > { %v5180_v18 = vsel %vm1175_vm2, %v5175_v19, 0  ;;  %vm5366_vm2 = vcmask 253952  }
0x17de   : > { %5189 = vmatpush.bf16.msrb.mxu0 %v5180_v18  ;;  %5339 = vmatpush.bf16.msra.mxu3 %v5330_v47 }
0x17e1   : > { %6588 = vmatmul.msk.bf16.vlgmr.msrb.gmra.mxu0 %vm969_vm3, %v5026_v20 }
0x17e2   : > { %5282 = vmatpush.bf16.msra.mxu0 %v5273_v62 }
0x17e6   : > { %5358 = vmatpush.bf16.msrb.mxu0 %v5349_v54 }
0x17ff   : > { %v5086_v50 = vpop.f32.mrf.mxu3 }
0x1800   : > { %v5197_v60 = vpack.c.bf16 %v5086_v50, %v5086_v50 }
0x1802   : > { %6599 = vmatmul.msk.bf16.vlgmr.msrb.gmra.mxu3 %vm781_vm1, %v5197_v60 }
0x1807   : > { %v5088_v40 = vpop.f32.mrf.mxu3 }
0x180b   : > { %v5044_v42 = vpop.f32.mrf.mxu1 }
0x180c   : > { %v5195_v27 = vpack.c.bf16 %v5044_v42, %v5044_v42 }
0x180e   : > { %6597 = vmatmul.msk.bf16.vlgmr.msrb.gmra.mxu1 %vm781_vm1, %v5195_v27 }
0x1813   : > { %v5046_v39 = vpop.f32.mrf.mxu1 }
0x181a   : > { %v5065_v56 = vpop.f32.mrf.mxu2 }
0x181b   : > { %v5196_v49 = vpack.c.bf16 %v5065_v56, %v5065_v56  ;;  %v5409_v56 = vld [vmem:[#allocation1 + $0x1] ss:$9 sm:$0xff] }
0x181c   : > { %5412 = vst [vmem:[#allocation1] sm:$0xff] %v8774_v15 }
0x181d   : > { %6598 = vmatmul.msk.bf16.vlgmr.msra.gmra.mxu2 %vm781_vm1, %v5196_v49 }
0x1822   : > { %v5067_v14 = vpop.f32.mrf.mxu2 }
0x1823   : > { %v5414_v49 = vld [vmem:[#allocation1 + $0x2] ss:$9 sm:$0xff] }
0x1824   : > { %5558 = vst [vmem:[#allocation1] sm:$0xff] %v8774_v15 }
0x1831   : > { %v5107_v26 = vpop.f32.mrf.mxu0 }
0x1832   : > { %v5198_v6 = vpack.c.bf16 %v5107_v26, %v5107_v26  ;;  %v6825_v26 = vld [vmem:[%s8903_s6 + $0x38] sm:$0xff] }
0x1833   : > { %5446 = vmatpush.bf16.msrb.mxu1 %v6825_v26 }
0x1834   : > { %6600 = vmatmul.msk.bf16.vlgmr.msra.gmra.mxu0 %vm781_vm1, %v5198_v6  ;;  %v6824_v6 = vld [vmem:[%s8903_s6 + $0x30] sm:$0xff] }
0x1837   : > { %5447 = vmatpush.bf16.msrb.mxu1 %v6824_v6 }
0x1839   : > { %v5109_v2 = vpop.f32.mrf.mxu0 }
0x183a   : > { %v6833_v2 = vld [vmem:[%s8904_s7 + $0xf8] sm:$0xff] }
0x183b   : > { %5522 = vmatpush.bf16.msra.mxu2 %v6833_v2 }
0x183f   : > { %5523 = vmatpush.bf16.msra.mxu2 %v6832_v45  ;;  %v6841_v45 = vld [vmem:[%s8909_s12 + $0x8] sm:$0xff] }
0x1840   : > { %v5149_v52 = vpop.f32.mrf.mxu2 }
0x1841   : > { %v5200_v30 = vpack.c.bf16 %v5149_v52, %v5149_v52  ;;  %v6831_v52 = vld [vmem:[%s8904_s7 + $0xe8] sm:$0xff] }
0x1843   : > { %6602 = vmatmul.msk.bf16.vlgmr.msrb.gmra.mxu2 %vm781_vm1, %v5200_v30  ;;  %v6830_v30 = vld [vmem:[%s8904_s7 + $0xe0] sm:$0xff] }
0x1844   : > { %5524 = vmatpush.bf16.msra.mxu2 %v6831_v52  ;;  %v6840_v52 = vld [vmem:[%s8909_s12] sm:$0xff] }
0x1847   : > { %v5128_v34 = vpop.f32.mrf.mxu1 }
0x1848   : > { %v5199_v46 = vpack.c.bf16 %v5128_v34, %v5128_v34  ;;  %v5151_v51 = vpop.f32.mrf.mxu2  ;;  %5525 = vmatpush.bf16.msra.mxu2 %v6830_v30 }
0x1849   : > { %v6829_v51 = vld [vmem:[%s8904_s7 + $0xd8] sm:$0xff] }
0x184a   : > { %6601 = vmatmul.msk.bf16.vlgmr.msra.gmra.mxu1 %vm781_vm1, %v5199_v46 }
0x184c   : > { %5526 = vmatpush.bf16.msra.mxu2 %v6829_v51 }
0x184f   : > { %v5130_v31 = vpop.f32.mrf.mxu1 }
0x185c   : > { %v5170_v58 = vpop.f32.mrf.mxu3 }
0x185d   : > { %v5201_v59 = vpack.c.bf16 %v5170_v58, %v5170_v58 }
0x185e   : > { %v5191_v29 = vpop.f32.mrf.mxu0 }
0x185f   : > { %v5202_v32 = vpack.c.bf16 %v5191_v29, %v5191_v29  ;;  %6603 = vmatmul.msk.bf16.vlgmr.msra.gmra.mxu3 %vm781_vm1, %v5201_v59  ;;  %v6828_v59 = vld [vmem:[%s8904_s7 + $0xd0] sm:$0xff] }
0x1860   : > { %5527 = vmatpush.bf16.msra.mxu2 %v6828_v59 }
0x1861   : > { %6604 = vmatmul.msk.bf16.vlgmr.msrb.gmra.mxu0 %vm781_vm1, %v5202_v32 }
0x1864   : > { %v5172_v5 = vpop.f32.mrf.mxu3 }
0x1866   : > { %v5193_v57 = vpop.f32.mrf.mxu0 }
0x1885   : > { %v5265_v43 = vpop.f32.mrf.mxu3 }
0x1886   : > { %v5370_v11 = vsel %vm5366_vm2, %v5265_v43, 0.0 }
0x188b   : > { %v5227_v63 = vpop.f32.mrf.mxu1 }
0x188c   : > { %v5367_v4 = vsel %vm5366_vm2, %v5227_v63, 0.0 }
0x188d   : > { %v5267_v22 = vpop.f32.mrf.mxu3 }
0x1893   : > { %v5229_v1 = vpop.f32.mrf.mxu1 }
0x1894   : > { %v6827_v1 = vld [vmem:[%s8904_s7 + $0xc8] sm:$0xff] }
0x1895   : > { %5528 = vmatpush.bf16.msra.mxu2 %v6827_v1 }
0x18a0   : > { %v5246_v9 = vpop.f32.mrf.mxu2 }
0x18a1   : > { %v5368_v10 = vsel %vm5366_vm2, %v5246_v9, 0.0  ;;  %v6826_v9 = vld [vmem:[%s8904_s7 + $0xc0] sm:$0xff] }
0x18a2   : > { %v5369_v25 = vadd.f32 %v5368_v10, %v5367_v4  ;;  %5529 = vmatpush.bf16.msra.mxu2 %v6826_v9  ;;  %v6610_v4 = vld [vmem:[%s8905_s8 + $0x3] sm:$0x1] }
0x18a4   : > { %v5371_v33 = vadd.f32 %v5370_v11, %v5369_v25 }
0x18a8   : > { %v5248_v41 = vpop.f32.mrf.mxu2 }
0x18b1   : > { %v5284_v17 = vpop.f32.mrf.mxu0 }
0x18b2   : > { %v5372_v0 = vsel %vm5366_vm2, %v5284_v17, 0.0  ;;  %v5520_v17 = vrot.slane %v8774_v15, 3 }
0x18b3   : > { %v5373_v18 = vadd.f32 %v5372_v0, %v5371_v33  ;;  %v6835_v0 = vld [vmem:[%s8907_s10 + $0x8] sm:$0xff] }
0x18b4   : > { %5591 = vmatpush.bf16.msrb.mxu3 %v6835_v0 }
0x18b9   : > { %v5286_v21 = vpop.f32.mrf.mxu0 }
0x18c6   : > { %v5322_v13 = vpop.f32.mrf.mxu2 }
0x18c7   : > { %v5303_v36 = vpop.f32.mrf.mxu1  ;;  %v5376_v20 = vsel %vm5366_vm2, %v5322_v13, 0.0 }
0x18c8   : > { %v5374_v19 = vsel %vm5366_vm2, %v5303_v36, 0.0 }
0x18c9   : > { %v5375_v3 = vadd.f32 %v5374_v19, %v5373_v18  ;;  %v6834_v19 = vld [vmem:[%s8907_s10] sm:$0xff] }
0x18ca   : > { %5592 = vmatpush.bf16.msrb.mxu3 %v6834_v19  ;;  %v5560_v18 = vld [vmem:[#allocation1 + $0x4] ss:$9 sm:$0xff] }
0x18cb   : > { %v5377_v16 = vadd.f32 %v5376_v20, %v5375_v3  ;;  %5563 = vst [vmem:[#allocation1] sm:$0xff] %v8774_v15 }
0x18cd   : > { %6676 = vmatmul.msk.bf16.vlgmr.msrb.gmra.mxu3 %vm573_vm0, %v8491_v7  ;;  %v6836_v7 = vld [vmem:[%s8907_s10 + $0x10] sm:$0xff] }
0x18ce   : > { %v5324_v12 = vpop.f32.mrf.mxu2  ;;  %5698 = vmatpush.bf16.msra.mxu3 %v6841_v45 }
0x18cf   : > { %v5305_v61 = vpop.f32.mrf.mxu1 }
0x18d2   : > { %v5565_v6 = vld [vmem:[#allocation1 + $0x5] ss:$9 sm:$0xff]  ;;  %5699 = vmatpush.bf16.msra.mxu3 %v6840_v52 }
0x18de   : > { %v5360_v23 = vpop.f32.mrf.mxu0 }
0x18df   : > { %v5380_v50 = vsel %vm5366_vm2, %v5360_v23, 0.0 }
0x18e2   : > { %v5341_v24 = vpop.f32.mrf.mxu3 }
0x18e3   : > { %v5378_v48 = vsel %vm5366_vm2, %v5341_v24, 0.0 }
0x18e4   : > { %v5379_v37 = vadd.f32 %v5378_v48, %v5377_v16  ;;  %v6837_v48 = vld [vmem:[%s8907_s10 + $0x18] sm:$0xff] }
0x18e5   : > { %5659 = vmatpush.bf16.msra.mxu1 %v6837_v48 }
0x18e6   : > { %v5381_v60 = vadd.f32 %v5380_v50, %v5379_v37  ;;  %v5362_v40 = vpop.f32.mrf.mxu0 }
0x18e7   : > { %v6839_v40 = vld [vmem:[%s8907_s10 + $0x28] sm:$0xff] }
0x18e8   : > { %v5382_v42 = vadd.f32 %v8774_v15, %v5381_v60  ;;  %v5568_v15 = vld [vmem:[%s8908_s11] sm:$0xff]  ;;  %5631 = vmatpush.bf16.msra.mxu0 %v6839_v40 }
0x18e9   : > { %5660 = vmatpush.bf16.msra.mxu1 %v6836_v7  ;;  %v5667_v30 = vrot.slane %v5568_v15, 1 }
0x18ea   : > { %v5343_v27 = vpop.f32.mrf.mxu3  ;;  %v5383_v62 = vadd.f32 %v7066_v28, %v5382_v42  ;;  %v6838_v42 = vld [vmem:[%s8907_s10 + $0x20] sm:$0xff] }
0x18ec   : > { %v5384_v39 = vsel %vm5366_vm2, %v5383_v62, 0.0  ;;  %5632 = vmatpush.bf16.msra.mxu0 %v6838_v42 }
0x18ed   : > { %5385 = vadd.xlane.f32.xlu2 %v5384_v39 }
0x1950   : > { %v5594_v37 = vpop.f32.mrf.mxu3 }
0x1951   : > { %v5595_v50 = vadd.f32 %v5594_v37, %v5568_v15 }
0x1953   : > { %v5603_v60 = vpack.c.bf16 %v5595_v50, %v5595_v50 }
0x1958   : > { %v5596_v27 = vpop.f32.mrf.mxu3 }
0x1960   : > { %v5386_v53 = vpop.xlane.xlu2 %5385 }
0x1961   : > { %v5387_v35 = vmul.f32 %v5386_v53, %v7636_v8 }
0x1963   : > { %v5388_v14 = vsub.f32 %v5383_v62, %v5387_v35 }
0x1965   : > { %v5389_v44 = vmul.f32 %v5388_v14, %v5388_v14 }
0x1967   : > { %v5390_v55 = vsel %vm5366_vm2, %v5389_v44, 0.0 }
0x1968   : > { %5391 = vadd.xlane.f32.xlu1 %v5390_v55 }
0x19db   : > { %v5392_v38 = vpop.xlane.xlu1 %5391 }
0x19dc   : > { %v5393_v47 = vmul.f32 %v5392_v38, %v7636_v8 }
0x19de   : > { %v5394_v54 = vadd.f32 1e-05, %v5393_v47 }
0x19e0   : > { %7061 = vrsqrt.f32 %v5394_v54  ;;  %vm5401_vm3 = vweird.f32 %v5394_v54 }
0x19e6   : > { %v7062_v34 = vpop.eup %7061 }
0x19e7   : > { %v5396_v46 = vmul.f32 %v7062_v34, %v5394_v54  ;;  %vm5402_vm1 = vweird.f32 %v7062_v34 }
0x19e8   : > { %vm5403_vm12 = vmor %vm5401_vm3, %vm5402_vm1 }
0x19e9   : > { %v5397_v31 = vmul.f32 %v7062_v34, %v5396_v46 }
0x19eb   : > { %v5398_v58 = vmul.f32 0.5, %v5397_v31 }
0x19ed   : > { %v5399_v29 = vsub.f32 1.5, %v5398_v58 }
0x19ef   : > { %v5400_v32 = vmul.f32 %v7062_v34, %v5399_v29  ;;  %v5676_v29 = vld [vmem:[%s8910_s13] sm:$0x1] }
0x19f1   : > { %v5404_v5 = vsel %vm5403_vm12, %v7062_v34, %v5400_v32 }
0x19f2   : > { %v5405_v57 = vmul.f32 %v5404_v5, %v5388_v14 }
0x19f4   : > { %v5411_v43 = vmul.f32 %v5409_v56, %v5405_v57 }
0x19f6   : > { %v5416_v63 = vadd.f32 %v5414_v49, %v5411_v43 }
0x19f8   : > { %v5422_v22 = vpack.c.bf16 %v5416_v63, %v5416_v63 }
0x19fa   : > { %6619 = vmatmul.msk.bf16.vlgmr.msrb.gmra.mxu1 %vm573_vm0, %v5422_v22 }
0x1a0a   : > { %6702 = vmatmul.msk.bf16.vlgmr.msra.gmra.mxu1 %vm573_vm0, %v5603_v60 }
0x1a77   : > { %v5449_v10 = vpop.f32.mrf.mxu1 }
0x1a78   : > { %v5450_v25 = vadd.f32 %v6610_v4, %v5449_v10 }
0x1a7a   : > { %v5453_v11 = vmax.f32 %v5450_v25, 0.0 }
0x1a7c   : > { %v5471_v33 = vpack.c.bf16 %v5453_v11, %v5453_v11 }
0x1a7e   : > { %5530 = vmatmul.bf16.vlgmr.msra.gmra.mxu2 %v5471_v33 }
0x1a7f   : > { %v5451_v41 = vpop.f32.mrf.mxu1 }
0x1b01   : > { %v5531_v21 = vpop.f32.mrf.mxu2 }
0x1b02   : > { %v5532_v13 = vadd.f32 %v5531_v21, %v5520_v17 }
0x1b04   : > { %v5535_v36 = vadd.f32 %v5532_v13, %v5416_v63 }
0x1b06   : > { %v5536_v12 = vsel %vm5366_vm2, %v5535_v36, 0.0 }
0x1b07   : > { %5537 = vadd.xlane.f32.xlu0 %v5536_v12 }
0x1b09   : > { %v5533_v61 = vpop.f32.mrf.mxu2 }
0x1b7a   : > { %v5538_v3 = vpop.xlane.xlu0 %5537 }
0x1b7b   : > { %v5539_v23 = vmul.f32 %v5538_v3, %v7636_v8 }
0x1b7d   : > { %v5540_v20 = vsub.f32 %v5535_v36, %v5539_v23 }
0x1b7f   : > { %v5541_v24 = vmul.f32 %v5540_v20, %v5540_v20 }
0x1b81   : > { %v5542_v16 = vsel %vm5366_vm2, %v5541_v24, 0.0 }
0x1b82   : > { %5543 = vadd.xlane.f32.xlu0 %v5542_v16 }
0x1bf5   : > { %v5544_v28 = vpop.xlane.xlu0 %5543 }
0x1bf6   : > { %v5545_v62 = vmul.f32 %v5544_v28, %v7636_v8  ;;  %v5662_v8 = vpop.f32.mrf.mxu1 }
0x1bf8   : > { %v5546_v39 = vadd.f32 1e-05, %v5545_v62 }
0x1bfa   : > { %7063 = vrsqrt.f32 %v5546_v39  ;;  %vm5553_vm8 = vweird.f32 %v5546_v39 }
0x1bfe   : > { %v5664_v54 = vpop.f32.mrf.mxu1 }
0x1c00   : > { %v7064_v56 = vpop.eup %7063 }
0x1c01   : > { %v5548_v49 = vmul.f32 %v7064_v56, %v5546_v39  ;;  %vm5554_vm7 = vweird.f32 %v7064_v56 }
0x1c02   : > { %vm5555_vm9 = vmor %vm5553_vm8, %vm5554_vm7 }
0x1c03   : > { %v5549_v53 = vmul.f32 %v7064_v56, %v5548_v49 }
0x1c05   : > { %v5550_v35 = vmul.f32 0.5, %v5549_v53 }
0x1c07   : > { %v5551_v14 = vsub.f32 1.5, %v5550_v35 }
0x1c09   : > { %v5552_v44 = vmul.f32 %v7064_v56, %v5551_v14 }
0x1c0b   : > { %v5556_v55 = vsel %vm5555_vm9, %v7064_v56, %v5552_v44 }
0x1c0c   : > { %v5557_v26 = vmul.f32 %v5556_v55, %v5540_v20 }
0x1c0e   : > { %v5562_v2 = vmul.f32 %v5560_v18, %v5557_v26 }
0x1c10   : > { %v5567_v38 = vadd.f32 %v5565_v6, %v5562_v2 }
0x1c12   : > { %v5609_v47 = vpack.c.bf16 %v5567_v38, %v5567_v38 }
0x1c14   : > { %6693 = vmatmul.msk.bf16.vlgmr.msra.gmra.mxu0 %vm573_vm0, %v5609_v47 }
0x1c91   : > { %v5634_v34 = vpop.f32.mrf.mxu0 }
0x1c92   : > { %v5663_v46 = vadd.f32 %v5662_v8, %v5634_v34 }
0x1c94   : > { %v5669_v51 = vadd.f32 %v5667_v30, %v5663_v46 }
0x1c96   : > { %v5670_v31 = vmax.f32 %v5669_v51, 0.0 }
0x1c98   : > { %v5675_v58 = vpack.c.bf16 %v5670_v31, %v5670_v31 }
0x1c99   : > { %v5636_v59 = vpop.f32.mrf.mxu0 }
0x1c9a   : > { %6711 = vmatmul.msk.bf16.vlgmr.msra.gmra.mxu3 %vm573_vm0, %v5675_v58 }
0x1d1d   : > { %v5701_v32 = vpop.f32.mrf.mxu3 }
0x1d1e   : > { %v5702_v5 = vadd.f32 %v5701_v32, %v5676_v29 }
0x1d20   : > { %5706 = vst.msk [vmem:[%s479_s24] sm:$0x1] %vm5705_vm10, %v5702_v5 }
0x1d21   : > { %7094 = shalt.err (!%p7091_p3)
}
0x1d22   : > { %6842 = dma.vmem_to_hbm [thread:$0]  (%p7247_p5), %s5719_s15, 16, %s5721_s25, %s5708_s27  }
0x1d25   : > { %v5703_v57 = vpop.f32.mrf.mxu3 }
0x1d26 PF: > { %s8938_s29 = sld [smem:[#allocation7_spill]] }
0x1d27   : > { %s8939_s22 = sld [smem:[#allocation5_spill]] }
0x1d2c   : > { %p6848_p4 = scmp.ge.s32.totalorder %s8938_s29, 2 }
0x1d2d   : > { %s5732_s24 = sand.u32 1, %s8939_s22  }
0x1d2e   : > { %p6845_p7 = pnand %p6848_p4, %p7251_p6  ;;  %s5733_s17 = scalar_lea.sflag [#allocation3], %s5732_s24 }
0x1d30   : > { %p6846_p8 = pneg %p6845_p7 }
0x1d32   : > { %7112 = dma.done.wait (%p6846_p8), %s5733_s17, 16  }
0x1d33   : > { %7114 = vsyncadd (%p6846_p8), %s5733_s17, 4294967280  ;;  %s8941_s16 = sld [smem:[#allocation8_spill]]  ;;  %s8944_s29 = smov %s7121_s30 }
0x1d34   : > { %s8942_s21 = sld [smem:[#allocation6_spill]] }
0x1d35   : > { %s8943_s15 = sld [smem:[#allocation9_spill]] }
0x1d39   : > { %p24_p9 = scmp.ge.s32.totalorder %s8941_s16, 4  }
0x1d3a   : > { %s8945_s30 = smov %s8942_s21 }
0x1d3b   :  { %26 = sbr.rel (!%p24_p9) target bundleno = 3 (0x3), region = 144 }
0x1d40   :  { %5738 = vsyncpa [#allocation3], 1 }
0x1d41   :  { %5740 = vsyncpa [#allocation3 + $0x1], 1 }

</bundles_post_ra>
